<compile_context>
chip_gen: v7x
topology: tpu7x:2x2x1
jax: 0.10.0
libtpu: 0.0.40
codegen_flags: <defaults>
</compile_context>

<pallas_src>
import functools

import jax
import jax.numpy as jnp
import numpy as np
from jax.experimental import pallas as pl
from jax.experimental.pallas import tpu as pltpu


def _round_up(a, b):
    return (a + b - 1) // b * b


def _col_matvec(mat, vec):
    """(N, K) @ (K, 1) -> (N, 1) via K broadcast-MACs on the VPU.

    Runs once per batch on pooled (C,)- / (L,)-sized vectors, so an N == 1
    MXU matmul buys nothing; unrolled broadcast-multiply-adds keep it cheap.
    """
    acc = mat[:, 0:1] * vec[0:1, :]
    for k in range(1, mat.shape[1]):
        acc = acc + mat[:, k:k + 1] * vec[k:k + 1, :]
    return acc


# ---------------------------------------------------------------------------
# Fused per-batch kernel: dilated convs + BN + ReLU + GAP + squeeze fc +
# branch softmax + attention-weighted sum.
# ---------------------------------------------------------------------------
def _skconv_fused_kernel(x_ref, w_ref, bns_ref, bnb_ref, mask_ref,
                         fcw_ref, fcs_ref, fcb_ref, fcsw_ref, fcsb_ref,
                         o_ref, stream_ref, feats_ref, *im2col_scratch,
                         H, W, C, branches, pad, Wwide, SP, slack, base,
                         stream_len, inv_hw, use_mxu, sdt):
    # -- (1) Padded, per-row-flattened input stream (built once per batch). --
    # Zero ONLY the padding columns; interior rows are fully overwritten by
    # lane-dense row copies from the (C, H*W) input block.
    margin = Wwide - W                                   # 2 * pad
    stream_ref[:, 0:base] = jnp.zeros((C, base), sdt)    # slack + top rows
    for h in range(H - 1):                               # inter-row margins
        m0 = base + h * Wwide + W
        stream_ref[:, m0:m0 + margin] = jnp.zeros((C, margin), sdt)
    t0 = base + (H - 1) * Wwide + W                      # bottom rows + tail
    stream_ref[:, t0:stream_len] = jnp.zeros((C, stream_len - t0), sdt)
    for h in range(H):                                   # interior rows
        off = base + h * Wwide
        stream_ref[:, off:off + W] = x_ref[0, :, h * W:(h + 1) * W]

    taps = [(ky, kx) for ky in range(3) for kx in range(3)]

    # -- (2) Per-branch dilated 3x3 conv + folded BN + ReLU; features stay in
    #        f32 VMEM; masked GAP partials accumulate into a register value. --
    g = jnp.zeros((C, 1), jnp.float32)
    for bi in range(branches):
        d = bi + 1
        if use_mxu:
            im2col_ref = im2col_scratch[0]
            # TODO(synk): replace the 9 unaligned slab copies with 3
            # pltpu.roll lane shifts reused across the ky offsets.
            for t, (ky, kx) in enumerate(taps):
                dy, dx = d * (ky - 1), d * (kx - 1)
                start = slack + (pad + dy) * Wwide + dx
                im2col_ref[t * C:(t + 1) * C, :] = (
                    stream_ref[:, start:start + SP])
            acc = jnp.dot(w_ref[bi, :, :], im2col_ref[...],
                          preferred_element_type=jnp.float32)
        else:
            # Small C: 9*C shifted VPU broadcast-FMAs -- the MXU would be
            # almost all padding here and the im2col copies would dominate.
            wmat = w_ref[bi, :, :]                       # (C, 9*C) f32
            acc = jnp.zeros((C, SP), jnp.float32)
            for t, (ky, kx) in enumerate(taps):
                dy, dx = d * (ky - 1), d * (kx - 1)
                start = slack + (pad + dy) * Wwide + dx
                shifted = stream_ref[:, start:start + SP]    # (C, SP)
                for ci in range(C):
                    k = t * C + ci
                    acc = acc + wmat[:, k:k + 1] * shifted[ci:ci + 1, :]
        feat = jnp.maximum(acc * bns_ref[bi, :, :] + bnb_ref[bi, :, :], 0.0)
        feats_ref[bi, :, :] = feat
        g = g + jnp.sum(feat * mask_ref[...], axis=1, keepdims=True)

    # -- (3) GAP finalize + squeeze fc + folded BN + ReLU (once per batch). --
    g = g * inv_hw                                       # (C, 1)
    z = _col_matvec(fcw_ref[...], g)                     # (L, 1)
    z = jnp.maximum(z * fcs_ref[...] + fcb_ref[...], 0.0)

    # -- (4) Per-branch attention logits + softmax across branches (f32). --
    logits = [_col_matvec(fcsw_ref[bi, :, :], z) + fcsb_ref[bi, :, :]
              for bi in range(branches)]
    m = logits[0]
    for bi in range(1, branches):
        m = jnp.maximum(m, logits[bi])
    exps = [jnp.exp(l - m) for l in logits]
    denom = exps[0]
    for bi in range(1, branches):
        denom = denom + exps[bi]
    inv = pl.reciprocal(denom, approx=True)              # EUP slot
    inv = inv * (2.0 - denom * inv)                      # one Newton step

    # -- (5) Attention-weighted branch sum: one lane-dense (C, SP) store. --
    out = (exps[0] * inv) * feats_ref[0, :, :]
    for bi in range(1, branches):
        out = out + (exps[bi] * inv) * feats_ref[bi, :, :]
    o_ref[0, :, :] = out.astype(o_ref.dtype)


# ---------------------------------------------------------------------------
# Wrapper
# ---------------------------------------------------------------------------
def skconv_forward(x_nchw, params):
    """SKConv forward.  x_nchw: (B, C, H, W) f32.  Stride == 1 only."""
    convw, bn_s, bn_b, fcw, fc_s, fc_b, fcsw, fcsb = params
    B, C, H, W = x_nchw.shape
    branches = convw.shape[0]
    L = fcw.shape[0]

    pad = branches                    # max dilation == number of branches
    Wwide = W + 2 * pad               # per-row zero padding kept in layout
    SP = _round_up(H * Wwide, 128)    # lane-dense flattened spatial extent
    slack = pad                       # head slack -> all tap slices in-bounds
    base = slack + pad * Wwide + pad  # offset of x[.., 0, 0] inside stream
    stream_len = _round_up(slack + 2 * pad * Wwide + pad + SP, 128)
    inv_hw = 1.0 / (H * W)

    # MXU only pays off when C fills its rows; below that use shifted VPU FMAs.
    use_mxu = C >= 128 and C % 16 == 0
    act_dt = jnp.bfloat16 if use_mxu else jnp.float32

    # ---- layout plumbing (tiny, done once in XLA) ----
    x_lane = x_nchw.reshape(B, C, H * W).astype(act_dt)   # lane-dense input
    # (br, O, I, kh, kw) -> (br, O, kh, kw, I) -> (br, O, 9I)
    w_k = jnp.transpose(convw, (0, 1, 3, 4, 2)).reshape(branches, C, 9 * C)
    w_k = w_k.astype(act_dt)
    bns_k = bn_s.reshape(branches, C, 1).astype(jnp.float32)
    bnb_k = bn_b.reshape(branches, C, 1).astype(jnp.float32)
    fcw_k = fcw.astype(jnp.float32)
    fcs_k = fc_s.reshape(L, 1).astype(jnp.float32)
    fcb_k = fc_b.reshape(L, 1).astype(jnp.float32)
    fcsw_k = fcsw.astype(jnp.float32)
    fcsb_k = fcsb.reshape(branches, C, 1).astype(jnp.float32)

    # GAP mask: 1.0 at valid (h, w) positions of the flattened wide layout.
    mask_np = np.zeros((1, SP), np.float32)
    for h in range(H):
        mask_np[0, h * Wwide + pad:h * Wwide + pad + W] = 1.0
    gap_mask = jnp.asarray(mask_np)

    # ---- VMEM budget (input / output blocks are double-buffered) ----
    abytes = 2 if use_mxu else 4
    est = (2 * C * H * W * abytes                 # input block  (x2 buffers)
           + 2 * C * SP * 4                       # output block (x2 buffers)
           + C * stream_len * abytes              # padded stream scratch
           + branches * C * SP * 4                # f32 branch features
           + (9 * C * SP * 2 if use_mxu else 0)   # im2col (MXU path only)
           + branches * C * 9 * C * abytes        # conv weights
           + 64 * 1024)                           # small params + slack
    try:
        vmem_cap = int(pltpu.get_tpu_info().vmem_capacity_bytes)
    except Exception:
        vmem_cap = 64 * 1024 * 1024               # assume v7x-sized VMEM
    vmem_limit = int(min(0.75 * vmem_cap, max(32 * 1024 * 1024, 2 * est)))
    # TODO(synk): fall back to a two-pass (features-through-HBM) variant when
    # `est` does not fit the per-core VMEM budget (very large C * H * W).

    kernel = functools.partial(
        _skconv_fused_kernel, H=H, W=W, C=C, branches=branches, pad=pad,
        Wwide=Wwide, SP=SP, slack=slack, base=base, stream_len=stream_len,
        inv_hw=inv_hw, use_mxu=use_mxu, sdt=act_dt)

    scratch = [pltpu.VMEM((C, stream_len), act_dt),          # padded stream
               pltpu.VMEM((branches, C, SP), jnp.float32)]   # branch features
    if use_mxu:
        scratch.append(pltpu.VMEM((9 * C, SP), jnp.bfloat16))

    out_flat = pl.pallas_call(
        kernel,
        out_shape=jax.ShapeDtypeStruct((B, C, SP), jnp.float32),
        grid_spec=pltpu.PrefetchScalarGridSpec(
            num_scalar_prefetch=0,
            grid=(B,),
            in_specs=[
                pl.BlockSpec((1, C, H * W), lambda b: (b, 0, 0)),
                pl.BlockSpec((branches, C, 9 * C), lambda b: (0, 0, 0)),
                pl.BlockSpec((branches, C, 1), lambda b: (0, 0, 0)),
                pl.BlockSpec((branches, C, 1), lambda b: (0, 0, 0)),
                pl.BlockSpec((1, SP), lambda b: (0, 0)),
                pl.BlockSpec((L, C), lambda b: (0, 0)),
                pl.BlockSpec((L, 1), lambda b: (0, 0)),
                pl.BlockSpec((L, 1), lambda b: (0, 0)),
                pl.BlockSpec((branches, C, L), lambda b: (0, 0, 0)),
                pl.BlockSpec((branches, C, 1), lambda b: (0, 0, 0)),
            ],
            out_specs=pl.BlockSpec((1, C, SP), lambda b: (b, 0, 0)),
            scratch_shapes=scratch),
        compiler_params=pltpu.CompilerParams(
            # TODO(synk): when B is 1 (or odd) on v7x, add a second "parallel"
            # grid axis of real work so both TensorCores stay busy.
            dimension_semantics=("parallel",),
            vmem_limit_bytes=vmem_limit),
    )(x_lane, w_k, bns_k, bnb_k, gap_mask, fcw_k, fcs_k, fcb_k, fcsw_k, fcsb_k)

    # Strip per-row padding / alignment tail columns (layout plumbing only).
    out = out_flat[:, :, :H * Wwide].reshape(B, C, H, Wwide)
    return out[:, :, :, pad:pad + W]


# ---------------------------------------------------------------------------
# Pure-JAX reference (same semantics) for validation
# ---------------------------------------------------------------------------
def skconv_ref(x, params):
    convw, bn_s, bn_b, fcw, fc_s, fc_b, fcsw, fcsb = params
    branches = convw.shape[0]
    feats = []
    for bi in range(branches):
        d = bi + 1
        y = jax.lax.conv_general_dilated(
            x, convw[bi], window_strides=(1, 1), padding=[(d, d), (d, d)],
            rhs_dilation=(d, d),
            dimension_numbers=('NCHW', 'OIHW', 'NCHW'))
        y = y * bn_s[bi][None, :, None, None] + bn_b[bi][None, :, None, None]
        feats.append(jnp.maximum(y, 0.0))
    feats = jnp.stack(feats, axis=1)                  # (B, br, C, H, W)
    s = jnp.sum(feats, axis=1)
    g = jnp.mean(s, axis=(2, 3))                      # (B, C)
    z = jnp.maximum((g @ fcw.T) * fc_s + fc_b, 0.0)   # (B, L)
    logits = jnp.stack([z @ fcsw[bi].T + fcsb[bi] for bi in range(branches)],
                       axis=1)
    att = jax.nn.softmax(logits, axis=1)              # (B, br, C)
    return jnp.sum(feats * att[:, :, :, None, None], axis=1)


if __name__ == "__main__":
    B, C, H, W = 2, 4, 16, 16
    branches, reduce_ratio = 2, 2
    L = max(C // reduce_ratio, 32)

    key = jax.random.PRNGKey(0)
    ks = jax.random.split(key, 17)

    def fold_bn(gamma, beta, mean, var, eps=1e-5):
        s = gamma / jnp.sqrt(var + eps)
        return s, beta - mean * s

    # Branch 3x3 convs: PyTorch weight layout (Cout, Cin, 3, 3) per branch.
    convw = 0.1 * jax.random.normal(ks[0], (branches, C, C, 3, 3), jnp.float32)

    # Branch BatchNorms (eval mode, folded into scale/bias).
    bns_l, bnb_l = [], []
    for i in range(branches):
        g = 1.0 + 0.1 * jax.random.normal(ks[1 + 4 * i], (C,), jnp.float32)
        bta = 0.1 * jax.random.normal(ks[2 + 4 * i], (C,), jnp.float32)
        mu = 0.1 * jax.random.normal(ks[3 + 4 * i], (C,), jnp.float32)
        var = 0.5 + jnp.abs(jax.random.normal(ks[4 + 4 * i], (C,), jnp.float32))
        s, b = fold_bn(g, bta, mu, var)
        bns_l.append(s)
        bnb_l.append(b)
    bn_s = jnp.stack(bns_l)
    bn_b = jnp.stack(bnb_l)

    # fc: Conv2d(C, L, 1, bias=False) weight (L, C), plus folded BN(L).
    fcw = 0.1 * jax.random.normal(ks[9], (L, C), jnp.float32)
    g = 1.0 + 0.1 * jax.random.normal(ks[10], (L,), jnp.float32)
    bta = 0.1 * jax.random.normal(ks[11], (L,), jnp.float32)
    mu = 0.1 * jax.random.normal(ks[12], (L,), jnp.float32)
    var = 0.5 + jnp.abs(jax.random.normal(ks[13], (L,), jnp.float32))
    fc_s, fc_b = fold_bn(g, bta, mu, var)

    # Per-branch attention heads: Conv2d(L, C, 1) weight (C, L) + bias (C).
    fcsw = 0.1 * jax.random.normal(ks[14], (branches, C, L), jnp.float32)
    fcsb = 0.1 * jax.random.normal(ks[16], (branches, C), jnp.float32)

    params = (convw, bn_s, bn_b, fcw, fc_s, fc_b, fcsw, fcsb)
    x = jax.random.normal(ks[15], (B, C, H, W), jnp.float32)

    out = jax.block_until_ready(skconv_forward(x, params))
    ref = skconv_ref(x, params)

    assert out.shape == (B, C, H, W)
    # Small-C path keeps everything in f32 (features never leave VMEM), so a
    # tight tolerance holds.
    np.testing.assert_allclose(np.asarray(out), np.asarray(ref),
                               atol=1e-3, rtol=1e-3)
    print("KERNEL_OK")
</pallas_src>

<mosaic_0001>
module attributes {stable_mosaic.version = 11 : i64} {
  func.func @_skconv_fused_kernel(%arg0: i32, %arg1: memref<1x4x256xf32, #tpu.memory_space<vmem>>, %arg2: memref<2x4x36xf32, #tpu.memory_space<vmem>>, %arg3: memref<2x4x1xf32, #tpu.memory_space<vmem>>, %arg4: memref<2x4x1xf32, #tpu.memory_space<vmem>>, %arg5: memref<1x384xf32, #tpu.memory_space<vmem>>, %arg6: memref<32x4xf32, #tpu.memory_space<vmem>>, %arg7: memref<32x1xf32, #tpu.memory_space<vmem>>, %arg8: memref<32x1xf32, #tpu.memory_space<vmem>>, %arg9: memref<2x4x32xf32, #tpu.memory_space<vmem>>, %arg10: memref<2x4x1xf32, #tpu.memory_space<vmem>>, %arg11: memref<1x4x384xf32, #tpu.memory_space<vmem>>, %arg12: memref<4x512xf32, #tpu.memory_space<vmem>>, %arg13: memref<2x4x384xf32, #tpu.memory_space<vmem>>) attributes {dimension_semantics = [#tpu.dimension_semantics<parallel>], iteration_bounds = array<i64: 2>, scalar_prefetch = 0 : i64, scratch_operands = 2 : i64, tpu.core_type = #tpu.core_type<tc>, window_params = [{transform_indices = @transform_0, window_bounds = array<i64: 1, 4, 256>}, {pipeline_mode = #tpu.pipeline_mode<synchronous>, transform_indices = @transform_1, window_bounds = array<i64: 2, 4, 36>}, {pipeline_mode = #tpu.pipeline_mode<synchronous>, transform_indices = @transform_2, window_bounds = array<i64: 2, 4, 1>}, {pipeline_mode = #tpu.pipeline_mode<synchronous>, transform_indices = @transform_3, window_bounds = array<i64: 2, 4, 1>}, {pipeline_mode = #tpu.pipeline_mode<synchronous>, transform_indices = @transform_4, window_bounds = array<i64: 1, 384>}, {pipeline_mode = #tpu.pipeline_mode<synchronous>, transform_indices = @transform_5, window_bounds = array<i64: 32, 4>}, {pipeline_mode = #tpu.pipeline_mode<synchronous>, transform_indices = @transform_6, window_bounds = array<i64: 32, 1>}, {pipeline_mode = #tpu.pipeline_mode<synchronous>, transform_indices = @transform_7, window_bounds = array<i64: 32, 1>}, {pipeline_mode = #tpu.pipeline_mode<synchronous>, transform_indices = @transform_8, window_bounds = array<i64: 2, 4, 32>}, {pipeline_mode = #tpu.pipeline_mode<synchronous>, transform_indices = @transform_9, window_bounds = array<i64: 2, 4, 1>}, {transform_indices = @transform_10, window_bounds = array<i64: 1, 4, 384>}]} {
    %cst = arith.constant 0.000000e+00 : f32
    %0 = vector.broadcast %cst : f32 to vector<4x44xf32>
    %c0 = arith.constant 0 : index
    %c0_0 = arith.constant 0 : index
    %1 = vector.load %arg12[%c0, %c0_0] : memref<4x512xf32, #tpu.memory_space<vmem>>, vector<4x44xf32>
    tpu.vector_store %arg12[%c0, %c0_0], %0 {strides = array<i32>} : memref<4x512xf32, #tpu.memory_space<vmem>>, vector<4x44xf32>,
    %cst_1 = arith.constant 0.000000e+00 : f32
    %2 = vector.broadcast %cst_1 : f32 to vector<4x4xf32>
    %c0_2 = arith.constant 0 : index
    %c60 = arith.constant 60 : index
    %3 = vector.load %arg12[%c0_2, %c60] : memref<4x512xf32, #tpu.memory_space<vmem>>, vector<4x4xf32>
    tpu.vector_store %arg12[%c0_2, %c60], %2 {strides = array<i32>} : memref<4x512xf32, #tpu.memory_space<vmem>>, vector<4x4xf32>,
    %cst_3 = arith.constant 0.000000e+00 : f32
    %4 = vector.broadcast %cst_3 : f32 to vector<4x4xf32>
    %c0_4 = arith.constant 0 : index
    %c80 = arith.constant 80 : index
    %5 = vector.load %arg12[%c0_4, %c80] : memref<4x512xf32, #tpu.memory_space<vmem>>, vector<4x4xf32>
    tpu.vector_store %arg12[%c0_4, %c80], %4 {strides = array<i32>} : memref<4x512xf32, #tpu.memory_space<vmem>>, vector<4x4xf32>,
    %cst_5 = arith.constant 0.000000e+00 : f32
    %6 = vector.broadcast %cst_5 : f32 to vector<4x4xf32>
    %c0_6 = arith.constant 0 : index
    %c100 = arith.constant 100 : index
    %7 = vector.load %arg12[%c0_6, %c100] : memref<4x512xf32, #tpu.memory_space<vmem>>, vector<4x4xf32>
    tpu.vector_store %arg12[%c0_6, %c100], %6 {strides = array<i32>} : memref<4x512xf32, #tpu.memory_space<vmem>>, vector<4x4xf32>,
    %cst_7 = arith.constant 0.000000e+00 : f32
    %8 = vector.broadcast %cst_7 : f32 to vector<4x4xf32>
    %c0_8 = arith.constant 0 : index
    %c120 = arith.constant 120 : index
    %9 = vector.load %arg12[%c0_8, %c120] : memref<4x512xf32, #tpu.memory_space<vmem>>, vector<4x4xf32>
    tpu.vector_store %arg12[%c0_8, %c120], %8 {strides = array<i32>} : memref<4x512xf32, #tpu.memory_space<vmem>>, vector<4x4xf32>,
    %cst_9 = arith.constant 0.000000e+00 : f32
    %10 = vector.broadcast %cst_9 : f32 to vector<4x4xf32>
    %c0_10 = arith.constant 0 : index
    %c140 = arith.constant 140 : index
    %11 = vector.load %arg12[%c0_10, %c140] : memref<4x512xf32, #tpu.memory_space<vmem>>, vector<4x4xf32>
    tpu.vector_store %arg12[%c0_10, %c140], %10 {strides = array<i32>} : memref<4x512xf32, #tpu.memory_space<vmem>>, vector<4x4xf32>,
    %cst_11 = arith.constant 0.000000e+00 : f32
    %12 = vector.broadcast %cst_11 : f32 to vector<4x4xf32>
    %c0_12 = arith.constant 0 : index
    %c160 = arith.constant 160 : index
    %13 = vector.load %arg12[%c0_12, %c160] : memref<4x512xf32, #tpu.memory_space<vmem>>, vector<4x4xf32>
    tpu.vector_store %arg12[%c0_12, %c160], %12 {strides = array<i32>} : memref<4x512xf32, #tpu.memory_space<vmem>>, vector<4x4xf32>,
    %cst_13 = arith.constant 0.000000e+00 : f32
    %14 = vector.broadcast %cst_13 : f32 to vector<4x4xf32>
    %c0_14 = arith.constant 0 : index
    %c180 = arith.constant 180 : index
    %15 = vector.load %arg12[%c0_14, %c180] : memref<4x512xf32, #tpu.memory_space<vmem>>, vector<4x4xf32>
    tpu.vector_store %arg12[%c0_14, %c180], %14 {strides = array<i32>} : memref<4x512xf32, #tpu.memory_space<vmem>>, vector<4x4xf32>,
    %cst_15 = arith.constant 0.000000e+00 : f32
    %16 = vector.broadcast %cst_15 : f32 to vector<4x4xf32>
    %c0_16 = arith.constant 0 : index
    %c200 = arith.constant 200 : index
    %17 = vector.load %arg12[%c0_16, %c200] : memref<4x512xf32, #tpu.memory_space<vmem>>, vector<4x4xf32>
    tpu.vector_store %arg12[%c0_16, %c200], %16 {strides = array<i32>} : memref<4x512xf32, #tpu.memory_space<vmem>>, vector<4x4xf32>,
    %cst_17 = arith.constant 0.000000e+00 : f32
    %18 = vector.broadcast %cst_17 : f32 to vector<4x4xf32>
    %c0_18 = arith.constant 0 : index
    %c220 = arith.constant 220 : index
    %19 = vector.load %arg12[%c0_18, %c220] : memref<4x512xf32, #tpu.memory_space<vmem>>, vector<4x4xf32>
    tpu.vector_store %arg12[%c0_18, %c220], %18 {strides = array<i32>} : memref<4x512xf32, #tpu.memory_space<vmem>>, vector<4x4xf32>,
    %cst_19 = arith.constant 0.000000e+00 : f32
    %20 = vector.broadcast %cst_19 : f32 to vector<4x4xf32>
    %c0_20 = arith.constant 0 : index
    %c240 = arith.constant 240 : index
    %21 = vector.load %arg12[%c0_20, %c240] : memref<4x512xf32, #tpu.memory_space<vmem>>, vector<4x4xf32>
    tpu.vector_store %arg12[%c0_20, %c240], %20 {strides = array<i32>} : memref<4x512xf32, #tpu.memory_space<vmem>>, vector<4x4xf32>,
    %cst_21 = arith.constant 0.000000e+00 : f32
    %22 = vector.broadcast %cst_21 : f32 to vector<4x4xf32>
    %c0_22 = arith.constant 0 : index
    %c260 = arith.constant 260 : index
    %23 = vector.load %arg12[%c0_22, %c260] : memref<4x512xf32, #tpu.memory_space<vmem>>, vector<4x4xf32>
    tpu.vector_store %arg12[%c0_22, %c260], %22 {strides = array<i32>} : memref<4x512xf32, #tpu.memory_space<vmem>>, vector<4x4xf32>,
    %cst_23 = arith.constant 0.000000e+00 : f32
    %24 = vector.broadcast %cst_23 : f32 to vector<4x4xf32>
    %c0_24 = arith.constant 0 : index
    %c280 = arith.constant 280 : index
    %25 = vector.load %arg12[%c0_24, %c280] : memref<4x512xf32, #tpu.memory_space<vmem>>, vector<4x4xf32>
    tpu.vector_store %arg12[%c0_24, %c280], %24 {strides = array<i32>} : memref<4x512xf32, #tpu.memory_space<vmem>>, vector<4x4xf32>,
    %cst_25 = arith.constant 0.000000e+00 : f32
    %26 = vector.broadcast %cst_25 : f32 to vector<4x4xf32>
    %c0_26 = arith.constant 0 : index
    %c300 = arith.constant 300 : index
    %27 = vector.load %arg12[%c0_26, %c300] : memref<4x512xf32, #tpu.memory_space<vmem>>, vector<4x4xf32>
    tpu.vector_store %arg12[%c0_26, %c300], %26 {strides = array<i32>} : memref<4x512xf32, #tpu.memory_space<vmem>>, vector<4x4xf32>,
    %cst_27 = arith.constant 0.000000e+00 : f32
    %28 = vector.broadcast %cst_27 : f32 to vector<4x4xf32>
    %c0_28 = arith.constant 0 : index
    %c320 = arith.constant 320 : index
    %29 = vector.load %arg12[%c0_28, %c320] : memref<4x512xf32, #tpu.memory_space<vmem>>, vector<4x4xf32>
    tpu.vector_store %arg12[%c0_28, %c320], %28 {strides = array<i32>} : memref<4x512xf32, #tpu.memory_space<vmem>>, vector<4x4xf32>,
    %cst_29 = arith.constant 0.000000e+00 : f32
    %30 = vector.broadcast %cst_29 : f32 to vector<4x4xf32>
    %c0_30 = arith.constant 0 : index
    %c340 = arith.constant 340 : index
    %31 = vector.load %arg12[%c0_30, %c340] : memref<4x512xf32, #tpu.memory_space<vmem>>, vector<4x4xf32>
    tpu.vector_store %arg12[%c0_30, %c340], %30 {strides = array<i32>} : memref<4x512xf32, #tpu.memory_space<vmem>>, vector<4x4xf32>,
    %cst_31 = arith.constant 0.000000e+00 : f32
    %32 = vector.broadcast %cst_31 : f32 to vector<4x152xf32>
    %c0_32 = arith.constant 0 : index
    %c360 = arith.constant 360 : index
    %33 = vector.load %arg12[%c0_32, %c360] : memref<4x512xf32, #tpu.memory_space<vmem>>, vector<4x152xf32>
    tpu.vector_store %arg12[%c0_32, %c360], %32 {strides = array<i32>} : memref<4x512xf32, #tpu.memory_space<vmem>>, vector<4x152xf32>,
    %c0_33 = arith.constant 0 : index
    %c0_34 = arith.constant 0 : index
    %c0_35 = arith.constant 0 : index
    %34 = vector.load %arg1[%c0_33, %c0_34, %c0_35] : memref<1x4x256xf32, #tpu.memory_space<vmem>>, vector<1x4x16xf32>
    %35 = vector.shape_cast %34 : vector<1x4x16xf32> to vector<4x16xf32>
    %c0_36 = arith.constant 0 : index
    %c44 = arith.constant 44 : index
    %36 = vector.load %arg12[%c0_36, %c44] : memref<4x512xf32, #tpu.memory_space<vmem>>, vector<4x16xf32>
    tpu.vector_store %arg12[%c0_36, %c44], %35 {strides = array<i32>} : memref<4x512xf32, #tpu.memory_space<vmem>>, vector<4x16xf32>,
    %c0_37 = arith.constant 0 : index
    %c0_38 = arith.constant 0 : index
    %c16 = arith.constant 16 : index
    %37 = vector.load %arg1[%c0_37, %c0_38, %c16] : memref<1x4x256xf32, #tpu.memory_space<vmem>>, vector<1x4x16xf32>
    %38 = vector.shape_cast %37 : vector<1x4x16xf32> to vector<4x16xf32>
    %c0_39 = arith.constant 0 : index
    %c64 = arith.constant 64 : index
    %39 = vector.load %arg12[%c0_39, %c64] : memref<4x512xf32, #tpu.memory_space<vmem>>, vector<4x16xf32>
    tpu.vector_store %arg12[%c0_39, %c64], %38 {strides = array<i32>} : memref<4x512xf32, #tpu.memory_space<vmem>>, vector<4x16xf32>,
    %c0_40 = arith.constant 0 : index
    %c0_41 = arith.constant 0 : index
    %c32 = arith.constant 32 : index
    %40 = vector.load %arg1[%c0_40, %c0_41, %c32] : memref<1x4x256xf32, #tpu.memory_space<vmem>>, vector<1x4x16xf32>
    %41 = vector.shape_cast %40 : vector<1x4x16xf32> to vector<4x16xf32>
    %c0_42 = arith.constant 0 : index
    %c84 = arith.constant 84 : index
    %42 = vector.load %arg12[%c0_42, %c84] : memref<4x512xf32, #tpu.memory_space<vmem>>, vector<4x16xf32>
    tpu.vector_store %arg12[%c0_42, %c84], %41 {strides = array<i32>} : memref<4x512xf32, #tpu.memory_space<vmem>>, vector<4x16xf32>,
    %c0_43 = arith.constant 0 : index
    %c0_44 = arith.constant 0 : index
    %c48 = arith.constant 48 : index
    %43 = vector.load %arg1[%c0_43, %c0_44, %c48] : memref<1x4x256xf32, #tpu.memory_space<vmem>>, vector<1x4x16xf32>
    %44 = vector.shape_cast %43 : vector<1x4x16xf32> to vector<4x16xf32>
    %c0_45 = arith.constant 0 : index
    %c104 = arith.constant 104 : index
    %45 = vector.load %arg12[%c0_45, %c104] : memref<4x512xf32, #tpu.memory_space<vmem>>, vector<4x16xf32>
    tpu.vector_store %arg12[%c0_45, %c104], %44 {strides = array<i32>} : memref<4x512xf32, #tpu.memory_space<vmem>>, vector<4x16xf32>,
    %c0_46 = arith.constant 0 : index
    %c0_47 = arith.constant 0 : index
    %c64_48 = arith.constant 64 : index
    %46 = vector.load %arg1[%c0_46, %c0_47, %c64_48] : memref<1x4x256xf32, #tpu.memory_space<vmem>>, vector<1x4x16xf32>
    %47 = vector.shape_cast %46 : vector<1x4x16xf32> to vector<4x16xf32>
    %c0_49 = arith.constant 0 : index
    %c124 = arith.constant 124 : index
    %48 = vector.load %arg12[%c0_49, %c124] : memref<4x512xf32, #tpu.memory_space<vmem>>, vector<4x16xf32>
    tpu.vector_store %arg12[%c0_49, %c124], %47 {strides = array<i32>} : memref<4x512xf32, #tpu.memory_space<vmem>>, vector<4x16xf32>,
    %c0_50 = arith.constant 0 : index
    %c0_51 = arith.constant 0 : index
    %c80_52 = arith.constant 80 : index
    %49 = vector.load %arg1[%c0_50, %c0_51, %c80_52] : memref<1x4x256xf32, #tpu.memory_space<vmem>>, vector<1x4x16xf32>
    %50 = vector.shape_cast %49 : vector<1x4x16xf32> to vector<4x16xf32>
    %c0_53 = arith.constant 0 : index
    %c144 = arith.constant 144 : index
    %51 = vector.load %arg12[%c0_53, %c144] : memref<4x512xf32, #tpu.memory_space<vmem>>, vector<4x16xf32>
    tpu.vector_store %arg12[%c0_53, %c144], %50 {strides = array<i32>} : memref<4x512xf32, #tpu.memory_space<vmem>>, vector<4x16xf32>,
    %c0_54 = arith.constant 0 : index
    %c0_55 = arith.constant 0 : index
    %c96 = arith.constant 96 : index
    %52 = vector.load %arg1[%c0_54, %c0_55, %c96] : memref<1x4x256xf32, #tpu.memory_space<vmem>>, vector<1x4x16xf32>
    %53 = vector.shape_cast %52 : vector<1x4x16xf32> to vector<4x16xf32>
    %c0_56 = arith.constant 0 : index
    %c164 = arith.constant 164 : index
    %54 = vector.load %arg12[%c0_56, %c164] : memref<4x512xf32, #tpu.memory_space<vmem>>, vector<4x16xf32>
    tpu.vector_store %arg12[%c0_56, %c164], %53 {strides = array<i32>} : memref<4x512xf32, #tpu.memory_space<vmem>>, vector<4x16xf32>,
    %c0_57 = arith.constant 0 : index
    %c0_58 = arith.constant 0 : index
    %c112 = arith.constant 112 : index
    %55 = vector.load %arg1[%c0_57, %c0_58, %c112] : memref<1x4x256xf32, #tpu.memory_space<vmem>>, vector<1x4x16xf32>
    %56 = vector.shape_cast %55 : vector<1x4x16xf32> to vector<4x16xf32>
    %c0_59 = arith.constant 0 : index
    %c184 = arith.constant 184 : index
    %57 = vector.load %arg12[%c0_59, %c184] : memref<4x512xf32, #tpu.memory_space<vmem>>, vector<4x16xf32>
    tpu.vector_store %arg12[%c0_59, %c184], %56 {strides = array<i32>} : memref<4x512xf32, #tpu.memory_space<vmem>>, vector<4x16xf32>,
    %c0_60 = arith.constant 0 : index
    %c0_61 = arith.constant 0 : index
    %c128 = arith.constant 128 : index
    %58 = vector.load %arg1[%c0_60, %c0_61, %c128] : memref<1x4x256xf32, #tpu.memory_space<vmem>>, vector<1x4x16xf32>
    %59 = vector.shape_cast %58 : vector<1x4x16xf32> to vector<4x16xf32>
    %c0_62 = arith.constant 0 : index
    %c204 = arith.constant 204 : index
    %60 = vector.load %arg12[%c0_62, %c204] : memref<4x512xf32, #tpu.memory_space<vmem>>, vector<4x16xf32>
    tpu.vector_store %arg12[%c0_62, %c204], %59 {strides = array<i32>} : memref<4x512xf32, #tpu.memory_space<vmem>>, vector<4x16xf32>,
    %c0_63 = arith.constant 0 : index
    %c0_64 = arith.constant 0 : index
    %c144_65 = arith.constant 144 : index
    %61 = vector.load %arg1[%c0_63, %c0_64, %c144_65] : memref<1x4x256xf32, #tpu.memory_space<vmem>>, vector<1x4x16xf32>
    %62 = vector.shape_cast %61 : vector<1x4x16xf32> to vector<4x16xf32>
    %c0_66 = arith.constant 0 : index
    %c224 = arith.constant 224 : index
    %63 = vector.load %arg12[%c0_66, %c224] : memref<4x512xf32, #tpu.memory_space<vmem>>, vector<4x16xf32>
    tpu.vector_store %arg12[%c0_66, %c224], %62 {strides = array<i32>} : memref<4x512xf32, #tpu.memory_space<vmem>>, vector<4x16xf32>,
    %c0_67 = arith.constant 0 : index
    %c0_68 = arith.constant 0 : index
    %c160_69 = arith.constant 160 : index
    %64 = vector.load %arg1[%c0_67, %c0_68, %c160_69] : memref<1x4x256xf32, #tpu.memory_space<vmem>>, vector<1x4x16xf32>
    %65 = vector.shape_cast %64 : vector<1x4x16xf32> to vector<4x16xf32>
    %c0_70 = arith.constant 0 : index
    %c244 = arith.constant 244 : index
    %66 = vector.load %arg12[%c0_70, %c244] : memref<4x512xf32, #tpu.memory_space<vmem>>, vector<4x16xf32>
    tpu.vector_store %arg12[%c0_70, %c244], %65 {strides = array<i32>} : memref<4x512xf32, #tpu.memory_space<vmem>>, vector<4x16xf32>,
    %c0_71 = arith.constant 0 : index
    %c0_72 = arith.constant 0 : index
    %c176 = arith.constant 176 : index
    %67 = vector.load %arg1[%c0_71, %c0_72, %c176] : memref<1x4x256xf32, #tpu.memory_space<vmem>>, vector<1x4x16xf32>
    %68 = vector.shape_cast %67 : vector<1x4x16xf32> to vector<4x16xf32>
    %c0_73 = arith.constant 0 : index
    %c264 = arith.constant 264 : index
    %69 = vector.load %arg12[%c0_73, %c264] : memref<4x512xf32, #tpu.memory_space<vmem>>, vector<4x16xf32>
    tpu.vector_store %arg12[%c0_73, %c264], %68 {strides = array<i32>} : memref<4x512xf32, #tpu.memory_space<vmem>>, vector<4x16xf32>,
    %c0_74 = arith.constant 0 : index
    %c0_75 = arith.constant 0 : index
    %c192 = arith.constant 192 : index
    %70 = vector.load %arg1[%c0_74, %c0_75, %c192] : memref<1x4x256xf32, #tpu.memory_space<vmem>>, vector<1x4x16xf32>
    %71 = vector.shape_cast %70 : vector<1x4x16xf32> to vector<4x16xf32>
    %c0_76 = arith.constant 0 : index
    %c284 = arith.constant 284 : index
    %72 = vector.load %arg12[%c0_76, %c284] : memref<4x512xf32, #tpu.memory_space<vmem>>, vector<4x16xf32>
    tpu.vector_store %arg12[%c0_76, %c284], %71 {strides = array<i32>} : memref<4x512xf32, #tpu.memory_space<vmem>>, vector<4x16xf32>,
    %c0_77 = arith.constant 0 : index
    %c0_78 = arith.constant 0 : index
    %c208 = arith.constant 208 : index
    %73 = vector.load %arg1[%c0_77, %c0_78, %c208] : memref<1x4x256xf32, #tpu.memory_space<vmem>>, vector<1x4x16xf32>
    %74 = vector.shape_cast %73 : vector<1x4x16xf32> to vector<4x16xf32>
    %c0_79 = arith.constant 0 : index
    %c304 = arith.constant 304 : index
    %75 = vector.load %arg12[%c0_79, %c304] : memref<4x512xf32, #tpu.memory_space<vmem>>, vector<4x16xf32>
    tpu.vector_store %arg12[%c0_79, %c304], %74 {strides = array<i32>} : memref<4x512xf32, #tpu.memory_space<vmem>>, vector<4x16xf32>,
    %c0_80 = arith.constant 0 : index
    %c0_81 = arith.constant 0 : index
    %c224_82 = arith.constant 224 : index
    %76 = vector.load %arg1[%c0_80, %c0_81, %c224_82] : memref<1x4x256xf32, #tpu.memory_space<vmem>>, vector<1x4x16xf32>
    %77 = vector.shape_cast %76 : vector<1x4x16xf32> to vector<4x16xf32>
    %c0_83 = arith.constant 0 : index
    %c324 = arith.constant 324 : index
    %78 = vector.load %arg12[%c0_83, %c324] : memref<4x512xf32, #tpu.memory_space<vmem>>, vector<4x16xf32>
    tpu.vector_store %arg12[%c0_83, %c324], %77 {strides = array<i32>} : memref<4x512xf32, #tpu.memory_space<vmem>>, vector<4x16xf32>,
    %c0_84 = arith.constant 0 : index
    %c0_85 = arith.constant 0 : index
    %c240_86 = arith.constant 240 : index
    %79 = vector.load %arg1[%c0_84, %c0_85, %c240_86] : memref<1x4x256xf32, #tpu.memory_space<vmem>>, vector<1x4x16xf32>
    %80 = vector.shape_cast %79 : vector<1x4x16xf32> to vector<4x16xf32>
    %c0_87 = arith.constant 0 : index
    %c344 = arith.constant 344 : index
    %81 = vector.load %arg12[%c0_87, %c344] : memref<4x512xf32, #tpu.memory_space<vmem>>, vector<4x16xf32>
    tpu.vector_store %arg12[%c0_87, %c344], %80 {strides = array<i32>} : memref<4x512xf32, #tpu.memory_space<vmem>>, vector<4x16xf32>,
    %cst_88 = arith.constant 0.000000e+00 : f32
    %82 = vector.broadcast %cst_88 : f32 to vector<4x1xf32>
    %c0_89 = arith.constant 0 : index
    %c0_90 = arith.constant 0 : index
    %c0_91 = arith.constant 0 : index
    %83 = vector.load %arg2[%c0_89, %c0_90, %c0_91] : memref<2x4x36xf32, #tpu.memory_space<vmem>>, vector<1x4x36xf32>
    %84 = vector.shape_cast %83 : vector<1x4x36xf32> to vector<4x36xf32>
    %cst_92 = arith.constant 0.000000e+00 : f32
    %85 = vector.broadcast %cst_92 : f32 to vector<4x384xf32>
    %c0_93 = arith.constant 0 : index
    %c21 = arith.constant 21 : index
    %86 = vector.load %arg12[%c0_93, %c21] : memref<4x512xf32, #tpu.memory_space<vmem>>, vector<4x384xf32>
    %87 = vector.extract_strided_slice %84 {offsets = [0, 0], sizes = [4, 1], strides = [1, 1]} : vector<4x36xf32> to vector<4x1xf32>
    %88 = vector.extract_strided_slice %86 {offsets = [0, 0], sizes = [1, 384], strides = [1, 1]} : vector<4x384xf32> to vector<1x384xf32>
    %89 = vector.broadcast %87 : vector<4x1xf32> to vector<4x384xf32>
    %90 = vector.broadcast %88 : vector<1x384xf32> to vector<4x384xf32>
    %91 = arith.mulf %89, %90 : vector<4x384xf32>
    %92 = arith.addf %85, %91 : vector<4x384xf32>
    %93 = vector.extract_strided_slice %84 {offsets = [0, 1], sizes = [4, 1], strides = [1, 1]} : vector<4x36xf32> to vector<4x1xf32>
    %94 = vector.extract_strided_slice %86 {offsets = [1, 0], sizes = [1, 384], strides = [1, 1]} : vector<4x384xf32> to vector<1x384xf32>
    %95 = vector.broadcast %93 : vector<4x1xf32> to vector<4x384xf32>
    %96 = vector.broadcast %94 : vector<1x384xf32> to vector<4x384xf32>
    %97 = arith.mulf %95, %96 : vector<4x384xf32>
    %98 = arith.addf %92, %97 : vector<4x384xf32>
    %99 = vector.extract_strided_slice %84 {offsets = [0, 2], sizes = [4, 1], strides = [1, 1]} : vector<4x36xf32> to vector<4x1xf32>
    %100 = vector.extract_strided_slice %86 {offsets = [2, 0], sizes = [1, 384], strides = [1, 1]} : vector<4x384xf32> to vector<1x384xf32>
    %101 = vector.broadcast %99 : vector<4x1xf32> to vector<4x384xf32>
    %102 = vector.broadcast %100 : vector<1x384xf32> to vector<4x384xf32>
    %103 = arith.mulf %101, %102 : vector<4x384xf32>
    %104 = arith.addf %98, %103 : vector<4x384xf32>
    %105 = vector.extract_strided_slice %84 {offsets = [0, 3], sizes = [4, 1], strides = [1, 1]} : vector<4x36xf32> to vector<4x1xf32>
    %106 = vector.extract_strided_slice %86 {offsets = [3, 0], sizes = [1, 384], strides = [1, 1]} : vector<4x384xf32> to vector<1x384xf32>
    %107 = vector.broadcast %105 : vector<4x1xf32> to vector<4x384xf32>
    %108 = vector.broadcast %106 : vector<1x384xf32> to vector<4x384xf32>
    %109 = arith.mulf %107, %108 : vector<4x384xf32>
    %110 = arith.addf %104, %109 : vector<4x384xf32>
    %c0_94 = arith.constant 0 : index
    %c22 = arith.constant 22 : index
    %111 = vector.load %arg12[%c0_94, %c22] : memref<4x512xf32, #tpu.memory_space<vmem>>, vector<4x384xf32>
    %112 = vector.extract_strided_slice %84 {offsets = [0, 4], sizes = [4, 1], strides = [1, 1]} : vector<4x36xf32> to vector<4x1xf32>
    %113 = vector.extract_strided_slice %111 {offsets = [0, 0], sizes = [1, 384], strides = [1, 1]} : vector<4x384xf32> to vector<1x384xf32>
    %114 = vector.broadcast %112 : vector<4x1xf32> to vector<4x384xf32>
    %115 = vector.broadcast %113 : vector<1x384xf32> to vector<4x384xf32>
    %116 = arith.mulf %114, %115 : vector<4x384xf32>
    %117 = arith.addf %110, %116 : vector<4x384xf32>
    %118 = vector.extract_strided_slice %84 {offsets = [0, 5], sizes = [4, 1], strides = [1, 1]} : vector<4x36xf32> to vector<4x1xf32>
    %119 = vector.extract_strided_slice %111 {offsets = [1, 0], sizes = [1, 384], strides = [1, 1]} : vector<4x384xf32> to vector<1x384xf32>
    %120 = vector.broadcast %118 : vector<4x1xf32> to vector<4x384xf32>
    %121 = vector.broadcast %119 : vector<1x384xf32> to vector<4x384xf32>
    %122 = arith.mulf %120, %121 : vector<4x384xf32>
    %123 = arith.addf %117, %122 : vector<4x384xf32>
    %124 = vector.extract_strided_slice %84 {offsets = [0, 6], sizes = [4, 1], strides = [1, 1]} : vector<4x36xf32> to vector<4x1xf32>
    %125 = vector.extract_strided_slice %111 {offsets = [2, 0], sizes = [1, 384], strides = [1, 1]} : vector<4x384xf32> to vector<1x384xf32>
    %126 = vector.broadcast %124 : vector<4x1xf32> to vector<4x384xf32>
    %127 = vector.broadcast %125 : vector<1x384xf32> to vector<4x384xf32>
    %128 = arith.mulf %126, %127 : vector<4x384xf32>
    %129 = arith.addf %123, %128 : vector<4x384xf32>
    %130 = vector.extract_strided_slice %84 {offsets = [0, 7], sizes = [4, 1], strides = [1, 1]} : vector<4x36xf32> to vector<4x1xf32>
    %131 = vector.extract_strided_slice %111 {offsets = [3, 0], sizes = [1, 384], strides = [1, 1]} : vector<4x384xf32> to vector<1x384xf32>
    %132 = vector.broadcast %130 : vector<4x1xf32> to vector<4x384xf32>
    %133 = vector.broadcast %131 : vector<1x384xf32> to vector<4x384xf32>
    %134 = arith.mulf %132, %133 : vector<4x384xf32>
    %135 = arith.addf %129, %134 : vector<4x384xf32>
    %c0_95 = arith.constant 0 : index
    %c23 = arith.constant 23 : index
    %136 = vector.load %arg12[%c0_95, %c23] : memref<4x512xf32, #tpu.memory_space<vmem>>, vector<4x384xf32>
    %137 = vector.extract_strided_slice %84 {offsets = [0, 8], sizes = [4, 1], strides = [1, 1]} : vector<4x36xf32> to vector<4x1xf32>
    %138 = vector.extract_strided_slice %136 {offsets = [0, 0], sizes = [1, 384], strides = [1, 1]} : vector<4x384xf32> to vector<1x384xf32>
    %139 = vector.broadcast %137 : vector<4x1xf32> to vector<4x384xf32>
    %140 = vector.broadcast %138 : vector<1x384xf32> to vector<4x384xf32>
    %141 = arith.mulf %139, %140 : vector<4x384xf32>
    %142 = arith.addf %135, %141 : vector<4x384xf32>
    %143 = vector.extract_strided_slice %84 {offsets = [0, 9], sizes = [4, 1], strides = [1, 1]} : vector<4x36xf32> to vector<4x1xf32>
    %144 = vector.extract_strided_slice %136 {offsets = [1, 0], sizes = [1, 384], strides = [1, 1]} : vector<4x384xf32> to vector<1x384xf32>
    %145 = vector.broadcast %143 : vector<4x1xf32> to vector<4x384xf32>
    %146 = vector.broadcast %144 : vector<1x384xf32> to vector<4x384xf32>
    %147 = arith.mulf %145, %146 : vector<4x384xf32>
    %148 = arith.addf %142, %147 : vector<4x384xf32>
    %149 = vector.extract_strided_slice %84 {offsets = [0, 10], sizes = [4, 1], strides = [1, 1]} : vector<4x36xf32> to vector<4x1xf32>
    %150 = vector.extract_strided_slice %136 {offsets = [2, 0], sizes = [1, 384], strides = [1, 1]} : vector<4x384xf32> to vector<1x384xf32>
    %151 = vector.broadcast %149 : vector<4x1xf32> to vector<4x384xf32>
    %152 = vector.broadcast %150 : vector<1x384xf32> to vector<4x384xf32>
    %153 = arith.mulf %151, %152 : vector<4x384xf32>
    %154 = arith.addf %148, %153 : vector<4x384xf32>
    %155 = vector.extract_strided_slice %84 {offsets = [0, 11], sizes = [4, 1], strides = [1, 1]} : vector<4x36xf32> to vector<4x1xf32>
    %156 = vector.extract_strided_slice %136 {offsets = [3, 0], sizes = [1, 384], strides = [1, 1]} : vector<4x384xf32> to vector<1x384xf32>
    %157 = vector.broadcast %155 : vector<4x1xf32> to vector<4x384xf32>
    %158 = vector.broadcast %156 : vector<1x384xf32> to vector<4x384xf32>
    %159 = arith.mulf %157, %158 : vector<4x384xf32>
    %160 = arith.addf %154, %159 : vector<4x384xf32>
    %c0_96 = arith.constant 0 : index
    %c41 = arith.constant 41 : index
    %161 = vector.load %arg12[%c0_96, %c41] : memref<4x512xf32, #tpu.memory_space<vmem>>, vector<4x384xf32>
    %162 = vector.extract_strided_slice %84 {offsets = [0, 12], sizes = [4, 1], strides = [1, 1]} : vector<4x36xf32> to vector<4x1xf32>
    %163 = vector.extract_strided_slice %161 {offsets = [0, 0], sizes = [1, 384], strides = [1, 1]} : vector<4x384xf32> to vector<1x384xf32>
    %164 = vector.broadcast %162 : vector<4x1xf32> to vector<4x384xf32>
    %165 = vector.broadcast %163 : vector<1x384xf32> to vector<4x384xf32>
    %166 = arith.mulf %164, %165 : vector<4x384xf32>
    %167 = arith.addf %160, %166 : vector<4x384xf32>
    %168 = vector.extract_strided_slice %84 {offsets = [0, 13], sizes = [4, 1], strides = [1, 1]} : vector<4x36xf32> to vector<4x1xf32>
    %169 = vector.extract_strided_slice %161 {offsets = [1, 0], sizes = [1, 384], strides = [1, 1]} : vector<4x384xf32> to vector<1x384xf32>
    %170 = vector.broadcast %168 : vector<4x1xf32> to vector<4x384xf32>
    %171 = vector.broadcast %169 : vector<1x384xf32> to vector<4x384xf32>
    %172 = arith.mulf %170, %171 : vector<4x384xf32>
    %173 = arith.addf %167, %172 : vector<4x384xf32>
    %174 = vector.extract_strided_slice %84 {offsets = [0, 14], sizes = [4, 1], strides = [1, 1]} : vector<4x36xf32> to vector<4x1xf32>
    %175 = vector.extract_strided_slice %161 {offsets = [2, 0], sizes = [1, 384], strides = [1, 1]} : vector<4x384xf32> to vector<1x384xf32>
    %176 = vector.broadcast %174 : vector<4x1xf32> to vector<4x384xf32>
    %177 = vector.broadcast %175 : vector<1x384xf32> to vector<4x384xf32>
    %178 = arith.mulf %176, %177 : vector<4x384xf32>
    %179 = arith.addf %173, %178 : vector<4x384xf32>
    %180 = vector.extract_strided_slice %84 {offsets = [0, 15], sizes = [4, 1], strides = [1, 1]} : vector<4x36xf32> to vector<4x1xf32>
    %181 = vector.extract_strided_slice %161 {offsets = [3, 0], sizes = [1, 384], strides = [1, 1]} : vector<4x384xf32> to vector<1x384xf32>
    %182 = vector.broadcast %180 : vector<4x1xf32> to vector<4x384xf32>
    %183 = vector.broadcast %181 : vector<1x384xf32> to vector<4x384xf32>
    %184 = arith.mulf %182, %183 : vector<4x384xf32>
    %185 = arith.addf %179, %184 : vector<4x384xf32>
    %c0_97 = arith.constant 0 : index
    %c42 = arith.constant 42 : index
    %186 = vector.load %arg12[%c0_97, %c42] : memref<4x512xf32, #tpu.memory_space<vmem>>, vector<4x384xf32>
    %187 = vector.extract_strided_slice %84 {offsets = [0, 16], sizes = [4, 1], strides = [1, 1]} : vector<4x36xf32> to vector<4x1xf32>
    %188 = vector.extract_strided_slice %186 {offsets = [0, 0], sizes = [1, 384], strides = [1, 1]} : vector<4x384xf32> to vector<1x384xf32>
    %189 = vector.broadcast %187 : vector<4x1xf32> to vector<4x384xf32>
    %190 = vector.broadcast %188 : vector<1x384xf32> to vector<4x384xf32>
    %191 = arith.mulf %189, %190 : vector<4x384xf32>
    %192 = arith.addf %185, %191 : vector<4x384xf32>
    %193 = vector.extract_strided_slice %84 {offsets = [0, 17], sizes = [4, 1], strides = [1, 1]} : vector<4x36xf32> to vector<4x1xf32>
    %194 = vector.extract_strided_slice %186 {offsets = [1, 0], sizes = [1, 384], strides = [1, 1]} : vector<4x384xf32> to vector<1x384xf32>
    %195 = vector.broadcast %193 : vector<4x1xf32> to vector<4x384xf32>
    %196 = vector.broadcast %194 : vector<1x384xf32> to vector<4x384xf32>
    %197 = arith.mulf %195, %196 : vector<4x384xf32>
    %198 = arith.addf %192, %197 : vector<4x384xf32>
    %199 = vector.extract_strided_slice %84 {offsets = [0, 18], sizes = [4, 1], strides = [1, 1]} : vector<4x36xf32> to vector<4x1xf32>
    %200 = vector.extract_strided_slice %186 {offsets = [2, 0], sizes = [1, 384], strides = [1, 1]} : vector<4x384xf32> to vector<1x384xf32>
    %201 = vector.broadcast %199 : vector<4x1xf32> to vector<4x384xf32>
    %202 = vector.broadcast %200 : vector<1x384xf32> to vector<4x384xf32>
    %203 = arith.mulf %201, %202 : vector<4x384xf32>
    %204 = arith.addf %198, %203 : vector<4x384xf32>
    %205 = vector.extract_strided_slice %84 {offsets = [0, 19], sizes = [4, 1], strides = [1, 1]} : vector<4x36xf32> to vector<4x1xf32>
    %206 = vector.extract_strided_slice %186 {offsets = [3, 0], sizes = [1, 384], strides = [1, 1]} : vector<4x384xf32> to vector<1x384xf32>
    %207 = vector.broadcast %205 : vector<4x1xf32> to vector<4x384xf32>
    %208 = vector.broadcast %206 : vector<1x384xf32> to vector<4x384xf32>
    %209 = arith.mulf %207, %208 : vector<4x384xf32>
    %210 = arith.addf %204, %209 : vector<4x384xf32>
    %c0_98 = arith.constant 0 : index
    %c43 = arith.constant 43 : index
    %211 = vector.load %arg12[%c0_98, %c43] : memref<4x512xf32, #tpu.memory_space<vmem>>, vector<4x384xf32>
    %212 = vector.extract_strided_slice %84 {offsets = [0, 20], sizes = [4, 1], strides = [1, 1]} : vector<4x36xf32> to vector<4x1xf32>
    %213 = vector.extract_strided_slice %211 {offsets = [0, 0], sizes = [1, 384], strides = [1, 1]} : vector<4x384xf32> to vector<1x384xf32>
    %214 = vector.broadcast %212 : vector<4x1xf32> to vector<4x384xf32>
    %215 = vector.broadcast %213 : vector<1x384xf32> to vector<4x384xf32>
    %216 = arith.mulf %214, %215 : vector<4x384xf32>
    %217 = arith.addf %210, %216 : vector<4x384xf32>
    %218 = vector.extract_strided_slice %84 {offsets = [0, 21], sizes = [4, 1], strides = [1, 1]} : vector<4x36xf32> to vector<4x1xf32>
    %219 = vector.extract_strided_slice %211 {offsets = [1, 0], sizes = [1, 384], strides = [1, 1]} : vector<4x384xf32> to vector<1x384xf32>
    %220 = vector.broadcast %218 : vector<4x1xf32> to vector<4x384xf32>
    %221 = vector.broadcast %219 : vector<1x384xf32> to vector<4x384xf32>
    %222 = arith.mulf %220, %221 : vector<4x384xf32>
    %223 = arith.addf %217, %222 : vector<4x384xf32>
    %224 = vector.extract_strided_slice %84 {offsets = [0, 22], sizes = [4, 1], strides = [1, 1]} : vector<4x36xf32> to vector<4x1xf32>
    %225 = vector.extract_strided_slice %211 {offsets = [2, 0], sizes = [1, 384], strides = [1, 1]} : vector<4x384xf32> to vector<1x384xf32>
    %226 = vector.broadcast %224 : vector<4x1xf32> to vector<4x384xf32>
    %227 = vector.broadcast %225 : vector<1x384xf32> to vector<4x384xf32>
    %228 = arith.mulf %226, %227 : vector<4x384xf32>
    %229 = arith.addf %223, %228 : vector<4x384xf32>
    %230 = vector.extract_strided_slice %84 {offsets = [0, 23], sizes = [4, 1], strides = [1, 1]} : vector<4x36xf32> to vector<4x1xf32>
    %231 = vector.extract_strided_slice %211 {offsets = [3, 0], sizes = [1, 384], strides = [1, 1]} : vector<4x384xf32> to vector<1x384xf32>
    %232 = vector.broadcast %230 : vector<4x1xf32> to vector<4x384xf32>
    %233 = vector.broadcast %231 : vector<1x384xf32> to vector<4x384xf32>
    %234 = arith.mulf %232, %233 : vector<4x384xf32>
    %235 = arith.addf %229, %234 : vector<4x384xf32>
    %c0_99 = arith.constant 0 : index
    %c61 = arith.constant 61 : index
    %236 = vector.load %arg12[%c0_99, %c61] : memref<4x512xf32, #tpu.memory_space<vmem>>, vector<4x384xf32>
    %237 = vector.extract_strided_slice %84 {offsets = [0, 24], sizes = [4, 1], strides = [1, 1]} : vector<4x36xf32> to vector<4x1xf32>
    %238 = vector.extract_strided_slice %236 {offsets = [0, 0], sizes = [1, 384], strides = [1, 1]} : vector<4x384xf32> to vector<1x384xf32>
    %239 = vector.broadcast %237 : vector<4x1xf32> to vector<4x384xf32>
    %240 = vector.broadcast %238 : vector<1x384xf32> to vector<4x384xf32>
    %241 = arith.mulf %239, %240 : vector<4x384xf32>
    %242 = arith.addf %235, %241 : vector<4x384xf32>
    %243 = vector.extract_strided_slice %84 {offsets = [0, 25], sizes = [4, 1], strides = [1, 1]} : vector<4x36xf32> to vector<4x1xf32>
    %244 = vector.extract_strided_slice %236 {offsets = [1, 0], sizes = [1, 384], strides = [1, 1]} : vector<4x384xf32> to vector<1x384xf32>
    %245 = vector.broadcast %243 : vector<4x1xf32> to vector<4x384xf32>
    %246 = vector.broadcast %244 : vector<1x384xf32> to vector<4x384xf32>
    %247 = arith.mulf %245, %246 : vector<4x384xf32>
    %248 = arith.addf %242, %247 : vector<4x384xf32>
    %249 = vector.extract_strided_slice %84 {offsets = [0, 26], sizes = [4, 1], strides = [1, 1]} : vector<4x36xf32> to vector<4x1xf32>
    %250 = vector.extract_strided_slice %236 {offsets = [2, 0], sizes = [1, 384], strides = [1, 1]} : vector<4x384xf32> to vector<1x384xf32>
    %251 = vector.broadcast %249 : vector<4x1xf32> to vector<4x384xf32>
    %252 = vector.broadcast %250 : vector<1x384xf32> to vector<4x384xf32>
    %253 = arith.mulf %251, %252 : vector<4x384xf32>
    %254 = arith.addf %248, %253 : vector<4x384xf32>
    %255 = vector.extract_strided_slice %84 {offsets = [0, 27], sizes = [4, 1], strides = [1, 1]} : vector<4x36xf32> to vector<4x1xf32>
    %256 = vector.extract_strided_slice %236 {offsets = [3, 0], sizes = [1, 384], strides = [1, 1]} : vector<4x384xf32> to vector<1x384xf32>
    %257 = vector.broadcast %255 : vector<4x1xf32> to vector<4x384xf32>
    %258 = vector.broadcast %256 : vector<1x384xf32> to vector<4x384xf32>
    %259 = arith.mulf %257, %258 : vector<4x384xf32>
    %260 = arith.addf %254, %259 : vector<4x384xf32>
    %c0_100 = arith.constant 0 : index
    %c62 = arith.constant 62 : index
    %261 = vector.load %arg12[%c0_100, %c62] : memref<4x512xf32, #tpu.memory_space<vmem>>, vector<4x384xf32>
    %262 = vector.extract_strided_slice %84 {offsets = [0, 28], sizes = [4, 1], strides = [1, 1]} : vector<4x36xf32> to vector<4x1xf32>
    %263 = vector.extract_strided_slice %261 {offsets = [0, 0], sizes = [1, 384], strides = [1, 1]} : vector<4x384xf32> to vector<1x384xf32>
    %264 = vector.broadcast %262 : vector<4x1xf32> to vector<4x384xf32>
    %265 = vector.broadcast %263 : vector<1x384xf32> to vector<4x384xf32>
    %266 = arith.mulf %264, %265 : vector<4x384xf32>
    %267 = arith.addf %260, %266 : vector<4x384xf32>
    %268 = vector.extract_strided_slice %84 {offsets = [0, 29], sizes = [4, 1], strides = [1, 1]} : vector<4x36xf32> to vector<4x1xf32>
    %269 = vector.extract_strided_slice %261 {offsets = [1, 0], sizes = [1, 384], strides = [1, 1]} : vector<4x384xf32> to vector<1x384xf32>
    %270 = vector.broadcast %268 : vector<4x1xf32> to vector<4x384xf32>
    %271 = vector.broadcast %269 : vector<1x384xf32> to vector<4x384xf32>
    %272 = arith.mulf %270, %271 : vector<4x384xf32>
    %273 = arith.addf %267, %272 : vector<4x384xf32>
    %274 = vector.extract_strided_slice %84 {offsets = [0, 30], sizes = [4, 1], strides = [1, 1]} : vector<4x36xf32> to vector<4x1xf32>
    %275 = vector.extract_strided_slice %261 {offsets = [2, 0], sizes = [1, 384], strides = [1, 1]} : vector<4x384xf32> to vector<1x384xf32>
    %276 = vector.broadcast %274 : vector<4x1xf32> to vector<4x384xf32>
    %277 = vector.broadcast %275 : vector<1x384xf32> to vector<4x384xf32>
    %278 = arith.mulf %276, %277 : vector<4x384xf32>
    %279 = arith.addf %273, %278 : vector<4x384xf32>
    %280 = vector.extract_strided_slice %84 {offsets = [0, 31], sizes = [4, 1], strides = [1, 1]} : vector<4x36xf32> to vector<4x1xf32>
    %281 = vector.extract_strided_slice %261 {offsets = [3, 0], sizes = [1, 384], strides = [1, 1]} : vector<4x384xf32> to vector<1x384xf32>
    %282 = vector.broadcast %280 : vector<4x1xf32> to vector<4x384xf32>
    %283 = vector.broadcast %281 : vector<1x384xf32> to vector<4x384xf32>
    %284 = arith.mulf %282, %283 : vector<4x384xf32>
    %285 = arith.addf %279, %284 : vector<4x384xf32>
    %c0_101 = arith.constant 0 : index
    %c63 = arith.constant 63 : index
    %286 = vector.load %arg12[%c0_101, %c63] : memref<4x512xf32, #tpu.memory_space<vmem>>, vector<4x384xf32>
    %287 = vector.extract_strided_slice %84 {offsets = [0, 32], sizes = [4, 1], strides = [1, 1]} : vector<4x36xf32> to vector<4x1xf32>
    %288 = vector.extract_strided_slice %286 {offsets = [0, 0], sizes = [1, 384], strides = [1, 1]} : vector<4x384xf32> to vector<1x384xf32>
    %289 = vector.broadcast %287 : vector<4x1xf32> to vector<4x384xf32>
    %290 = vector.broadcast %288 : vector<1x384xf32> to vector<4x384xf32>
    %291 = arith.mulf %289, %290 : vector<4x384xf32>
    %292 = arith.addf %285, %291 : vector<4x384xf32>
    %293 = vector.extract_strided_slice %84 {offsets = [0, 33], sizes = [4, 1], strides = [1, 1]} : vector<4x36xf32> to vector<4x1xf32>
    %294 = vector.extract_strided_slice %286 {offsets = [1, 0], sizes = [1, 384], strides = [1, 1]} : vector<4x384xf32> to vector<1x384xf32>
    %295 = vector.broadcast %293 : vector<4x1xf32> to vector<4x384xf32>
    %296 = vector.broadcast %294 : vector<1x384xf32> to vector<4x384xf32>
    %297 = arith.mulf %295, %296 : vector<4x384xf32>
    %298 = arith.addf %292, %297 : vector<4x384xf32>
    %299 = vector.extract_strided_slice %84 {offsets = [0, 34], sizes = [4, 1], strides = [1, 1]} : vector<4x36xf32> to vector<4x1xf32>
    %300 = vector.extract_strided_slice %286 {offsets = [2, 0], sizes = [1, 384], strides = [1, 1]} : vector<4x384xf32> to vector<1x384xf32>
    %301 = vector.broadcast %299 : vector<4x1xf32> to vector<4x384xf32>
    %302 = vector.broadcast %300 : vector<1x384xf32> to vector<4x384xf32>
    %303 = arith.mulf %301, %302 : vector<4x384xf32>
    %304 = arith.addf %298, %303 : vector<4x384xf32>
    %305 = vector.extract_strided_slice %84 {offsets = [0, 35], sizes = [4, 1], strides = [1, 1]} : vector<4x36xf32> to vector<4x1xf32>
    %306 = vector.extract_strided_slice %286 {offsets = [3, 0], sizes = [1, 384], strides = [1, 1]} : vector<4x384xf32> to vector<1x384xf32>
    %307 = vector.broadcast %305 : vector<4x1xf32> to vector<4x384xf32>
    %308 = vector.broadcast %306 : vector<1x384xf32> to vector<4x384xf32>
    %309 = arith.mulf %307, %308 : vector<4x384xf32>
    %310 = arith.addf %304, %309 : vector<4x384xf32>
    %c0_102 = arith.constant 0 : index
    %c0_103 = arith.constant 0 : index
    %c0_104 = arith.constant 0 : index
    %311 = vector.load %arg3[%c0_102, %c0_103, %c0_104] : memref<2x4x1xf32, #tpu.memory_space<vmem>>, vector<1x4x1xf32>
    %312 = vector.shape_cast %311 : vector<1x4x1xf32> to vector<4x1xf32>
    %313 = vector.broadcast %312 : vector<4x1xf32> to vector<4x384xf32>
    %314 = arith.mulf %310, %313 : vector<4x384xf32>
    %c0_105 = arith.constant 0 : index
    %c0_106 = arith.constant 0 : index
    %c0_107 = arith.constant 0 : index
    %315 = vector.load %arg4[%c0_105, %c0_106, %c0_107] : memref<2x4x1xf32, #tpu.memory_space<vmem>>, vector<1x4x1xf32>
    %316 = vector.shape_cast %315 : vector<1x4x1xf32> to vector<4x1xf32>
    %317 = vector.broadcast %316 : vector<4x1xf32> to vector<4x384xf32>
    %318 = arith.addf %314, %317 : vector<4x384xf32>
    %cst_108 = arith.constant 0.000000e+00 : f32
    %319 = vector.broadcast %cst_108 : f32 to vector<4x384xf32>
    %320 = arith.maximumf %318, %319 : vector<4x384xf32>
    %c0_109 = arith.constant 0 : index
    %c0_110 = arith.constant 0 : index
    %c0_111 = arith.constant 0 : index
    %321 = vector.load %arg13[%c0_109, %c0_110, %c0_111] : memref<2x4x384xf32, #tpu.memory_space<vmem>>, vector<1x4x384xf32>
    %322 = vector.shape_cast %321 : vector<1x4x384xf32> to vector<4x384xf32>
    %323 = vector.shape_cast %320 : vector<4x384xf32> to vector<1x4x384xf32>
    tpu.vector_store %arg13[%c0_109, %c0_110, %c0_111], %323 {strides = array<i32>} : memref<2x4x384xf32, #tpu.memory_space<vmem>>, vector<1x4x384xf32>,
    %c0_112 = arith.constant 0 : index
    %c0_113 = arith.constant 0 : index
    %324 = vector.load %arg5[%c0_112, %c0_113] : memref<1x384xf32, #tpu.memory_space<vmem>>, vector<1x384xf32>
    %325 = vector.broadcast %324 : vector<1x384xf32> to vector<4x384xf32>
    %326 = arith.mulf %320, %325 : vector<4x384xf32>
    %cst_114 = arith.constant dense<0.000000e+00> : vector<4xf32>
    %327 = vector.multi_reduction <add>, %326, %cst_114 [1] : vector<4x384xf32> to vector<4xf32>
    %328 = vector.shape_cast %327 : vector<4xf32> to vector<4x1xf32>
    %329 = arith.addf %82, %328 : vector<4x1xf32>
    %c1 = arith.constant 1 : index
    %c0_115 = arith.constant 0 : index
    %c0_116 = arith.constant 0 : index
    %330 = vector.load %arg2[%c1, %c0_115, %c0_116] : memref<2x4x36xf32, #tpu.memory_space<vmem>>, vector<1x4x36xf32>
    %331 = vector.shape_cast %330 : vector<1x4x36xf32> to vector<4x36xf32>
    %cst_117 = arith.constant 0.000000e+00 : f32
    %332 = vector.broadcast %cst_117 : f32 to vector<4x384xf32>
    %c0_118 = arith.constant 0 : index
    %c0_119 = arith.constant 0 : index
    %333 = vector.load %arg12[%c0_118, %c0_119] : memref<4x512xf32, #tpu.memory_space<vmem>>, vector<4x384xf32>
    %334 = vector.extract_strided_slice %331 {offsets = [0, 0], sizes = [4, 1], strides = [1, 1]} : vector<4x36xf32> to vector<4x1xf32>
    %335 = vector.extract_strided_slice %333 {offsets = [0, 0], sizes = [1, 384], strides = [1, 1]} : vector<4x384xf32> to vector<1x384xf32>
    %336 = vector.broadcast %334 : vector<4x1xf32> to vector<4x384xf32>
    %337 = vector.broadcast %335 : vector<1x384xf32> to vector<4x384xf32>
    %338 = arith.mulf %336, %337 : vector<4x384xf32>
    %339 = arith.addf %332, %338 : vector<4x384xf32>
    %340 = vector.extract_strided_slice %331 {offsets = [0, 1], sizes = [4, 1], strides = [1, 1]} : vector<4x36xf32> to vector<4x1xf32>
    %341 = vector.extract_strided_slice %333 {offsets = [1, 0], sizes = [1, 384], strides = [1, 1]} : vector<4x384xf32> to vector<1x384xf32>
    %342 = vector.broadcast %340 : vector<4x1xf32> to vector<4x384xf32>
    %343 = vector.broadcast %341 : vector<1x384xf32> to vector<4x384xf32>
    %344 = arith.mulf %342, %343 : vector<4x384xf32>
    %345 = arith.addf %339, %344 : vector<4x384xf32>
    %346 = vector.extract_strided_slice %331 {offsets = [0, 2], sizes = [4, 1], strides = [1, 1]} : vector<4x36xf32> to vector<4x1xf32>
    %347 = vector.extract_strided_slice %333 {offsets = [2, 0], sizes = [1, 384], strides = [1, 1]} : vector<4x384xf32> to vector<1x384xf32>
    %348 = vector.broadcast %346 : vector<4x1xf32> to vector<4x384xf32>
    %349 = vector.broadcast %347 : vector<1x384xf32> to vector<4x384xf32>
    %350 = arith.mulf %348, %349 : vector<4x384xf32>
    %351 = arith.addf %345, %350 : vector<4x384xf32>
    %352 = vector.extract_strided_slice %331 {offsets = [0, 3], sizes = [4, 1], strides = [1, 1]} : vector<4x36xf32> to vector<4x1xf32>
    %353 = vector.extract_strided_slice %333 {offsets = [3, 0], sizes = [1, 384], strides = [1, 1]} : vector<4x384xf32> to vector<1x384xf32>
    %354 = vector.broadcast %352 : vector<4x1xf32> to vector<4x384xf32>
    %355 = vector.broadcast %353 : vector<1x384xf32> to vector<4x384xf32>
    %356 = arith.mulf %354, %355 : vector<4x384xf32>
    %357 = arith.addf %351, %356 : vector<4x384xf32>
    %c0_120 = arith.constant 0 : index
    %c2 = arith.constant 2 : index
    %358 = vector.load %arg12[%c0_120, %c2] : memref<4x512xf32, #tpu.memory_space<vmem>>, vector<4x384xf32>
    %359 = vector.extract_strided_slice %331 {offsets = [0, 4], sizes = [4, 1], strides = [1, 1]} : vector<4x36xf32> to vector<4x1xf32>
    %360 = vector.extract_strided_slice %358 {offsets = [0, 0], sizes = [1, 384], strides = [1, 1]} : vector<4x384xf32> to vector<1x384xf32>
    %361 = vector.broadcast %359 : vector<4x1xf32> to vector<4x384xf32>
    %362 = vector.broadcast %360 : vector<1x384xf32> to vector<4x384xf32>
    %363 = arith.mulf %361, %362 : vector<4x384xf32>
    %364 = arith.addf %357, %363 : vector<4x384xf32>
    %365 = vector.extract_strided_slice %331 {offsets = [0, 5], sizes = [4, 1], strides = [1, 1]} : vector<4x36xf32> to vector<4x1xf32>
    %366 = vector.extract_strided_slice %358 {offsets = [1, 0], sizes = [1, 384], strides = [1, 1]} : vector<4x384xf32> to vector<1x384xf32>
    %367 = vector.broadcast %365 : vector<4x1xf32> to vector<4x384xf32>
    %368 = vector.broadcast %366 : vector<1x384xf32> to vector<4x384xf32>
    %369 = arith.mulf %367, %368 : vector<4x384xf32>
    %370 = arith.addf %364, %369 : vector<4x384xf32>
    %371 = vector.extract_strided_slice %331 {offsets = [0, 6], sizes = [4, 1], strides = [1, 1]} : vector<4x36xf32> to vector<4x1xf32>
    %372 = vector.extract_strided_slice %358 {offsets = [2, 0], sizes = [1, 384], strides = [1, 1]} : vector<4x384xf32> to vector<1x384xf32>
    %373 = vector.broadcast %371 : vector<4x1xf32> to vector<4x384xf32>
    %374 = vector.broadcast %372 : vector<1x384xf32> to vector<4x384xf32>
    %375 = arith.mulf %373, %374 : vector<4x384xf32>
    %376 = arith.addf %370, %375 : vector<4x384xf32>
    %377 = vector.extract_strided_slice %331 {offsets = [0, 7], sizes = [4, 1], strides = [1, 1]} : vector<4x36xf32> to vector<4x1xf32>
    %378 = vector.extract_strided_slice %358 {offsets = [3, 0], sizes = [1, 384], strides = [1, 1]} : vector<4x384xf32> to vector<1x384xf32>
    %379 = vector.broadcast %377 : vector<4x1xf32> to vector<4x384xf32>
    %380 = vector.broadcast %378 : vector<1x384xf32> to vector<4x384xf32>
    %381 = arith.mulf %379, %380 : vector<4x384xf32>
    %382 = arith.addf %376, %381 : vector<4x384xf32>
    %c0_121 = arith.constant 0 : index
    %c4 = arith.constant 4 : index
    %383 = vector.load %arg12[%c0_121, %c4] : memref<4x512xf32, #tpu.memory_space<vmem>>, vector<4x384xf32>
    %384 = vector.extract_strided_slice %331 {offsets = [0, 8], sizes = [4, 1], strides = [1, 1]} : vector<4x36xf32> to vector<4x1xf32>
    %385 = vector.extract_strided_slice %383 {offsets = [0, 0], sizes = [1, 384], strides = [1, 1]} : vector<4x384xf32> to vector<1x384xf32>
    %386 = vector.broadcast %384 : vector<4x1xf32> to vector<4x384xf32>
    %387 = vector.broadcast %385 : vector<1x384xf32> to vector<4x384xf32>
    %388 = arith.mulf %386, %387 : vector<4x384xf32>
    %389 = arith.addf %382, %388 : vector<4x384xf32>
    %390 = vector.extract_strided_slice %331 {offsets = [0, 9], sizes = [4, 1], strides = [1, 1]} : vector<4x36xf32> to vector<4x1xf32>
    %391 = vector.extract_strided_slice %383 {offsets = [1, 0], sizes = [1, 384], strides = [1, 1]} : vector<4x384xf32> to vector<1x384xf32>
    %392 = vector.broadcast %390 : vector<4x1xf32> to vector<4x384xf32>
    %393 = vector.broadcast %391 : vector<1x384xf32> to vector<4x384xf32>
    %394 = arith.mulf %392, %393 : vector<4x384xf32>
    %395 = arith.addf %389, %394 : vector<4x384xf32>
    %396 = vector.extract_strided_slice %331 {offsets = [0, 10], sizes = [4, 1], strides = [1, 1]} : vector<4x36xf32> to vector<4x1xf32>
    %397 = vector.extract_strided_slice %383 {offsets = [2, 0], sizes = [1, 384], strides = [1, 1]} : vector<4x384xf32> to vector<1x384xf32>
    %398 = vector.broadcast %396 : vector<4x1xf32> to vector<4x384xf32>
    %399 = vector.broadcast %397 : vector<1x384xf32> to vector<4x384xf32>
    %400 = arith.mulf %398, %399 : vector<4x384xf32>
    %401 = arith.addf %395, %400 : vector<4x384xf32>
    %402 = vector.extract_strided_slice %331 {offsets = [0, 11], sizes = [4, 1], strides = [1, 1]} : vector<4x36xf32> to vector<4x1xf32>
    %403 = vector.extract_strided_slice %383 {offsets = [3, 0], sizes = [1, 384], strides = [1, 1]} : vector<4x384xf32> to vector<1x384xf32>
    %404 = vector.broadcast %402 : vector<4x1xf32> to vector<4x384xf32>
    %405 = vector.broadcast %403 : vector<1x384xf32> to vector<4x384xf32>
    %406 = arith.mulf %404, %405 : vector<4x384xf32>
    %407 = arith.addf %401, %406 : vector<4x384xf32>
    %c0_122 = arith.constant 0 : index
    %c40 = arith.constant 40 : index
    %408 = vector.load %arg12[%c0_122, %c40] : memref<4x512xf32, #tpu.memory_space<vmem>>, vector<4x384xf32>
    %409 = vector.extract_strided_slice %331 {offsets = [0, 12], sizes = [4, 1], strides = [1, 1]} : vector<4x36xf32> to vector<4x1xf32>
    %410 = vector.extract_strided_slice %408 {offsets = [0, 0], sizes = [1, 384], strides = [1, 1]} : vector<4x384xf32> to vector<1x384xf32>
    %411 = vector.broadcast %409 : vector<4x1xf32> to vector<4x384xf32>
    %412 = vector.broadcast %410 : vector<1x384xf32> to vector<4x384xf32>
    %413 = arith.mulf %411, %412 : vector<4x384xf32>
    %414 = arith.addf %407, %413 : vector<4x384xf32>
    %415 = vector.extract_strided_slice %331 {offsets = [0, 13], sizes = [4, 1], strides = [1, 1]} : vector<4x36xf32> to vector<4x1xf32>
    %416 = vector.extract_strided_slice %408 {offsets = [1, 0], sizes = [1, 384], strides = [1, 1]} : vector<4x384xf32> to vector<1x384xf32>
    %417 = vector.broadcast %415 : vector<4x1xf32> to vector<4x384xf32>
    %418 = vector.broadcast %416 : vector<1x384xf32> to vector<4x384xf32>
    %419 = arith.mulf %417, %418 : vector<4x384xf32>
    %420 = arith.addf %414, %419 : vector<4x384xf32>
    %421 = vector.extract_strided_slice %331 {offsets = [0, 14], sizes = [4, 1], strides = [1, 1]} : vector<4x36xf32> to vector<4x1xf32>
    %422 = vector.extract_strided_slice %408 {offsets = [2, 0], sizes = [1, 384], strides = [1, 1]} : vector<4x384xf32> to vector<1x384xf32>
    %423 = vector.broadcast %421 : vector<4x1xf32> to vector<4x384xf32>
    %424 = vector.broadcast %422 : vector<1x384xf32> to vector<4x384xf32>
    %425 = arith.mulf %423, %424 : vector<4x384xf32>
    %426 = arith.addf %420, %425 : vector<4x384xf32>
    %427 = vector.extract_strided_slice %331 {offsets = [0, 15], sizes = [4, 1], strides = [1, 1]} : vector<4x36xf32> to vector<4x1xf32>
    %428 = vector.extract_strided_slice %408 {offsets = [3, 0], sizes = [1, 384], strides = [1, 1]} : vector<4x384xf32> to vector<1x384xf32>
    %429 = vector.broadcast %427 : vector<4x1xf32> to vector<4x384xf32>
    %430 = vector.broadcast %428 : vector<1x384xf32> to vector<4x384xf32>
    %431 = arith.mulf %429, %430 : vector<4x384xf32>
    %432 = arith.addf %426, %431 : vector<4x384xf32>
    %c0_123 = arith.constant 0 : index
    %c42_124 = arith.constant 42 : index
    %433 = vector.load %arg12[%c0_123, %c42_124] : memref<4x512xf32, #tpu.memory_space<vmem>>, vector<4x384xf32>
    %434 = vector.extract_strided_slice %331 {offsets = [0, 16], sizes = [4, 1], strides = [1, 1]} : vector<4x36xf32> to vector<4x1xf32>
    %435 = vector.extract_strided_slice %433 {offsets = [0, 0], sizes = [1, 384], strides = [1, 1]} : vector<4x384xf32> to vector<1x384xf32>
    %436 = vector.broadcast %434 : vector<4x1xf32> to vector<4x384xf32>
    %437 = vector.broadcast %435 : vector<1x384xf32> to vector<4x384xf32>
    %438 = arith.mulf %436, %437 : vector<4x384xf32>
    %439 = arith.addf %432, %438 : vector<4x384xf32>
    %440 = vector.extract_strided_slice %331 {offsets = [0, 17], sizes = [4, 1], strides = [1, 1]} : vector<4x36xf32> to vector<4x1xf32>
    %441 = vector.extract_strided_slice %433 {offsets = [1, 0], sizes = [1, 384], strides = [1, 1]} : vector<4x384xf32> to vector<1x384xf32>
    %442 = vector.broadcast %440 : vector<4x1xf32> to vector<4x384xf32>
    %443 = vector.broadcast %441 : vector<1x384xf32> to vector<4x384xf32>
    %444 = arith.mulf %442, %443 : vector<4x384xf32>
    %445 = arith.addf %439, %444 : vector<4x384xf32>
    %446 = vector.extract_strided_slice %331 {offsets = [0, 18], sizes = [4, 1], strides = [1, 1]} : vector<4x36xf32> to vector<4x1xf32>
    %447 = vector.extract_strided_slice %433 {offsets = [2, 0], sizes = [1, 384], strides = [1, 1]} : vector<4x384xf32> to vector<1x384xf32>
    %448 = vector.broadcast %446 : vector<4x1xf32> to vector<4x384xf32>
    %449 = vector.broadcast %447 : vector<1x384xf32> to vector<4x384xf32>
    %450 = arith.mulf %448, %449 : vector<4x384xf32>
    %451 = arith.addf %445, %450 : vector<4x384xf32>
    %452 = vector.extract_strided_slice %331 {offsets = [0, 19], sizes = [4, 1], strides = [1, 1]} : vector<4x36xf32> to vector<4x1xf32>
    %453 = vector.extract_strided_slice %433 {offsets = [3, 0], sizes = [1, 384], strides = [1, 1]} : vector<4x384xf32> to vector<1x384xf32>
    %454 = vector.broadcast %452 : vector<4x1xf32> to vector<4x384xf32>
    %455 = vector.broadcast %453 : vector<1x384xf32> to vector<4x384xf32>
    %456 = arith.mulf %454, %455 : vector<4x384xf32>
    %457 = arith.addf %451, %456 : vector<4x384xf32>
    %c0_125 = arith.constant 0 : index
    %c44_126 = arith.constant 44 : index
    %458 = vector.load %arg12[%c0_125, %c44_126] : memref<4x512xf32, #tpu.memory_space<vmem>>, vector<4x384xf32>
    %459 = vector.extract_strided_slice %331 {offsets = [0, 20], sizes = [4, 1], strides = [1, 1]} : vector<4x36xf32> to vector<4x1xf32>
    %460 = vector.extract_strided_slice %458 {offsets = [0, 0], sizes = [1, 384], strides = [1, 1]} : vector<4x384xf32> to vector<1x384xf32>
    %461 = vector.broadcast %459 : vector<4x1xf32> to vector<4x384xf32>
    %462 = vector.broadcast %460 : vector<1x384xf32> to vector<4x384xf32>
    %463 = arith.mulf %461, %462 : vector<4x384xf32>
    %464 = arith.addf %457, %463 : vector<4x384xf32>
    %465 = vector.extract_strided_slice %331 {offsets = [0, 21], sizes = [4, 1], strides = [1, 1]} : vector<4x36xf32> to vector<4x1xf32>
    %466 = vector.extract_strided_slice %458 {offsets = [1, 0], sizes = [1, 384], strides = [1, 1]} : vector<4x384xf32> to vector<1x384xf32>
    %467 = vector.broadcast %465 : vector<4x1xf32> to vector<4x384xf32>
    %468 = vector.broadcast %466 : vector<1x384xf32> to vector<4x384xf32>
    %469 = arith.mulf %467, %468 : vector<4x384xf32>
    %470 = arith.addf %464, %469 : vector<4x384xf32>
    %471 = vector.extract_strided_slice %331 {offsets = [0, 22], sizes = [4, 1], strides = [1, 1]} : vector<4x36xf32> to vector<4x1xf32>
    %472 = vector.extract_strided_slice %458 {offsets = [2, 0], sizes = [1, 384], strides = [1, 1]} : vector<4x384xf32> to vector<1x384xf32>
    %473 = vector.broadcast %471 : vector<4x1xf32> to vector<4x384xf32>
    %474 = vector.broadcast %472 : vector<1x384xf32> to vector<4x384xf32>
    %475 = arith.mulf %473, %474 : vector<4x384xf32>
    %476 = arith.addf %470, %475 : vector<4x384xf32>
    %477 = vector.extract_strided_slice %331 {offsets = [0, 23], sizes = [4, 1], strides = [1, 1]} : vector<4x36xf32> to vector<4x1xf32>
    %478 = vector.extract_strided_slice %458 {offsets = [3, 0], sizes = [1, 384], strides = [1, 1]} : vector<4x384xf32> to vector<1x384xf32>
    %479 = vector.broadcast %477 : vector<4x1xf32> to vector<4x384xf32>
    %480 = vector.broadcast %478 : vector<1x384xf32> to vector<4x384xf32>
    %481 = arith.mulf %479, %480 : vector<4x384xf32>
    %482 = arith.addf %476, %481 : vector<4x384xf32>
    %c0_127 = arith.constant 0 : index
    %c80_128 = arith.constant 80 : index
    %483 = vector.load %arg12[%c0_127, %c80_128] : memref<4x512xf32, #tpu.memory_space<vmem>>, vector<4x384xf32>
    %484 = vector.extract_strided_slice %331 {offsets = [0, 24], sizes = [4, 1], strides = [1, 1]} : vector<4x36xf32> to vector<4x1xf32>
    %485 = vector.extract_strided_slice %483 {offsets = [0, 0], sizes = [1, 384], strides = [1, 1]} : vector<4x384xf32> to vector<1x384xf32>
    %486 = vector.broadcast %484 : vector<4x1xf32> to vector<4x384xf32>
    %487 = vector.broadcast %485 : vector<1x384xf32> to vector<4x384xf32>
    %488 = arith.mulf %486, %487 : vector<4x384xf32>
    %489 = arith.addf %482, %488 : vector<4x384xf32>
    %490 = vector.extract_strided_slice %331 {offsets = [0, 25], sizes = [4, 1], strides = [1, 1]} : vector<4x36xf32> to vector<4x1xf32>
    %491 = vector.extract_strided_slice %483 {offsets = [1, 0], sizes = [1, 384], strides = [1, 1]} : vector<4x384xf32> to vector<1x384xf32>
    %492 = vector.broadcast %490 : vector<4x1xf32> to vector<4x384xf32>
    %493 = vector.broadcast %491 : vector<1x384xf32> to vector<4x384xf32>
    %494 = arith.mulf %492, %493 : vector<4x384xf32>
    %495 = arith.addf %489, %494 : vector<4x384xf32>
    %496 = vector.extract_strided_slice %331 {offsets = [0, 26], sizes = [4, 1], strides = [1, 1]} : vector<4x36xf32> to vector<4x1xf32>
    %497 = vector.extract_strided_slice %483 {offsets = [2, 0], sizes = [1, 384], strides = [1, 1]} : vector<4x384xf32> to vector<1x384xf32>
    %498 = vector.broadcast %496 : vector<4x1xf32> to vector<4x384xf32>
    %499 = vector.broadcast %497 : vector<1x384xf32> to vector<4x384xf32>
    %500 = arith.mulf %498, %499 : vector<4x384xf32>
    %501 = arith.addf %495, %500 : vector<4x384xf32>
    %502 = vector.extract_strided_slice %331 {offsets = [0, 27], sizes = [4, 1], strides = [1, 1]} : vector<4x36xf32> to vector<4x1xf32>
    %503 = vector.extract_strided_slice %483 {offsets = [3, 0], sizes = [1, 384], strides = [1, 1]} : vector<4x384xf32> to vector<1x384xf32>
    %504 = vector.broadcast %502 : vector<4x1xf32> to vector<4x384xf32>
    %505 = vector.broadcast %503 : vector<1x384xf32> to vector<4x384xf32>
    %506 = arith.mulf %504, %505 : vector<4x384xf32>
    %507 = arith.addf %501, %506 : vector<4x384xf32>
    %c0_129 = arith.constant 0 : index
    %c82 = arith.constant 82 : index
    %508 = vector.load %arg12[%c0_129, %c82] : memref<4x512xf32, #tpu.memory_space<vmem>>, vector<4x384xf32>
    %509 = vector.extract_strided_slice %331 {offsets = [0, 28], sizes = [4, 1], strides = [1, 1]} : vector<4x36xf32> to vector<4x1xf32>
    %510 = vector.extract_strided_slice %508 {offsets = [0, 0], sizes = [1, 384], strides = [1, 1]} : vector<4x384xf32> to vector<1x384xf32>
    %511 = vector.broadcast %509 : vector<4x1xf32> to vector<4x384xf32>
    %512 = vector.broadcast %510 : vector<1x384xf32> to vector<4x384xf32>
    %513 = arith.mulf %511, %512 : vector<4x384xf32>
    %514 = arith.addf %507, %513 : vector<4x384xf32>
    %515 = vector.extract_strided_slice %331 {offsets = [0, 29], sizes = [4, 1], strides = [1, 1]} : vector<4x36xf32> to vector<4x1xf32>
    %516 = vector.extract_strided_slice %508 {offsets = [1, 0], sizes = [1, 384], strides = [1, 1]} : vector<4x384xf32> to vector<1x384xf32>
    %517 = vector.broadcast %515 : vector<4x1xf32> to vector<4x384xf32>
    %518 = vector.broadcast %516 : vector<1x384xf32> to vector<4x384xf32>
    %519 = arith.mulf %517, %518 : vector<4x384xf32>
    %520 = arith.addf %514, %519 : vector<4x384xf32>
    %521 = vector.extract_strided_slice %331 {offsets = [0, 30], sizes = [4, 1], strides = [1, 1]} : vector<4x36xf32> to vector<4x1xf32>
    %522 = vector.extract_strided_slice %508 {offsets = [2, 0], sizes = [1, 384], strides = [1, 1]} : vector<4x384xf32> to vector<1x384xf32>
    %523 = vector.broadcast %521 : vector<4x1xf32> to vector<4x384xf32>
    %524 = vector.broadcast %522 : vector<1x384xf32> to vector<4x384xf32>
    %525 = arith.mulf %523, %524 : vector<4x384xf32>
    %526 = arith.addf %520, %525 : vector<4x384xf32>
    %527 = vector.extract_strided_slice %331 {offsets = [0, 31], sizes = [4, 1], strides = [1, 1]} : vector<4x36xf32> to vector<4x1xf32>
    %528 = vector.extract_strided_slice %508 {offsets = [3, 0], sizes = [1, 384], strides = [1, 1]} : vector<4x384xf32> to vector<1x384xf32>
    %529 = vector.broadcast %527 : vector<4x1xf32> to vector<4x384xf32>
    %530 = vector.broadcast %528 : vector<1x384xf32> to vector<4x384xf32>
    %531 = arith.mulf %529, %530 : vector<4x384xf32>
    %532 = arith.addf %526, %531 : vector<4x384xf32>
    %c0_130 = arith.constant 0 : index
    %c84_131 = arith.constant 84 : index
    %533 = vector.load %arg12[%c0_130, %c84_131] : memref<4x512xf32, #tpu.memory_space<vmem>>, vector<4x384xf32>
    %534 = vector.extract_strided_slice %331 {offsets = [0, 32], sizes = [4, 1], strides = [1, 1]} : vector<4x36xf32> to vector<4x1xf32>
    %535 = vector.extract_strided_slice %533 {offsets = [0, 0], sizes = [1, 384], strides = [1, 1]} : vector<4x384xf32> to vector<1x384xf32>
    %536 = vector.broadcast %534 : vector<4x1xf32> to vector<4x384xf32>
    %537 = vector.broadcast %535 : vector<1x384xf32> to vector<4x384xf32>
    %538 = arith.mulf %536, %537 : vector<4x384xf32>
    %539 = arith.addf %532, %538 : vector<4x384xf32>
    %540 = vector.extract_strided_slice %331 {offsets = [0, 33], sizes = [4, 1], strides = [1, 1]} : vector<4x36xf32> to vector<4x1xf32>
    %541 = vector.extract_strided_slice %533 {offsets = [1, 0], sizes = [1, 384], strides = [1, 1]} : vector<4x384xf32> to vector<1x384xf32>
    %542 = vector.broadcast %540 : vector<4x1xf32> to vector<4x384xf32>
    %543 = vector.broadcast %541 : vector<1x384xf32> to vector<4x384xf32>
    %544 = arith.mulf %542, %543 : vector<4x384xf32>
    %545 = arith.addf %539, %544 : vector<4x384xf32>
    %546 = vector.extract_strided_slice %331 {offsets = [0, 34], sizes = [4, 1], strides = [1, 1]} : vector<4x36xf32> to vector<4x1xf32>
    %547 = vector.extract_strided_slice %533 {offsets = [2, 0], sizes = [1, 384], strides = [1, 1]} : vector<4x384xf32> to vector<1x384xf32>
    %548 = vector.broadcast %546 : vector<4x1xf32> to vector<4x384xf32>
    %549 = vector.broadcast %547 : vector<1x384xf32> to vector<4x384xf32>
    %550 = arith.mulf %548, %549 : vector<4x384xf32>
    %551 = arith.addf %545, %550 : vector<4x384xf32>
    %552 = vector.extract_strided_slice %331 {offsets = [0, 35], sizes = [4, 1], strides = [1, 1]} : vector<4x36xf32> to vector<4x1xf32>
    %553 = vector.extract_strided_slice %533 {offsets = [3, 0], sizes = [1, 384], strides = [1, 1]} : vector<4x384xf32> to vector<1x384xf32>
    %554 = vector.broadcast %552 : vector<4x1xf32> to vector<4x384xf32>
    %555 = vector.broadcast %553 : vector<1x384xf32> to vector<4x384xf32>
    %556 = arith.mulf %554, %555 : vector<4x384xf32>
    %557 = arith.addf %551, %556 : vector<4x384xf32>
    %c1_132 = arith.constant 1 : index
    %c0_133 = arith.constant 0 : index
    %c0_134 = arith.constant 0 : index
    %558 = vector.load %arg3[%c1_132, %c0_133, %c0_134] : memref<2x4x1xf32, #tpu.memory_space<vmem>>, vector<1x4x1xf32>
    %559 = vector.shape_cast %558 : vector<1x4x1xf32> to vector<4x1xf32>
    %560 = vector.broadcast %559 : vector<4x1xf32> to vector<4x384xf32>
    %561 = arith.mulf %557, %560 : vector<4x384xf32>
    %c1_135 = arith.constant 1 : index
    %c0_136 = arith.constant 0 : index
    %c0_137 = arith.constant 0 : index
    %562 = vector.load %arg4[%c1_135, %c0_136, %c0_137] : memref<2x4x1xf32, #tpu.memory_space<vmem>>, vector<1x4x1xf32>
    %563 = vector.shape_cast %562 : vector<1x4x1xf32> to vector<4x1xf32>
    %564 = vector.broadcast %563 : vector<4x1xf32> to vector<4x384xf32>
    %565 = arith.addf %561, %564 : vector<4x384xf32>
    %cst_138 = arith.constant 0.000000e+00 : f32
    %566 = vector.broadcast %cst_138 : f32 to vector<4x384xf32>
    %567 = arith.maximumf %565, %566 : vector<4x384xf32>
    %c1_139 = arith.constant 1 : index
    %c0_140 = arith.constant 0 : index
    %c0_141 = arith.constant 0 : index
    %568 = vector.load %arg13[%c1_139, %c0_140, %c0_141] : memref<2x4x384xf32, #tpu.memory_space<vmem>>, vector<1x4x384xf32>
    %569 = vector.shape_cast %568 : vector<1x4x384xf32> to vector<4x384xf32>
    %570 = vector.shape_cast %567 : vector<4x384xf32> to vector<1x4x384xf32>
    tpu.vector_store %arg13[%c1_139, %c0_140, %c0_141], %570 {strides = array<i32>} : memref<2x4x384xf32, #tpu.memory_space<vmem>>, vector<1x4x384xf32>,
    %c0_142 = arith.constant 0 : index
    %c0_143 = arith.constant 0 : index
    %571 = vector.load %arg5[%c0_142, %c0_143] : memref<1x384xf32, #tpu.memory_space<vmem>>, vector<1x384xf32>
    %572 = vector.broadcast %571 : vector<1x384xf32> to vector<4x384xf32>
    %573 = arith.mulf %567, %572 : vector<4x384xf32>
    %cst_144 = arith.constant dense<0.000000e+00> : vector<4xf32>
    %574 = vector.multi_reduction <add>, %573, %cst_144 [1] : vector<4x384xf32> to vector<4xf32>
    %575 = vector.shape_cast %574 : vector<4xf32> to vector<4x1xf32>
    %576 = arith.addf %329, %575 : vector<4x1xf32>
    %cst_145 = arith.constant 3.906250e-03 : f32
    %577 = vector.broadcast %cst_145 : f32 to vector<4x1xf32>
    %578 = arith.mulf %576, %577 : vector<4x1xf32>
    %c0_146 = arith.constant 0 : index
    %c0_147 = arith.constant 0 : index
    %579 = vector.load %arg6[%c0_146, %c0_147] : memref<32x4xf32, #tpu.memory_space<vmem>>, vector<32x4xf32>
    %580 = vector.extract_strided_slice %579 {offsets = [0, 0], sizes = [32, 1], strides = [1, 1]} : vector<32x4xf32> to vector<32x1xf32>
    %581 = vector.extract_strided_slice %578 {offsets = [0, 0], sizes = [1, 1], strides = [1, 1]} : vector<4x1xf32> to vector<1x1xf32>
    %582 = vector.broadcast %581 : vector<1x1xf32> to vector<32x1xf32>
    %583 = arith.mulf %580, %582 : vector<32x1xf32>
    %584 = vector.extract_strided_slice %579 {offsets = [0, 1], sizes = [32, 1], strides = [1, 1]} : vector<32x4xf32> to vector<32x1xf32>
    %585 = vector.extract_strided_slice %578 {offsets = [1, 0], sizes = [1, 1], strides = [1, 1]} : vector<4x1xf32> to vector<1x1xf32>
    %586 = vector.broadcast %585 : vector<1x1xf32> to vector<32x1xf32>
    %587 = arith.mulf %584, %586 : vector<32x1xf32>
    %588 = arith.addf %583, %587 : vector<32x1xf32>
    %589 = vector.extract_strided_slice %579 {offsets = [0, 2], sizes = [32, 1], strides = [1, 1]} : vector<32x4xf32> to vector<32x1xf32>
    %590 = vector.extract_strided_slice %578 {offsets = [2, 0], sizes = [1, 1], strides = [1, 1]} : vector<4x1xf32> to vector<1x1xf32>
    %591 = vector.broadcast %590 : vector<1x1xf32> to vector<32x1xf32>
    %592 = arith.mulf %589, %591 : vector<32x1xf32>
    %593 = arith.addf %588, %592 : vector<32x1xf32>
    %594 = vector.extract_strided_slice %579 {offsets = [0, 3], sizes = [32, 1], strides = [1, 1]} : vector<32x4xf32> to vector<32x1xf32>
    %595 = vector.extract_strided_slice %578 {offsets = [3, 0], sizes = [1, 1], strides = [1, 1]} : vector<4x1xf32> to vector<1x1xf32>
    %596 = vector.broadcast %595 : vector<1x1xf32> to vector<32x1xf32>
    %597 = arith.mulf %594, %596 : vector<32x1xf32>
    %598 = arith.addf %593, %597 : vector<32x1xf32>
    %c0_148 = arith.constant 0 : index
    %c0_149 = arith.constant 0 : index
    %599 = vector.load %arg7[%c0_148, %c0_149] : memref<32x1xf32, #tpu.memory_space<vmem>>, vector<32x1xf32>
    %600 = arith.mulf %598, %599 : vector<32x1xf32>
    %c0_150 = arith.constant 0 : index
    %c0_151 = arith.constant 0 : index
    %601 = vector.load %arg8[%c0_150, %c0_151] : memref<32x1xf32, #tpu.memory_space<vmem>>, vector<32x1xf32>
    %602 = arith.addf %600, %601 : vector<32x1xf32>
    %cst_152 = arith.constant 0.000000e+00 : f32
    %603 = vector.broadcast %cst_152 : f32 to vector<32x1xf32>
    %604 = arith.maximumf %602, %603 : vector<32x1xf32>
    %c0_153 = arith.constant 0 : index
    %c0_154 = arith.constant 0 : index
    %c0_155 = arith.constant 0 : index
    %605 = vector.load %arg9[%c0_153, %c0_154, %c0_155] : memref<2x4x32xf32, #tpu.memory_space<vmem>>, vector<1x4x32xf32>
    %606 = vector.shape_cast %605 : vector<1x4x32xf32> to vector<4x32xf32>
    %607 = vector.extract_strided_slice %606 {offsets = [0, 0], sizes = [4, 1], strides = [1, 1]} : vector<4x32xf32> to vector<4x1xf32>
    %608 = vector.extract_strided_slice %604 {offsets = [0, 0], sizes = [1, 1], strides = [1, 1]} : vector<32x1xf32> to vector<1x1xf32>
    %609 = vector.broadcast %608 : vector<1x1xf32> to vector<4x1xf32>
    %610 = arith.mulf %607, %609 : vector<4x1xf32>
    %611 = vector.extract_strided_slice %606 {offsets = [0, 1], sizes = [4, 1], strides = [1, 1]} : vector<4x32xf32> to vector<4x1xf32>
    %612 = vector.extract_strided_slice %604 {offsets = [1, 0], sizes = [1, 1], strides = [1, 1]} : vector<32x1xf32> to vector<1x1xf32>
    %613 = vector.broadcast %612 : vector<1x1xf32> to vector<4x1xf32>
    %614 = arith.mulf %611, %613 : vector<4x1xf32>
    %615 = arith.addf %610, %614 : vector<4x1xf32>
    %616 = vector.extract_strided_slice %606 {offsets = [0, 2], sizes = [4, 1], strides = [1, 1]} : vector<4x32xf32> to vector<4x1xf32>
    %617 = vector.extract_strided_slice %604 {offsets = [2, 0], sizes = [1, 1], strides = [1, 1]} : vector<32x1xf32> to vector<1x1xf32>
    %618 = vector.broadcast %617 : vector<1x1xf32> to vector<4x1xf32>
    %619 = arith.mulf %616, %618 : vector<4x1xf32>
    %620 = arith.addf %615, %619 : vector<4x1xf32>
    %621 = vector.extract_strided_slice %606 {offsets = [0, 3], sizes = [4, 1], strides = [1, 1]} : vector<4x32xf32> to vector<4x1xf32>
    %622 = vector.extract_strided_slice %604 {offsets = [3, 0], sizes = [1, 1], strides = [1, 1]} : vector<32x1xf32> to vector<1x1xf32>
    %623 = vector.broadcast %622 : vector<1x1xf32> to vector<4x1xf32>
    %624 = arith.mulf %621, %623 : vector<4x1xf32>
    %625 = arith.addf %620, %624 : vector<4x1xf32>
    %626 = vector.extract_strided_slice %606 {offsets = [0, 4], sizes = [4, 1], strides = [1, 1]} : vector<4x32xf32> to vector<4x1xf32>
    %627 = vector.extract_strided_slice %604 {offsets = [4, 0], sizes = [1, 1], strides = [1, 1]} : vector<32x1xf32> to vector<1x1xf32>
    %628 = vector.broadcast %627 : vector<1x1xf32> to vector<4x1xf32>
    %629 = arith.mulf %626, %628 : vector<4x1xf32>
    %630 = arith.addf %625, %629 : vector<4x1xf32>
    %631 = vector.extract_strided_slice %606 {offsets = [0, 5], sizes = [4, 1], strides = [1, 1]} : vector<4x32xf32> to vector<4x1xf32>
    %632 = vector.extract_strided_slice %604 {offsets = [5, 0], sizes = [1, 1], strides = [1, 1]} : vector<32x1xf32> to vector<1x1xf32>
    %633 = vector.broadcast %632 : vector<1x1xf32> to vector<4x1xf32>
    %634 = arith.mulf %631, %633 : vector<4x1xf32>
    %635 = arith.addf %630, %634 : vector<4x1xf32>
    %636 = vector.extract_strided_slice %606 {offsets = [0, 6], sizes = [4, 1], strides = [1, 1]} : vector<4x32xf32> to vector<4x1xf32>
    %637 = vector.extract_strided_slice %604 {offsets = [6, 0], sizes = [1, 1], strides = [1, 1]} : vector<32x1xf32> to vector<1x1xf32>
    %638 = vector.broadcast %637 : vector<1x1xf32> to vector<4x1xf32>
    %639 = arith.mulf %636, %638 : vector<4x1xf32>
    %640 = arith.addf %635, %639 : vector<4x1xf32>
    %641 = vector.extract_strided_slice %606 {offsets = [0, 7], sizes = [4, 1], strides = [1, 1]} : vector<4x32xf32> to vector<4x1xf32>
    %642 = vector.extract_strided_slice %604 {offsets = [7, 0], sizes = [1, 1], strides = [1, 1]} : vector<32x1xf32> to vector<1x1xf32>
    %643 = vector.broadcast %642 : vector<1x1xf32> to vector<4x1xf32>
    %644 = arith.mulf %641, %643 : vector<4x1xf32>
    %645 = arith.addf %640, %644 : vector<4x1xf32>
    %646 = vector.extract_strided_slice %606 {offsets = [0, 8], sizes = [4, 1], strides = [1, 1]} : vector<4x32xf32> to vector<4x1xf32>
    %647 = vector.extract_strided_slice %604 {offsets = [8, 0], sizes = [1, 1], strides = [1, 1]} : vector<32x1xf32> to vector<1x1xf32>
    %648 = vector.broadcast %647 : vector<1x1xf32> to vector<4x1xf32>
    %649 = arith.mulf %646, %648 : vector<4x1xf32>
    %650 = arith.addf %645, %649 : vector<4x1xf32>
    %651 = vector.extract_strided_slice %606 {offsets = [0, 9], sizes = [4, 1], strides = [1, 1]} : vector<4x32xf32> to vector<4x1xf32>
    %652 = vector.extract_strided_slice %604 {offsets = [9, 0], sizes = [1, 1], strides = [1, 1]} : vector<32x1xf32> to vector<1x1xf32>
    %653 = vector.broadcast %652 : vector<1x1xf32> to vector<4x1xf32>
    %654 = arith.mulf %651, %653 : vector<4x1xf32>
    %655 = arith.addf %650, %654 : vector<4x1xf32>
    %656 = vector.extract_strided_slice %606 {offsets = [0, 10], sizes = [4, 1], strides = [1, 1]} : vector<4x32xf32> to vector<4x1xf32>
    %657 = vector.extract_strided_slice %604 {offsets = [10, 0], sizes = [1, 1], strides = [1, 1]} : vector<32x1xf32> to vector<1x1xf32>
    %658 = vector.broadcast %657 : vector<1x1xf32> to vector<4x1xf32>
    %659 = arith.mulf %656, %658 : vector<4x1xf32>
    %660 = arith.addf %655, %659 : vector<4x1xf32>
    %661 = vector.extract_strided_slice %606 {offsets = [0, 11], sizes = [4, 1], strides = [1, 1]} : vector<4x32xf32> to vector<4x1xf32>
    %662 = vector.extract_strided_slice %604 {offsets = [11, 0], sizes = [1, 1], strides = [1, 1]} : vector<32x1xf32> to vector<1x1xf32>
    %663 = vector.broadcast %662 : vector<1x1xf32> to vector<4x1xf32>
    %664 = arith.mulf %661, %663 : vector<4x1xf32>
    %665 = arith.addf %660, %664 : vector<4x1xf32>
    %666 = vector.extract_strided_slice %606 {offsets = [0, 12], sizes = [4, 1], strides = [1, 1]} : vector<4x32xf32> to vector<4x1xf32>
    %667 = vector.extract_strided_slice %604 {offsets = [12, 0], sizes = [1, 1], strides = [1, 1]} : vector<32x1xf32> to vector<1x1xf32>
    %668 = vector.broadcast %667 : vector<1x1xf32> to vector<4x1xf32>
    %669 = arith.mulf %666, %668 : vector<4x1xf32>
    %670 = arith.addf %665, %669 : vector<4x1xf32>
    %671 = vector.extract_strided_slice %606 {offsets = [0, 13], sizes = [4, 1], strides = [1, 1]} : vector<4x32xf32> to vector<4x1xf32>
    %672 = vector.extract_strided_slice %604 {offsets = [13, 0], sizes = [1, 1], strides = [1, 1]} : vector<32x1xf32> to vector<1x1xf32>
    %673 = vector.broadcast %672 : vector<1x1xf32> to vector<4x1xf32>
    %674 = arith.mulf %671, %673 : vector<4x1xf32>
    %675 = arith.addf %670, %674 : vector<4x1xf32>
    %676 = vector.extract_strided_slice %606 {offsets = [0, 14], sizes = [4, 1], strides = [1, 1]} : vector<4x32xf32> to vector<4x1xf32>
    %677 = vector.extract_strided_slice %604 {offsets = [14, 0], sizes = [1, 1], strides = [1, 1]} : vector<32x1xf32> to vector<1x1xf32>
    %678 = vector.broadcast %677 : vector<1x1xf32> to vector<4x1xf32>
    %679 = arith.mulf %676, %678 : vector<4x1xf32>
    %680 = arith.addf %675, %679 : vector<4x1xf32>
    %681 = vector.extract_strided_slice %606 {offsets = [0, 15], sizes = [4, 1], strides = [1, 1]} : vector<4x32xf32> to vector<4x1xf32>
    %682 = vector.extract_strided_slice %604 {offsets = [15, 0], sizes = [1, 1], strides = [1, 1]} : vector<32x1xf32> to vector<1x1xf32>
    %683 = vector.broadcast %682 : vector<1x1xf32> to vector<4x1xf32>
    %684 = arith.mulf %681, %683 : vector<4x1xf32>
    %685 = arith.addf %680, %684 : vector<4x1xf32>
    %686 = vector.extract_strided_slice %606 {offsets = [0, 16], sizes = [4, 1], strides = [1, 1]} : vector<4x32xf32> to vector<4x1xf32>
    %687 = vector.extract_strided_slice %604 {offsets = [16, 0], sizes = [1, 1], strides = [1, 1]} : vector<32x1xf32> to vector<1x1xf32>
    %688 = vector.broadcast %687 : vector<1x1xf32> to vector<4x1xf32>
    %689 = arith.mulf %686, %688 : vector<4x1xf32>
    %690 = arith.addf %685, %689 : vector<4x1xf32>
    %691 = vector.extract_strided_slice %606 {offsets = [0, 17], sizes = [4, 1], strides = [1, 1]} : vector<4x32xf32> to vector<4x1xf32>
    %692 = vector.extract_strided_slice %604 {offsets = [17, 0], sizes = [1, 1], strides = [1, 1]} : vector<32x1xf32> to vector<1x1xf32>
    %693 = vector.broadcast %692 : vector<1x1xf32> to vector<4x1xf32>
    %694 = arith.mulf %691, %693 : vector<4x1xf32>
    %695 = arith.addf %690, %694 : vector<4x1xf32>
    %696 = vector.extract_strided_slice %606 {offsets = [0, 18], sizes = [4, 1], strides = [1, 1]} : vector<4x32xf32> to vector<4x1xf32>
    %697 = vector.extract_strided_slice %604 {offsets = [18, 0], sizes = [1, 1], strides = [1, 1]} : vector<32x1xf32> to vector<1x1xf32>
    %698 = vector.broadcast %697 : vector<1x1xf32> to vector<4x1xf32>
    %699 = arith.mulf %696, %698 : vector<4x1xf32>
    %700 = arith.addf %695, %699 : vector<4x1xf32>
    %701 = vector.extract_strided_slice %606 {offsets = [0, 19], sizes = [4, 1], strides = [1, 1]} : vector<4x32xf32> to vector<4x1xf32>
    %702 = vector.extract_strided_slice %604 {offsets = [19, 0], sizes = [1, 1], strides = [1, 1]} : vector<32x1xf32> to vector<1x1xf32>
    %703 = vector.broadcast %702 : vector<1x1xf32> to vector<4x1xf32>
    %704 = arith.mulf %701, %703 : vector<4x1xf32>
    %705 = arith.addf %700, %704 : vector<4x1xf32>
    %706 = vector.extract_strided_slice %606 {offsets = [0, 20], sizes = [4, 1], strides = [1, 1]} : vector<4x32xf32> to vector<4x1xf32>
    %707 = vector.extract_strided_slice %604 {offsets = [20, 0], sizes = [1, 1], strides = [1, 1]} : vector<32x1xf32> to vector<1x1xf32>
    %708 = vector.broadcast %707 : vector<1x1xf32> to vector<4x1xf32>
    %709 = arith.mulf %706, %708 : vector<4x1xf32>
    %710 = arith.addf %705, %709 : vector<4x1xf32>
    %711 = vector.extract_strided_slice %606 {offsets = [0, 21], sizes = [4, 1], strides = [1, 1]} : vector<4x32xf32> to vector<4x1xf32>
    %712 = vector.extract_strided_slice %604 {offsets = [21, 0], sizes = [1, 1], strides = [1, 1]} : vector<32x1xf32> to vector<1x1xf32>
    %713 = vector.broadcast %712 : vector<1x1xf32> to vector<4x1xf32>
    %714 = arith.mulf %711, %713 : vector<4x1xf32>
    %715 = arith.addf %710, %714 : vector<4x1xf32>
    %716 = vector.extract_strided_slice %606 {offsets = [0, 22], sizes = [4, 1], strides = [1, 1]} : vector<4x32xf32> to vector<4x1xf32>
    %717 = vector.extract_strided_slice %604 {offsets = [22, 0], sizes = [1, 1], strides = [1, 1]} : vector<32x1xf32> to vector<1x1xf32>
    %718 = vector.broadcast %717 : vector<1x1xf32> to vector<4x1xf32>
    %719 = arith.mulf %716, %718 : vector<4x1xf32>
    %720 = arith.addf %715, %719 : vector<4x1xf32>
    %721 = vector.extract_strided_slice %606 {offsets = [0, 23], sizes = [4, 1], strides = [1, 1]} : vector<4x32xf32> to vector<4x1xf32>
    %722 = vector.extract_strided_slice %604 {offsets = [23, 0], sizes = [1, 1], strides = [1, 1]} : vector<32x1xf32> to vector<1x1xf32>
    %723 = vector.broadcast %722 : vector<1x1xf32> to vector<4x1xf32>
    %724 = arith.mulf %721, %723 : vector<4x1xf32>
    %725 = arith.addf %720, %724 : vector<4x1xf32>
    %726 = vector.extract_strided_slice %606 {offsets = [0, 24], sizes = [4, 1], strides = [1, 1]} : vector<4x32xf32> to vector<4x1xf32>
    %727 = vector.extract_strided_slice %604 {offsets = [24, 0], sizes = [1, 1], strides = [1, 1]} : vector<32x1xf32> to vector<1x1xf32>
    %728 = vector.broadcast %727 : vector<1x1xf32> to vector<4x1xf32>
    %729 = arith.mulf %726, %728 : vector<4x1xf32>
    %730 = arith.addf %725, %729 : vector<4x1xf32>
    %731 = vector.extract_strided_slice %606 {offsets = [0, 25], sizes = [4, 1], strides = [1, 1]} : vector<4x32xf32> to vector<4x1xf32>
    %732 = vector.extract_strided_slice %604 {offsets = [25, 0], sizes = [1, 1], strides = [1, 1]} : vector<32x1xf32> to vector<1x1xf32>
    %733 = vector.broadcast %732 : vector<1x1xf32> to vector<4x1xf32>
    %734 = arith.mulf %731, %733 : vector<4x1xf32>
    %735 = arith.addf %730, %734 : vector<4x1xf32>
    %736 = vector.extract_strided_slice %606 {offsets = [0, 26], sizes = [4, 1], strides = [1, 1]} : vector<4x32xf32> to vector<4x1xf32>
    %737 = vector.extract_strided_slice %604 {offsets = [26, 0], sizes = [1, 1], strides = [1, 1]} : vector<32x1xf32> to vector<1x1xf32>
    %738 = vector.broadcast %737 : vector<1x1xf32> to vector<4x1xf32>
    %739 = arith.mulf %736, %738 : vector<4x1xf32>
    %740 = arith.addf %735, %739 : vector<4x1xf32>
    %741 = vector.extract_strided_slice %606 {offsets = [0, 27], sizes = [4, 1], strides = [1, 1]} : vector<4x32xf32> to vector<4x1xf32>
    %742 = vector.extract_strided_slice %604 {offsets = [27, 0], sizes = [1, 1], strides = [1, 1]} : vector<32x1xf32> to vector<1x1xf32>
    %743 = vector.broadcast %742 : vector<1x1xf32> to vector<4x1xf32>
    %744 = arith.mulf %741, %743 : vector<4x1xf32>
    %745 = arith.addf %740, %744 : vector<4x1xf32>
    %746 = vector.extract_strided_slice %606 {offsets = [0, 28], sizes = [4, 1], strides = [1, 1]} : vector<4x32xf32> to vector<4x1xf32>
    %747 = vector.extract_strided_slice %604 {offsets = [28, 0], sizes = [1, 1], strides = [1, 1]} : vector<32x1xf32> to vector<1x1xf32>
    %748 = vector.broadcast %747 : vector<1x1xf32> to vector<4x1xf32>
    %749 = arith.mulf %746, %748 : vector<4x1xf32>
    %750 = arith.addf %745, %749 : vector<4x1xf32>
    %751 = vector.extract_strided_slice %606 {offsets = [0, 29], sizes = [4, 1], strides = [1, 1]} : vector<4x32xf32> to vector<4x1xf32>
    %752 = vector.extract_strided_slice %604 {offsets = [29, 0], sizes = [1, 1], strides = [1, 1]} : vector<32x1xf32> to vector<1x1xf32>
    %753 = vector.broadcast %752 : vector<1x1xf32> to vector<4x1xf32>
    %754 = arith.mulf %751, %753 : vector<4x1xf32>
    %755 = arith.addf %750, %754 : vector<4x1xf32>
    %756 = vector.extract_strided_slice %606 {offsets = [0, 30], sizes = [4, 1], strides = [1, 1]} : vector<4x32xf32> to vector<4x1xf32>
    %757 = vector.extract_strided_slice %604 {offsets = [30, 0], sizes = [1, 1], strides = [1, 1]} : vector<32x1xf32> to vector<1x1xf32>
    %758 = vector.broadcast %757 : vector<1x1xf32> to vector<4x1xf32>
    %759 = arith.mulf %756, %758 : vector<4x1xf32>
    %760 = arith.addf %755, %759 : vector<4x1xf32>
    %761 = vector.extract_strided_slice %606 {offsets = [0, 31], sizes = [4, 1], strides = [1, 1]} : vector<4x32xf32> to vector<4x1xf32>
    %762 = vector.extract_strided_slice %604 {offsets = [31, 0], sizes = [1, 1], strides = [1, 1]} : vector<32x1xf32> to vector<1x1xf32>
    %763 = vector.broadcast %762 : vector<1x1xf32> to vector<4x1xf32>
    %764 = arith.mulf %761, %763 : vector<4x1xf32>
    %765 = arith.addf %760, %764 : vector<4x1xf32>
    %c0_156 = arith.constant 0 : index
    %c0_157 = arith.constant 0 : index
    %c0_158 = arith.constant 0 : index
    %766 = vector.load %arg10[%c0_156, %c0_157, %c0_158] : memref<2x4x1xf32, #tpu.memory_space<vmem>>, vector<1x4x1xf32>
    %767 = vector.shape_cast %766 : vector<1x4x1xf32> to vector<4x1xf32>
    %768 = arith.addf %765, %767 : vector<4x1xf32>
    %c1_159 = arith.constant 1 : index
    %c0_160 = arith.constant 0 : index
    %c0_161 = arith.constant 0 : index
    %769 = vector.load %arg9[%c1_159, %c0_160, %c0_161] : memref<2x4x32xf32, #tpu.memory_space<vmem>>, vector<1x4x32xf32>
    %770 = vector.shape_cast %769 : vector<1x4x32xf32> to vector<4x32xf32>
    %771 = vector.extract_strided_slice %770 {offsets = [0, 0], sizes = [4, 1], strides = [1, 1]} : vector<4x32xf32> to vector<4x1xf32>
    %772 = vector.extract_strided_slice %604 {offsets = [0, 0], sizes = [1, 1], strides = [1, 1]} : vector<32x1xf32> to vector<1x1xf32>
    %773 = vector.broadcast %772 : vector<1x1xf32> to vector<4x1xf32>
    %774 = arith.mulf %771, %773 : vector<4x1xf32>
    %775 = vector.extract_strided_slice %770 {offsets = [0, 1], sizes = [4, 1], strides = [1, 1]} : vector<4x32xf32> to vector<4x1xf32>
    %776 = vector.extract_strided_slice %604 {offsets = [1, 0], sizes = [1, 1], strides = [1, 1]} : vector<32x1xf32> to vector<1x1xf32>
    %777 = vector.broadcast %776 : vector<1x1xf32> to vector<4x1xf32>
    %778 = arith.mulf %775, %777 : vector<4x1xf32>
    %779 = arith.addf %774, %778 : vector<4x1xf32>
    %780 = vector.extract_strided_slice %770 {offsets = [0, 2], sizes = [4, 1], strides = [1, 1]} : vector<4x32xf32> to vector<4x1xf32>
    %781 = vector.extract_strided_slice %604 {offsets = [2, 0], sizes = [1, 1], strides = [1, 1]} : vector<32x1xf32> to vector<1x1xf32>
    %782 = vector.broadcast %781 : vector<1x1xf32> to vector<4x1xf32>
    %783 = arith.mulf %780, %782 : vector<4x1xf32>
    %784 = arith.addf %779, %783 : vector<4x1xf32>
    %785 = vector.extract_strided_slice %770 {offsets = [0, 3], sizes = [4, 1], strides = [1, 1]} : vector<4x32xf32> to vector<4x1xf32>
    %786 = vector.extract_strided_slice %604 {offsets = [3, 0], sizes = [1, 1], strides = [1, 1]} : vector<32x1xf32> to vector<1x1xf32>
    %787 = vector.broadcast %786 : vector<1x1xf32> to vector<4x1xf32>
    %788 = arith.mulf %785, %787 : vector<4x1xf32>
    %789 = arith.addf %784, %788 : vector<4x1xf32>
    %790 = vector.extract_strided_slice %770 {offsets = [0, 4], sizes = [4, 1], strides = [1, 1]} : vector<4x32xf32> to vector<4x1xf32>
    %791 = vector.extract_strided_slice %604 {offsets = [4, 0], sizes = [1, 1], strides = [1, 1]} : vector<32x1xf32> to vector<1x1xf32>
    %792 = vector.broadcast %791 : vector<1x1xf32> to vector<4x1xf32>
    %793 = arith.mulf %790, %792 : vector<4x1xf32>
    %794 = arith.addf %789, %793 : vector<4x1xf32>
    %795 = vector.extract_strided_slice %770 {offsets = [0, 5], sizes = [4, 1], strides = [1, 1]} : vector<4x32xf32> to vector<4x1xf32>
    %796 = vector.extract_strided_slice %604 {offsets = [5, 0], sizes = [1, 1], strides = [1, 1]} : vector<32x1xf32> to vector<1x1xf32>
    %797 = vector.broadcast %796 : vector<1x1xf32> to vector<4x1xf32>
    %798 = arith.mulf %795, %797 : vector<4x1xf32>
    %799 = arith.addf %794, %798 : vector<4x1xf32>
    %800 = vector.extract_strided_slice %770 {offsets = [0, 6], sizes = [4, 1], strides = [1, 1]} : vector<4x32xf32> to vector<4x1xf32>
    %801 = vector.extract_strided_slice %604 {offsets = [6, 0], sizes = [1, 1], strides = [1, 1]} : vector<32x1xf32> to vector<1x1xf32>
    %802 = vector.broadcast %801 : vector<1x1xf32> to vector<4x1xf32>
    %803 = arith.mulf %800, %802 : vector<4x1xf32>
    %804 = arith.addf %799, %803 : vector<4x1xf32>
    %805 = vector.extract_strided_slice %770 {offsets = [0, 7], sizes = [4, 1], strides = [1, 1]} : vector<4x32xf32> to vector<4x1xf32>
    %806 = vector.extract_strided_slice %604 {offsets = [7, 0], sizes = [1, 1], strides = [1, 1]} : vector<32x1xf32> to vector<1x1xf32>
    %807 = vector.broadcast %806 : vector<1x1xf32> to vector<4x1xf32>
    %808 = arith.mulf %805, %807 : vector<4x1xf32>
    %809 = arith.addf %804, %808 : vector<4x1xf32>
    %810 = vector.extract_strided_slice %770 {offsets = [0, 8], sizes = [4, 1], strides = [1, 1]} : vector<4x32xf32> to vector<4x1xf32>
    %811 = vector.extract_strided_slice %604 {offsets = [8, 0], sizes = [1, 1], strides = [1, 1]} : vector<32x1xf32> to vector<1x1xf32>
    %812 = vector.broadcast %811 : vector<1x1xf32> to vector<4x1xf32>
    %813 = arith.mulf %810, %812 : vector<4x1xf32>
    %814 = arith.addf %809, %813 : vector<4x1xf32>
    %815 = vector.extract_strided_slice %770 {offsets = [0, 9], sizes = [4, 1], strides = [1, 1]} : vector<4x32xf32> to vector<4x1xf32>
    %816 = vector.extract_strided_slice %604 {offsets = [9, 0], sizes = [1, 1], strides = [1, 1]} : vector<32x1xf32> to vector<1x1xf32>
    %817 = vector.broadcast %816 : vector<1x1xf32> to vector<4x1xf32>
    %818 = arith.mulf %815, %817 : vector<4x1xf32>
    %819 = arith.addf %814, %818 : vector<4x1xf32>
    %820 = vector.extract_strided_slice %770 {offsets = [0, 10], sizes = [4, 1], strides = [1, 1]} : vector<4x32xf32> to vector<4x1xf32>
    %821 = vector.extract_strided_slice %604 {offsets = [10, 0], sizes = [1, 1], strides = [1, 1]} : vector<32x1xf32> to vector<1x1xf32>
    %822 = vector.broadcast %821 : vector<1x1xf32> to vector<4x1xf32>
    %823 = arith.mulf %820, %822 : vector<4x1xf32>
    %824 = arith.addf %819, %823 : vector<4x1xf32>
    %825 = vector.extract_strided_slice %770 {offsets = [0, 11], sizes = [4, 1], strides = [1, 1]} : vector<4x32xf32> to vector<4x1xf32>
    %826 = vector.extract_strided_slice %604 {offsets = [11, 0], sizes = [1, 1], strides = [1, 1]} : vector<32x1xf32> to vector<1x1xf32>
    %827 = vector.broadcast %826 : vector<1x1xf32> to vector<4x1xf32>
    %828 = arith.mulf %825, %827 : vector<4x1xf32>
    %829 = arith.addf %824, %828 : vector<4x1xf32>
    %830 = vector.extract_strided_slice %770 {offsets = [0, 12], sizes = [4, 1], strides = [1, 1]} : vector<4x32xf32> to vector<4x1xf32>
    %831 = vector.extract_strided_slice %604 {offsets = [12, 0], sizes = [1, 1], strides = [1, 1]} : vector<32x1xf32> to vector<1x1xf32>
    %832 = vector.broadcast %831 : vector<1x1xf32> to vector<4x1xf32>
    %833 = arith.mulf %830, %832 : vector<4x1xf32>
    %834 = arith.addf %829, %833 : vector<4x1xf32>
    %835 = vector.extract_strided_slice %770 {offsets = [0, 13], sizes = [4, 1], strides = [1, 1]} : vector<4x32xf32> to vector<4x1xf32>
    %836 = vector.extract_strided_slice %604 {offsets = [13, 0], sizes = [1, 1], strides = [1, 1]} : vector<32x1xf32> to vector<1x1xf32>
    %837 = vector.broadcast %836 : vector<1x1xf32> to vector<4x1xf32>
    %838 = arith.mulf %835, %837 : vector<4x1xf32>
    %839 = arith.addf %834, %838 : vector<4x1xf32>
    %840 = vector.extract_strided_slice %770 {offsets = [0, 14], sizes = [4, 1], strides = [1, 1]} : vector<4x32xf32> to vector<4x1xf32>
    %841 = vector.extract_strided_slice %604 {offsets = [14, 0], sizes = [1, 1], strides = [1, 1]} : vector<32x1xf32> to vector<1x1xf32>
    %842 = vector.broadcast %841 : vector<1x1xf32> to vector<4x1xf32>
    %843 = arith.mulf %840, %842 : vector<4x1xf32>
    %844 = arith.addf %839, %843 : vector<4x1xf32>
    %845 = vector.extract_strided_slice %770 {offsets = [0, 15], sizes = [4, 1], strides = [1, 1]} : vector<4x32xf32> to vector<4x1xf32>
    %846 = vector.extract_strided_slice %604 {offsets = [15, 0], sizes = [1, 1], strides = [1, 1]} : vector<32x1xf32> to vector<1x1xf32>
    %847 = vector.broadcast %846 : vector<1x1xf32> to vector<4x1xf32>
    %848 = arith.mulf %845, %847 : vector<4x1xf32>
    %849 = arith.addf %844, %848 : vector<4x1xf32>
    %850 = vector.extract_strided_slice %770 {offsets = [0, 16], sizes = [4, 1], strides = [1, 1]} : vector<4x32xf32> to vector<4x1xf32>
    %851 = vector.extract_strided_slice %604 {offsets = [16, 0], sizes = [1, 1], strides = [1, 1]} : vector<32x1xf32> to vector<1x1xf32>
    %852 = vector.broadcast %851 : vector<1x1xf32> to vector<4x1xf32>
    %853 = arith.mulf %850, %852 : vector<4x1xf32>
    %854 = arith.addf %849, %853 : vector<4x1xf32>
    %855 = vector.extract_strided_slice %770 {offsets = [0, 17], sizes = [4, 1], strides = [1, 1]} : vector<4x32xf32> to vector<4x1xf32>
    %856 = vector.extract_strided_slice %604 {offsets = [17, 0], sizes = [1, 1], strides = [1, 1]} : vector<32x1xf32> to vector<1x1xf32>
    %857 = vector.broadcast %856 : vector<1x1xf32> to vector<4x1xf32>
    %858 = arith.mulf %855, %857 : vector<4x1xf32>
    %859 = arith.addf %854, %858 : vector<4x1xf32>
    %860 = vector.extract_strided_slice %770 {offsets = [0, 18], sizes = [4, 1], strides = [1, 1]} : vector<4x32xf32> to vector<4x1xf32>
    %861 = vector.extract_strided_slice %604 {offsets = [18, 0], sizes = [1, 1], strides = [1, 1]} : vector<32x1xf32> to vector<1x1xf32>
    %862 = vector.broadcast %861 : vector<1x1xf32> to vector<4x1xf32>
    %863 = arith.mulf %860, %862 : vector<4x1xf32>
    %864 = arith.addf %859, %863 : vector<4x1xf32>
    %865 = vector.extract_strided_slice %770 {offsets = [0, 19], sizes = [4, 1], strides = [1, 1]} : vector<4x32xf32> to vector<4x1xf32>
    %866 = vector.extract_strided_slice %604 {offsets = [19, 0], sizes = [1, 1], strides = [1, 1]} : vector<32x1xf32> to vector<1x1xf32>
    %867 = vector.broadcast %866 : vector<1x1xf32> to vector<4x1xf32>
    %868 = arith.mulf %865, %867 : vector<4x1xf32>
    %869 = arith.addf %864, %868 : vector<4x1xf32>
    %870 = vector.extract_strided_slice %770 {offsets = [0, 20], sizes = [4, 1], strides = [1, 1]} : vector<4x32xf32> to vector<4x1xf32>
    %871 = vector.extract_strided_slice %604 {offsets = [20, 0], sizes = [1, 1], strides = [1, 1]} : vector<32x1xf32> to vector<1x1xf32>
    %872 = vector.broadcast %871 : vector<1x1xf32> to vector<4x1xf32>
    %873 = arith.mulf %870, %872 : vector<4x1xf32>
    %874 = arith.addf %869, %873 : vector<4x1xf32>
    %875 = vector.extract_strided_slice %770 {offsets = [0, 21], sizes = [4, 1], strides = [1, 1]} : vector<4x32xf32> to vector<4x1xf32>
    %876 = vector.extract_strided_slice %604 {offsets = [21, 0], sizes = [1, 1], strides = [1, 1]} : vector<32x1xf32> to vector<1x1xf32>
    %877 = vector.broadcast %876 : vector<1x1xf32> to vector<4x1xf32>
    %878 = arith.mulf %875, %877 : vector<4x1xf32>
    %879 = arith.addf %874, %878 : vector<4x1xf32>
    %880 = vector.extract_strided_slice %770 {offsets = [0, 22], sizes = [4, 1], strides = [1, 1]} : vector<4x32xf32> to vector<4x1xf32>
    %881 = vector.extract_strided_slice %604 {offsets = [22, 0], sizes = [1, 1], strides = [1, 1]} : vector<32x1xf32> to vector<1x1xf32>
    %882 = vector.broadcast %881 : vector<1x1xf32> to vector<4x1xf32>
    %883 = arith.mulf %880, %882 : vector<4x1xf32>
    %884 = arith.addf %879, %883 : vector<4x1xf32>
    %885 = vector.extract_strided_slice %770 {offsets = [0, 23], sizes = [4, 1], strides = [1, 1]} : vector<4x32xf32> to vector<4x1xf32>
    %886 = vector.extract_strided_slice %604 {offsets = [23, 0], sizes = [1, 1], strides = [1, 1]} : vector<32x1xf32> to vector<1x1xf32>
    %887 = vector.broadcast %886 : vector<1x1xf32> to vector<4x1xf32>
    %888 = arith.mulf %885, %887 : vector<4x1xf32>
    %889 = arith.addf %884, %888 : vector<4x1xf32>
    %890 = vector.extract_strided_slice %770 {offsets = [0, 24], sizes = [4, 1], strides = [1, 1]} : vector<4x32xf32> to vector<4x1xf32>
    %891 = vector.extract_strided_slice %604 {offsets = [24, 0], sizes = [1, 1], strides = [1, 1]} : vector<32x1xf32> to vector<1x1xf32>
    %892 = vector.broadcast %891 : vector<1x1xf32> to vector<4x1xf32>
    %893 = arith.mulf %890, %892 : vector<4x1xf32>
    %894 = arith.addf %889, %893 : vector<4x1xf32>
    %895 = vector.extract_strided_slice %770 {offsets = [0, 25], sizes = [4, 1], strides = [1, 1]} : vector<4x32xf32> to vector<4x1xf32>
    %896 = vector.extract_strided_slice %604 {offsets = [25, 0], sizes = [1, 1], strides = [1, 1]} : vector<32x1xf32> to vector<1x1xf32>
    %897 = vector.broadcast %896 : vector<1x1xf32> to vector<4x1xf32>
    %898 = arith.mulf %895, %897 : vector<4x1xf32>
    %899 = arith.addf %894, %898 : vector<4x1xf32>
    %900 = vector.extract_strided_slice %770 {offsets = [0, 26], sizes = [4, 1], strides = [1, 1]} : vector<4x32xf32> to vector<4x1xf32>
    %901 = vector.extract_strided_slice %604 {offsets = [26, 0], sizes = [1, 1], strides = [1, 1]} : vector<32x1xf32> to vector<1x1xf32>
    %902 = vector.broadcast %901 : vector<1x1xf32> to vector<4x1xf32>
    %903 = arith.mulf %900, %902 : vector<4x1xf32>
    %904 = arith.addf %899, %903 : vector<4x1xf32>
    %905 = vector.extract_strided_slice %770 {offsets = [0, 27], sizes = [4, 1], strides = [1, 1]} : vector<4x32xf32> to vector<4x1xf32>
    %906 = vector.extract_strided_slice %604 {offsets = [27, 0], sizes = [1, 1], strides = [1, 1]} : vector<32x1xf32> to vector<1x1xf32>
    %907 = vector.broadcast %906 : vector<1x1xf32> to vector<4x1xf32>
    %908 = arith.mulf %905, %907 : vector<4x1xf32>
    %909 = arith.addf %904, %908 : vector<4x1xf32>
    %910 = vector.extract_strided_slice %770 {offsets = [0, 28], sizes = [4, 1], strides = [1, 1]} : vector<4x32xf32> to vector<4x1xf32>
    %911 = vector.extract_strided_slice %604 {offsets = [28, 0], sizes = [1, 1], strides = [1, 1]} : vector<32x1xf32> to vector<1x1xf32>
    %912 = vector.broadcast %911 : vector<1x1xf32> to vector<4x1xf32>
    %913 = arith.mulf %910, %912 : vector<4x1xf32>
    %914 = arith.addf %909, %913 : vector<4x1xf32>
    %915 = vector.extract_strided_slice %770 {offsets = [0, 29], sizes = [4, 1], strides = [1, 1]} : vector<4x32xf32> to vector<4x1xf32>
    %916 = vector.extract_strided_slice %604 {offsets = [29, 0], sizes = [1, 1], strides = [1, 1]} : vector<32x1xf32> to vector<1x1xf32>
    %917 = vector.broadcast %916 : vector<1x1xf32> to vector<4x1xf32>
    %918 = arith.mulf %915, %917 : vector<4x1xf32>
    %919 = arith.addf %914, %918 : vector<4x1xf32>
    %920 = vector.extract_strided_slice %770 {offsets = [0, 30], sizes = [4, 1], strides = [1, 1]} : vector<4x32xf32> to vector<4x1xf32>
    %921 = vector.extract_strided_slice %604 {offsets = [30, 0], sizes = [1, 1], strides = [1, 1]} : vector<32x1xf32> to vector<1x1xf32>
    %922 = vector.broadcast %921 : vector<1x1xf32> to vector<4x1xf32>
    %923 = arith.mulf %920, %922 : vector<4x1xf32>
    %924 = arith.addf %919, %923 : vector<4x1xf32>
    %925 = vector.extract_strided_slice %770 {offsets = [0, 31], sizes = [4, 1], strides = [1, 1]} : vector<4x32xf32> to vector<4x1xf32>
    %926 = vector.extract_strided_slice %604 {offsets = [31, 0], sizes = [1, 1], strides = [1, 1]} : vector<32x1xf32> to vector<1x1xf32>
    %927 = vector.broadcast %926 : vector<1x1xf32> to vector<4x1xf32>
    %928 = arith.mulf %925, %927 : vector<4x1xf32>
    %929 = arith.addf %924, %928 : vector<4x1xf32>
    %c1_162 = arith.constant 1 : index
    %c0_163 = arith.constant 0 : index
    %c0_164 = arith.constant 0 : index
    %930 = vector.load %arg10[%c1_162, %c0_163, %c0_164] : memref<2x4x1xf32, #tpu.memory_space<vmem>>, vector<1x4x1xf32>
    %931 = vector.shape_cast %930 : vector<1x4x1xf32> to vector<4x1xf32>
    %932 = arith.addf %929, %931 : vector<4x1xf32>
    %933 = arith.maximumf %768, %932 : vector<4x1xf32>
    %934 = arith.subf %768, %933 : vector<4x1xf32>
    %935 = math.exp %934 : vector<4x1xf32>
    %936 = arith.subf %932, %933 : vector<4x1xf32>
    %937 = math.exp %936 : vector<4x1xf32>
    %938 = arith.addf %935, %937 : vector<4x1xf32>
    %939 = tpu.reciprocal %938 {approx = true} : vector<4x1xf32> -> vector<4x1xf32>
    %940 = arith.mulf %938, %939 : vector<4x1xf32>
    %cst_165 = arith.constant 2.000000e+00 : f32
    %941 = vector.broadcast %cst_165 : f32 to vector<4x1xf32>
    %942 = arith.subf %941, %940 : vector<4x1xf32>
    %943 = arith.mulf %939, %942 : vector<4x1xf32>
    %944 = arith.mulf %935, %943 : vector<4x1xf32>
    %c0_166 = arith.constant 0 : index
    %c0_167 = arith.constant 0 : index
    %c0_168 = arith.constant 0 : index
    %945 = vector.load %arg13[%c0_166, %c0_167, %c0_168] : memref<2x4x384xf32, #tpu.memory_space<vmem>>, vector<1x4x384xf32>
    %946 = vector.shape_cast %945 : vector<1x4x384xf32> to vector<4x384xf32>
    %947 = vector.broadcast %944 : vector<4x1xf32> to vector<4x384xf32>
    %948 = arith.mulf %947, %946 : vector<4x384xf32>
    %949 = arith.mulf %937, %943 : vector<4x1xf32>
    %c1_169 = arith.constant 1 : index
    %c0_170 = arith.constant 0 : index
    %c0_171 = arith.constant 0 : index
    %950 = vector.load %arg13[%c1_169, %c0_170, %c0_171] : memref<2x4x384xf32, #tpu.memory_space<vmem>>, vector<1x4x384xf32>
    %951 = vector.shape_cast %950 : vector<1x4x384xf32> to vector<4x384xf32>
    %952 = vector.broadcast %949 : vector<4x1xf32> to vector<4x384xf32>
    %953 = arith.mulf %952, %951 : vector<4x384xf32>
    %954 = arith.addf %948, %953 : vector<4x384xf32>
    %c0_172 = arith.constant 0 : index
    %c0_173 = arith.constant 0 : index
    %c0_174 = arith.constant 0 : index
    %955 = vector.load %arg11[%c0_172, %c0_173, %c0_174] : memref<1x4x384xf32, #tpu.memory_space<vmem>>, vector<1x4x384xf32>
    %956 = vector.shape_cast %955 : vector<1x4x384xf32> to vector<4x384xf32>
    %957 = vector.shape_cast %954 : vector<4x384xf32> to vector<1x4x384xf32>
    tpu.vector_store %arg11[%c0_172, %c0_173, %c0_174], %957 {strides = array<i32>} : memref<1x4x384xf32, #tpu.memory_space<vmem>>, vector<1x4x384xf32>,
    return
  }
  func.func @transform_0(%arg0: i32) -> (i32, i32, i32) {
    %c0_i32 = arith.constant 0 : i32
    %c0_i32_0 = arith.constant 0 : i32
    %c0_i32_1 = arith.constant 0 : i32
    return %arg0, %c0_i32, %c0_i32_0 : i32, i32, i32
  }
  func.func @transform_1(%arg0: i32) -> (i32, i32, i32) {
    %c0_i32 = arith.constant 0 : i32
    %c0_i32_0 = arith.constant 0 : i32
    %c0_i32_1 = arith.constant 0 : i32
    %c0_i32_2 = arith.constant 0 : i32
    return %c0_i32, %c0_i32_0, %c0_i32_1 : i32, i32, i32
  }
  func.func @transform_2(%arg0: i32) -> (i32, i32, i32) {
    %c0_i32 = arith.constant 0 : i32
    %c0_i32_0 = arith.constant 0 : i32
    %c0_i32_1 = arith.constant 0 : i32
    %c0_i32_2 = arith.constant 0 : i32
    return %c0_i32, %c0_i32_0, %c0_i32_1 : i32, i32, i32
  }
  func.func @transform_3(%arg0: i32) -> (i32, i32, i32) {
    %c0_i32 = arith.constant 0 : i32
    %c0_i32_0 = arith.constant 0 : i32
    %c0_i32_1 = arith.constant 0 : i32
    %c0_i32_2 = arith.constant 0 : i32
    return %c0_i32, %c0_i32_0, %c0_i32_1 : i32, i32, i32
  }
  func.func @transform_4(%arg0: i32) -> (i32, i32) {
    %c0_i32 = arith.constant 0 : i32
    %c0_i32_0 = arith.constant 0 : i32
    %c0_i32_1 = arith.constant 0 : i32
    return %c0_i32, %c0_i32_0 : i32, i32
  }
  func.func @transform_5(%arg0: i32) -> (i32, i32) {
    %c0_i32 = arith.constant 0 : i32
    %c0_i32_0 = arith.constant 0 : i32
    %c0_i32_1 = arith.constant 0 : i32
    return %c0_i32, %c0_i32_0 : i32, i32
  }
  func.func @transform_6(%arg0: i32) -> (i32, i32) {
    %c0_i32 = arith.constant 0 : i32
    %c0_i32_0 = arith.constant 0 : i32
    %c0_i32_1 = arith.constant 0 : i32
    return %c0_i32, %c0_i32_0 : i32, i32
  }
  func.func @transform_7(%arg0: i32) -> (i32, i32) {
    %c0_i32 = arith.constant 0 : i32
    %c0_i32_0 = arith.constant 0 : i32
    %c0_i32_1 = arith.constant 0 : i32
    return %c0_i32, %c0_i32_0 : i32, i32
  }
  func.func @transform_8(%arg0: i32) -> (i32, i32, i32) {
    %c0_i32 = arith.constant 0 : i32
    %c0_i32_0 = arith.constant 0 : i32
    %c0_i32_1 = arith.constant 0 : i32
    %c0_i32_2 = arith.constant 0 : i32
    return %c0_i32, %c0_i32_0, %c0_i32_1 : i32, i32, i32
  }
  func.func @transform_9(%arg0: i32) -> (i32, i32, i32) {
    %c0_i32 = arith.constant 0 : i32
    %c0_i32_0 = arith.constant 0 : i32
    %c0_i32_1 = arith.constant 0 : i32
    %c0_i32_2 = arith.constant 0 : i32
    return %c0_i32, %c0_i32_0, %c0_i32_1 : i32, i32, i32
  }
  func.func @transform_10(%arg0: i32) -> (i32, i32, i32) {
    %c0_i32 = arith.constant 0 : i32
    %c0_i32_0 = arith.constant 0 : i32
    %c0_i32_1 = arith.constant 0 : i32
    return %arg0, %c0_i32, %c0_i32_0 : i32, i32, i32
  }
}

</mosaic_0001>

<bundles_post_ra>
// kernel: tpu_custom_call.1
= control target key start
LH: loop header
LB: loop body
LE: loop exit
PB: predicated region body
PF: predicated region fallthrough
CT: control target
= control target key end

     0   :  { %15 = vsyncpa [#allocation5], 0  ;;  %s7059_s0 = inlined_call_operand.vmem [shape: f32[2,4,256], index: 0, kind: input, shape index: {}]   ;;  %s7060_s1 = inlined_call_operand.vmem [shape: f32[2,4,36], index: 1, kind: input, shape index: {}]   ;;  %s7061_s2 = inlined_call_operand.vmem [shape: f32[2,4,1], index: 2, kind: input, shape index: {}]   ;;  %s7062_s3 = inlined_call_operand.vmem [shape: f32[2,4,1], index: 3, kind: input, shape index: {}]   ;;  %s7063_s4 = inlined_call_operand.vmem [shape: f32[1,384], index: 4, kind: input, shape index: {}]   ;;  %s7064_s5 = inlined_call_operand.vmem [shape: f32[32,4], index: 5, kind: input, shape index: {}]   ;;  %s7065_s6 = inlined_call_operand.vmem [shape: f32[32,1], index: 6, kind: input, shape index: {}]   ;;  %s7066_s7 = inlined_call_operand.vmem [shape: f32[32,1], index: 7, kind: input, shape index: {}]   ;;  %s7067_s8 = inlined_call_operand.vmem [shape: f32[2,4,32], index: 8, kind: input, shape index: {}]   ;;  %s7068_s9 = inlined_call_operand.vmem [shape: f32[2,4,1], index: 9, kind: input, shape index: {}]   ;;  %s7069_s10 = inlined_call_operand.hbm [shape: f32[2,4,384], index: 10, kind: output, shape index: {}]  }
   0x1   :  { %17 = vsyncpa [#allocation5 + $0x1], 0  ;;  %s4475_s13 = smov 0   ;;  %s4477_s14 = smov 0  }
   0x2   :  { %s4479_s15 = smov 0   ;;  %s4481_s16 = smov 0  }
   0x3 LB: > { %s4496_s17 = sadd.s32 4294967295, %s4301_s16   ;;  %s3982_s18 = sadd.s32 4294967294, %s4301_s16   ;;  %s4301_s16 = sphi %s4481_s16, %s7574_s16   ;;  %s4297_s15 = sphi %s4479_s15, %s7573_s15   ;;  %s4293_s14 = sphi %s4477_s14, %s7572_s14   ;;  %s4289_s13 = sphi %s4475_s13, %s7571_s13  }
   0x4   : > { %s4500_s19 = sadd.s32 1, %s4301_s16   ;;  %s245_s20 = sadd.s32 1, %s4297_s15 }
   0x5   : > { %s242_s21 = ssub.s32 %s4301_s16, %s4500_s19  ;;  %p255_p0 = scmp.ne.s32.totalorder %s4297_s15, %s4293_s14 }
   0x6   : > { %p243_p1 = scmp.eq.s32.totalorder %s242_s21, 0  ;;  %p256_p2 = scmp.eq.s32.totalorder %s4496_s17, 1 }
   0x7   : > { %p261_p3 = scmp.ne.s32.totalorder %s4293_s14, %s4289_s13  ;;  %p262_p4 = scmp.eq.s32.totalorder %s3982_s18, 1 }
   0x8   : > { %s4511_s22 = scalar_select %p243_p1, %s4297_s15, %s245_s20  }
   0x9   : > { %p4513_p5 = por %p256_p2, %p255_p0  ;;  %p4517_p6 = por %p262_p4, %p261_p3 }
   0xa   : > { %p3985_p7 = scmp.ge.s32.totalorder %s4301_s16, 1  ;;  %p315_p8 = scmp.lt.s32.totalorder %s4301_s16, 3 }
   0xc   : > { %p316_p9 = pnand %p3985_p7, %p315_p8 }
   0xe   : > { %319 = sbr.rel (%p316_p9) target bundleno = 4913 (0x1331), region = 60 }
  0x15   : > { %p353_p10 = scmp.lt.s32.totalorder %s4496_s17, 1  ;;  %v7070_v0 = vmov 3   ;;  %v7072_v1 = vmov 1   ;;  %vm358_vm0 = vcmask 355328   ;;  %vm360_vm1 = vcmask 519648   ;;  %s4306_s30 = smov 52  }
  0x16   : > { %4156 = vset.pattern.permute.xlu0 %v7070_v0  ;;  %4154 = vset.pattern.permute.xlu1 %v7072_v1  ;;  %vm362_vm2 = vcmask 683648   ;;  %v4305_v2 = vmov 0.0   ;;  %vm364_vm3 = vcmask 847648   ;;  %vm366_vm4 = vcmask 1011648   ;;  %s4307_s11 = smov 44   ;;  %s4308_s12 = smov 56  }
  0x17   : > { %s354_s25 = scalar_select %p353_p10, %s4496_s17, 1  ;;  %359 = vst.msk [vmem:[#allocation2] sm:$0xf] %vm358_vm0, %v4305_v2  ;;  %vm368_vm5 = vcmask 126048   ;;  %vm370_vm6 = vcmask 290048   ;;  %vm372_vm7 = vcmask 454048   ;;  %v526_v52 = vlaneseq }
  0x18   : > { %361 = vst.msk [vmem:[#allocation2] sm:$0xf] %vm360_vm1, %v4305_v2  ;;  %s4309_s18 = smov 48   ;;  %vm374_vm8 = vcmask 618048   ;;  %s4310_s20 = smov 64   ;;  %vm376_vm9 = vcmask 782048  }
  0x19   : > { %s3996_s26 = sshll.u32 %s354_s25, 3  ;;  %363 = vst.msk [vmem:[#allocation2] sm:$0xf] %vm362_vm2, %v4305_v2  ;;  %s4311_s21 = smov 60   ;;  %vm378_vm10 = vcmask 946048   ;;  %vm380_vm11 = vcmask 60448  }
  0x1a   : > { %s4530_s29 = scalar_lea.vmem %s7059_s0, %s3996_s26  ;;  %365 = vst.msk [vmem:[#allocation2] sm:$0xf] %vm364_vm3, %v4305_v2  ;;  %vm382_vm12 = vcmask 224448   ;;  %vm384_vm13 = vcmask 388448   ;;  %vm386_vm14 = vcmask 552448   ;;  %vm390_vm15 = vcmask 1044288  }
  0x1b   : > { %v408_v3 = vld [vmem:[%s4530_s29] sm:$0xf]  ;;  %367 = vst.msk [vmem:[#allocation2] sm:$0xf] %vm366_vm4, %v4305_v2  ;;  %vm388_vm0 = vcmask 716448   ;;  %vm391_vm1 = vcmask 1047556  }
  0x1c   : > { %v394_v4 = vld [vmem:[%s4530_s29] sm:$0xf]  ;;  %410 = vrot.lane.b32.xlu1 %v408_v3, %s4306_s30  ;;  %369 = vst.msk [vmem:[#allocation2 + $0x4] sm:$0xf] %vm368_vm5, %v4305_v2  ;;  %s4312_s25 = smov 72   ;;  %s4313_s26 = smov 68   ;;  %vm392_vm2 = vmor %vm391_vm1, %vm390_vm15 }
  0x1d   : > { %396 = vrot.lane.b32.xlu0 %v394_v4, %s4307_s11  ;;  %v415_v5 = vld [vmem:[%s4530_s29] sm:$0xf]  ;;  %371 = vst.msk [vmem:[#allocation2 + $0x4] sm:$0xf] %vm370_vm6, %v4305_v2  ;;  %v462_v11 = vld [vmem:[%s4530_s29 + $0x4] sm:$0xf] }
  0x1e   : > { %v401_v6 = vld [vmem:[%s4530_s29] sm:$0xf]  ;;  %373 = vst.msk [vmem:[#allocation2 + $0x4] sm:$0xf] %vm372_vm7, %v4305_v2  ;;  %v455_v12 = vld [vmem:[%s4530_s29 + $0x4] sm:$0xf] }
  0x1f   : > { %v434_v7 = vld [vmem:[%s4530_s29] sm:$0xf]  ;;  %375 = vst.msk [vmem:[#allocation2 + $0x4] sm:$0xf] %vm374_vm8, %v4305_v2  ;;  %s4314_s27 = smov 80   ;;  %s4315_s28 = smov 76  }
  0x20   : > { %417 = vrot.lane.b32.xlu1 %v415_v5, %s4308_s12  ;;  %v422_v8 = vld [vmem:[%s4530_s29] sm:$0xf]  ;;  %381 = vst.msk [vmem:[#allocation2 + $0x8] sm:$0xf] %vm380_vm11, %v4305_v2  ;;  %v481_v13 = vld [vmem:[%s4530_s29 + $0x4] sm:$0xf] }
  0x21   : > { %403 = vrot.lane.b32.xlu0 %v401_v6, %s4309_s18  ;;  %v448_v9 = vld [vmem:[%s4530_s29] sm:$0xf]  ;;  %377 = vst.msk [vmem:[#allocation2 + $0x4] sm:$0xf] %vm376_vm9, %v4305_v2  ;;  %v469_v14 = vld [vmem:[%s4530_s29 + $0x4] sm:$0xf] }
  0x22   : > { %v441_v10 = vld [vmem:[%s4530_s29] sm:$0xf]  ;;  %383 = vst.msk [vmem:[#allocation2 + $0x8] sm:$0xf] %vm382_vm12, %v4305_v2  ;;  %s4316_s30 = smov 88   ;;  %s4317_s12 = smov 84  }
  0x23   : > { %379 = vst.msk [vmem:[#allocation2 + $0x4] sm:$0xf] %vm378_vm10, %v4305_v2  ;;  %v495_v15 = vld [vmem:[%s4530_s29 + $0x4] sm:$0xf]  ;;  %v4558_v19 = vld [vmem:[%s7060_s1] sm:$0xf] }
  0x24   : > { %436 = vrot.lane.b32.xlu1 %v434_v7, %s4310_s20  ;;  %385 = vst.msk [vmem:[#allocation2 + $0x8] sm:$0xf] %vm384_vm13, %v4305_v2  ;;  %v488_v16 = vld [vmem:[%s4530_s29 + $0x4] sm:$0xf]  ;;  %s4318_s20 = smov 96   ;;  %v7071_v20 = vmov 2  }
  0x25   : > { %424 = vrot.lane.b32.xlu0 %v422_v8, %s4311_s21  ;;  %387 = vst.msk [vmem:[#allocation2 + $0x8] sm:$0xf] %vm386_vm14, %v4305_v2  ;;  %s4319_s21 = smov 92   ;;  %v509_v17 = vld [vmem:[%s4530_s29 + $0x4] sm:$0xf]  ;;  %v7089_v21 = vmov 6  }
  0x26   : > { %389 = vst.msk [vmem:[#allocation2 + $0x8] sm:$0xf] %vm388_vm0, %v4305_v2  ;;  %v502_v18 = vld [vmem:[%s4530_s29 + $0x4] sm:$0xf]  ;;  %v7091_v22 = vmov 4   ;;  %v7088_v23 = vmov 7  }
  0x27   : > { %393 = vst.msk [vmem:[#allocation2 + $0x8] sm:$0xff] %vm392_vm2, %v4305_v2  ;;  %v7090_v24 = vmov 5   ;;  %v7086_v25 = vmov 8   ;;  %v7085_v26 = vmov 9   ;;  %v7084_v27 = vmov 10   ;;  %s4334_s29 = smov 127  }
  0x28   : > { %450 = vrot.lane.b32.xlu1 %v448_v9, %s4312_s25  ;;  %s7139_s25 = smov 104   ;;  %v7093_v28 = vmov 11   ;;  %v7083_v29 = vmov 12   ;;  %v7081_v30 = vmov 13   ;;  %v7080_v31 = vmov 14  }
  0x29   : > { %443 = vrot.lane.b32.xlu0 %v441_v10, %s4313_s26  ;;  %s7125_s26 = smov 100   ;;  %vm399_vm3 = vcmask 486752   ;;  %vm406_vm4 = vcmask 650752   ;;  %vm413_vm5 = vcmask 814752   ;;  %vm420_vm6 = vcmask 978752  }
  0x2a   : > { %vm430_vm7 = vcmask 1044448   ;;  %vm431_vm8 = vcmask 97284   ;;  %vm427_vm9 = vcmask 490496   ;;  %vm439_vm11 = vcmask 257152  }
  0x2b   : > { %vm432_vm10 = vmor %vm431_vm8, %vm430_vm7  ;;  %vm446_vm12 = vcmask 421152   ;;  %vm453_vm13 = vcmask 585152   ;;  %vm460_vm14 = vcmask 749152   ;;  %vm467_vm15 = vcmask 913152  }
  0x2c   : > { %464 = vrot.lane.b32.xlu1 %v462_v11, %s4314_s27  ;;  %vm477_vm0 = vcmask 1044384   ;;  %vm478_vm1 = vcmask 31748   ;;  %vm474_vm2 = vcmask 687104   ;;  %vm507_vm7 = vcmask 683552   ;;  %s7219_s27 = smov 107  }
  0x2d   : > { %457 = vrot.lane.b32.xlu0 %v455_v12, %s4315_s28  ;;  %vm514_vm8 = vcmask 847552   ;;  %v527_v53 = vshrl.u32 %v526_v52, 7  ;;  %s7141_s28 = smov 106  }
  0x2f   : > { %v4588_v55 = vsub.s32 0, %v527_v53  ;;  %v4590_v56 = vsub.s32 4, %v527_v53  ;;  %v4598_v62 = vsub.s32 1, %v527_v53  ;;  %v4600_v63 = vsub.s32 5, %v527_v53 }
  0x30   : > { %483 = vrot.lane.b32.xlu1 %v481_v13, %s4316_s30  ;;  %v4610_v6 = vsub.s32 2, %v527_v53  ;;  %v4622_v12 = vsub.s32 6, %v527_v53 }
  0x31   : > { %471 = vrot.lane.b32.xlu0 %v469_v14, %s4317_s12  ;;  %7227 = vst [vmem:[#allocation7_spill] sm:$0xff] %v4588_v55  ;;  %7228 = vst [vmem:[#allocation8_spill] sm:$0xff] %v4590_v56 }
  0x32   : > { %7229 = vst [vmem:[#allocation9_spill] sm:$0xff] %v4598_v62  ;;  %7230 = vst [vmem:[#allocation10_spill] sm:$0xff] %v4600_v63 }
  0x33   : > { %7231 = vst [vmem:[#allocation11_spill] sm:$0xff] %v4610_v6  ;;  %7232 = vst [vmem:[#allocation12_spill] sm:$0xff] %v4622_v12 }
  0x34   : > { %497 = vrot.lane.b32.xlu1 %v495_v15, %s4318_s20  ;;  %s4335_s20 = smov 126  }
  0x35   : > { %490 = vrot.lane.b32.xlu0 %v488_v16, %s4319_s21  ;;  %s7185_s21 = smov 108  }
  0x38   : > { %511 = vrot.lane.b32.xlu1 %v509_v17, %s7139_s25  ;;  %s4359_s25 = smov 86  }
  0x39   : > { %504 = vrot.lane.b32.xlu0 %v502_v18, %s7125_s26  ;;  %s4354_s26 = smov 87  }
  0x3c   : > { %571 = vperm.xlu1 %4154, %v4558_v19  }
  0x3d   : > { %667 = vperm.xlu0 %4156, %v4558_v19  }
  0x40   : > { %4155 = vset.pattern.permute.xlu1 %v7071_v20 }
  0x41   : > { %4159 = vset.pattern.permute.xlu0 %v7089_v21  ;;  %619 = vperm.xlu1 %4155, %v4558_v19  }
  0x42   : > { %778 = vperm.xlu0 %4159, %v4558_v19  }
  0x45   : > { %4157 = vset.pattern.permute.xlu1 %v7091_v22 }
  0x46   : > { %4160 = vset.pattern.permute.xlu0 %v7088_v23  ;;  %715 = vperm.xlu1 %4157, %v4558_v19   ;;  %v7092_v23 = vmov 24  }
  0x47   : > { %809 = vperm.xlu0 %4160, %v4558_v19  }
  0x4a   : > { %4158 = vset.pattern.permute.xlu1 %v7090_v24 }
  0x4b   : > { %4161 = vset.pattern.permute.xlu0 %v7086_v25  ;;  %747 = vperm.xlu1 %4158, %v4558_v19  }
  0x4c   : > { %840 = vperm.xlu0 %4161, %v4558_v19  }
  0x50   : > { %4162 = vset.pattern.permute.xlu0 %v7085_v26 }
  0x51   : > { %872 = vperm.xlu0 %4162, %v4558_v19  }
  0x55   : > { %4163 = vset.pattern.permute.xlu0 %v7084_v27 }
  0x56   : > { %903 = vperm.xlu0 %4163, %v4558_v19  }
  0x5a   : > { %4164 = vset.pattern.permute.xlu0 %v7093_v28  ;;  %v7100_v28 = vmov 25  }
  0x5b   : > { %934 = vperm.xlu0 %4164, %v4558_v19  }
  0x5f   : > { %4165 = vset.pattern.permute.xlu0 %v7083_v29  ;;  %v7087_v29 = vmov 23  }
  0x60   : > { %965 = vperm.xlu0 %4165, %v4558_v19  }
  0x64   : > { %4166 = vset.pattern.permute.xlu0 %v7081_v30 }
  0x65   : > { %997 = vperm.xlu0 %4166, %v4558_v19  }
  0x69   : > { %4167 = vset.pattern.permute.xlu0 %v7080_v31 }
  0x8e   : > { %v411_v32 = vpop.permute.xlu1 %410 }
  0x8f   : > { %v397_v33 = vpop.permute.xlu0 %396 }
  0x90   : > { %400 = vst.msk [vmem:[#allocation2] sm:$0xf] %vm399_vm3, %v397_v33  ;;  %vm479_vm3 = vmor %vm478_vm1, %vm477_vm0  ;;  %v4641_v33 = vsub.s32 3, %v527_v53  ;;  %vm1609_vm0 = vcmask 703488   ;;  %vm1750_vm1 = vcmask 1043456  }
  0x92   : > { %v418_v34 = vpop.permute.xlu1 %417  ;;  %7233 = vst [vmem:[#allocation13_spill] sm:$0xff] %v4641_v33 }
  0x93   : > { %v404_v35 = vpop.permute.xlu0 %403 }
  0x94   : > { %407 = vst.msk [vmem:[#allocation2] sm:$0xf] %vm406_vm4, %v404_v35  ;;  %vm486_vm4 = vcmask 191552  }
  0x95   : > { %414 = vst.msk [vmem:[#allocation2] sm:$0xf] %vm413_vm5, %v411_v32  ;;  %vm493_vm5 = vcmask 355552  }
  0x96   : > { %421 = vst.msk [vmem:[#allocation2] sm:$0xf] %vm420_vm6, %v418_v34  ;;  %v437_v36 = vpop.permute.xlu1 %436  ;;  %vm500_vm6 = vcmask 519552  }
  0x97   : > { %v425_v37 = vpop.permute.xlu0 %424 }
  0x98   : > { %v426_v38 = vrot.slane %v425_v37, 4 }
  0x9a   : > { %v428_v39 = vsel %vm427_vm9, %v426_v38, %v425_v37  ;;  %v451_v40 = vpop.permute.xlu1 %450  ;;  %vm734_vm9 = vcmask 1039360  }
  0x9b   : > { %433 = vst.msk [vmem:[#allocation2] sm:$0xff] %vm432_vm10, %v428_v39  ;;  %v444_v41 = vpop.permute.xlu0 %443  ;;  %vm859_vm10 = vcmask 1031168  }
  0x9c   : > { %440 = vst.msk [vmem:[#allocation2 + $0x4] sm:$0xf] %vm439_vm11, %v437_v36  ;;  %vm984_vm11 = vcmask 883712  }
  0x9d   : > { %447 = vst.msk [vmem:[#allocation2 + $0x4] sm:$0xf] %vm446_vm12, %v444_v41  ;;  %vm1109_vm12 = vcmask 875520  }
  0x9e   : > { %454 = vst.msk [vmem:[#allocation2 + $0x4] sm:$0xf] %vm453_vm13, %v451_v40  ;;  %v465_v42 = vpop.permute.xlu1 %464  ;;  %vm1234_vm13 = vcmask 867328  }
  0x9f   : > { %v458_v43 = vpop.permute.xlu0 %457 }
  0xa0   : > { %461 = vst.msk [vmem:[#allocation2 + $0x4] sm:$0xf] %vm460_vm14, %v458_v43  ;;  %vm1359_vm14 = vcmask 719872  }
  0xa1   : > { %468 = vst.msk [vmem:[#allocation2 + $0x4] sm:$0xf] %vm467_vm15, %v465_v42  ;;  %v4661_v42 = vsub.s32 7, %v527_v53  ;;  %vm1484_vm15 = vcmask 711680  }
  0xa2   : > { %v484_v44 = vpop.permute.xlu1 %483 }
  0xa3   : > { %v472_v45 = vpop.permute.xlu0 %471  ;;  %7234 = vst [vmem:[#allocation14_spill] sm:$0xff] %v4661_v42 }
  0xa4   : > { %v473_v46 = vrot.slane %v472_v45, 4 }
  0xa6   : > { %v475_v47 = vsel %vm474_vm2, %v473_v46, %v472_v45  ;;  %v498_v48 = vpop.permute.xlu1 %497 }
  0xa7   : > { %480 = vst.msk [vmem:[#allocation2 + $0x4] sm:$0xff] %vm479_vm3, %v475_v47  ;;  %v491_v49 = vpop.permute.xlu0 %490  ;;  %vm1778_vm3 = vcmask 171008  }
  0xa8   : > { %487 = vst.msk [vmem:[#allocation2 + $0x8] sm:$0xf] %vm486_vm4, %v484_v44  ;;  %vm2254_vm4 = vcmask 1014784  }
  0xa9   : > { %494 = vst.msk [vmem:[#allocation2 + $0x8] sm:$0xf] %vm493_vm5, %v491_v49  ;;  %vm2719_vm5 = vcmask 392192  }
  0xaa   : > { %501 = vst.msk [vmem:[#allocation2 + $0x8] sm:$0xf] %vm500_vm6, %v498_v48  ;;  %v512_v50 = vpop.permute.xlu1 %511  ;;  %vm2953_vm6 = vcmask 359424  }
  0xab   : > { %v505_v51 = vpop.permute.xlu0 %504 }
  0xac   : > { %508 = vst.msk [vmem:[#allocation2 + $0x8] sm:$0xf] %vm507_vm7, %v505_v51 }
  0xad   : > { %515 = vst.msk [vmem:[#allocation2 + $0x8] sm:$0xf] %vm514_vm8, %v512_v50 }
  0xae   : > { %v517_v57 = vld [vmem:[#allocation2] sm:$0xff] }
  0xaf   : > { %v533_v60 = vrot.slane %v517_v57, %v4590_v56  ;;  %v529_v61 = vrot.slane %v517_v57, %v4588_v55  ;;  %v577_v4 = vrot.slane %v517_v57, %v4598_v62  ;;  %v581_v5 = vrot.slane %v517_v57, %v4600_v63 }
  0xb0   : > { %v625_v15 = vrot.slane %v517_v57, %v4610_v6  ;;  %v629_v34 = vrot.slane %v517_v57, %v4622_v12  ;;  %v673_v41 = vrot.slane %v517_v57, %v4641_v33  ;;  %v677_v49 = vrot.slane %v517_v57, %v4661_v42 }
  0xb1   : > { %v4603_v2 = vrot.slane %v533_v60, %v4588_v55  ;;  %v4606_v3 = vrot.slane %v529_v61, %v4588_v55  ;;  %v4627_v13 = vrot.slane %v577_v4, %v4598_v62  ;;  %v4630_v14 = vrot.slane %v581_v5, %v4598_v62 }
  0xb2   : > { %v4649_v37 = vrot.slane %v625_v15, %v4610_v6  ;;  %v4669_v45 = vrot.slane %v629_v34, %v4610_v6  ;;  %v4683_v51 = vrot.slane %v673_v41, %v4641_v33  ;;  %v4697_v61 = vrot.slane %v677_v49, %v4641_v33 }
  0xb4   : > { %v4614_v8 = vld [vmem:[#allocation2 + $0x8] sm:$0xff] }
  0xb5   : > { %v541_v16 = vrot.slane %v4614_v8, %v4590_v56  ;;  %v585_v36 = vrot.slane %v4614_v8, %v4598_v62  ;;  %v633_v44 = vrot.slane %v4614_v8, %v4610_v6  ;;  %v681_v50 = vrot.slane %v4614_v8, %v4641_v33 }
  0xb6   : > { %v537_v5 = vrot.slane %v4614_v8, %v4588_v55 }
  0xb7   : > { %v4654_v38 = vrot.slane %v541_v16, %v4588_v55  ;;  %v4664_v43 = vrot.slane %v585_v36, %v4598_v62  ;;  %v4686_v52 = vrot.slane %v633_v44, %v4610_v6  ;;  %v4700_v4 = vrot.slane %v681_v50, %v4641_v33 }
  0xb8   : > { %v4713_v15 = vrot.slane %v537_v5, %v4588_v55 }
  0xbb   : > { %v4586_v54 = vpop.permute.xlu1 %571 }
  0xbc   : > { %v4592_v58 = vpop.permute.xlu0 %667 }
  0xc0   : > { %v4594_v59 = vpop.permute.xlu1 %619 }
  0xc1   : > { %v4616_v9 = vpop.permute.xlu0 %778 }
  0xc2   : > { %v781_v40 = vmul.f32 %v4616_v9, %v4649_v37  ;;  %v782_v48 = vmul.f32 %v4616_v9, %v4669_v45  ;;  %v783_v53 = vmul.f32 %v4616_v9, %v4686_v52 }
  0xc5   : > { %v4612_v7 = vpop.permute.xlu1 %715 }
  0xc6   : > { %v719_v10 = vmul.f32 %v4612_v7, %v4603_v2  ;;  %v718_v11 = vmul.f32 %v4612_v7, %v4606_v3  ;;  %v4644_v35 = vpop.permute.xlu0 %809  ;;  %v721_v39 = vmul.f32 %v4612_v7, %v4654_v38 }
  0xc7   : > { %v812_v60 = vmul.f32 %v4644_v35, %v4683_v51 }
  0xc8   : > { %728 = vrot.lane.b32.xlu0 %v719_v10, %s4334_s29  ;;  %726 = vrot.lane.b32.xlu1 %v718_v11, %s4334_s29  ;;  %v814_v10 = vmul.f32 %v4644_v35, %v4700_v4  ;;  %v813_v11 = vmul.f32 %v4644_v35, %v4697_v61 }
  0xca   : > { %v4635_v17 = vpop.permute.xlu1 %747 }
  0xcb   : > { %v750_v18 = vmul.f32 %v4635_v17, %v4627_v13  ;;  %v751_v32 = vmul.f32 %v4635_v17, %v4630_v14  ;;  %v4673_v46 = vpop.permute.xlu0 %840  ;;  %v752_v47 = vmul.f32 %v4635_v17, %v4664_v43 }
  0xcc   : > { %v844_v34 = vmul.f32 %v4673_v46, %v4603_v2 }
  0xcd   : > { %758 = vrot.lane.b32.xlu0 %v750_v18, %s4334_s29  ;;  %760 = vrot.lane.b32.xlu1 %v751_v32, %s4334_s29  ;;  %v845_v18 = vmul.f32 %v4673_v46, %v4713_v15  ;;  %v843_v32 = vmul.f32 %v4673_v46, %v4606_v3 }
  0xd0   : > { %v4694_v57 = vpop.permute.xlu0 %872 }
  0xd1   : > { %732 = vrot.lane.b32.xlu0 %v721_v39, %s4334_s29  ;;  %789 = vrot.lane.b32.xlu1 %v781_v40, %s4334_s29  ;;  %v877_v36 = vmul.f32 %v4694_v57, %v4664_v43  ;;  %v875_v40 = vmul.f32 %v4694_v57, %v4627_v13 }
  0xd5   : > { %762 = vrot.lane.b32.xlu0 %v752_v47, %s4334_s29  ;;  %791 = vrot.lane.b32.xlu1 %v782_v48, %s4334_s29  ;;  %v904_v16 = vpop.permute.xlu0 %903  ;;  %v876_v47 = vmul.f32 %v4694_v57, %v4630_v14 }
  0xd6   : > { %v908_v41 = vmul.f32 %v904_v16, %v4686_v52  ;;  %v906_v49 = vmul.f32 %v904_v16, %v4649_v37 }
  0xd9   : > { %793 = vrot.lane.b32.xlu0 %v783_v53, %s4334_s29  ;;  %820 = vrot.lane.b32.xlu1 %v812_v60, %s4334_s29  ;;  %v907_v60 = vmul.f32 %v904_v16, %v4669_v45 }
  0xda   : > { %v935_v39 = vpop.permute.xlu0 %934 }
  0xdb   : > { %v939_v48 = vmul.f32 %v935_v39, %v4700_v4 }
  0xdd   : > { %824 = vrot.lane.b32.xlu0 %v814_v10, %s4334_s29  ;;  %822 = vrot.lane.b32.xlu1 %v813_v11, %s4334_s29  ;;  %v937_v10 = vmul.f32 %v935_v39, %v4683_v51  ;;  %v938_v11 = vmul.f32 %v935_v39, %v4697_v61 }
  0xdf   : > { %v966_v44 = vpop.permute.xlu0 %965 }
  0xe0   : > { %v970_v50 = vmul.f32 %v966_v44, %v4713_v15 }
  0xe1   : > { %855 = vrot.lane.b32.xlu0 %v845_v18, %s4335_s20  ;;  %851 = vrot.lane.b32.xlu1 %v843_v32, %s4335_s20  ;;  %v7078_v18 = vmov 15   ;;  %v968_v32 = vmul.f32 %v966_v44, %v4606_v3 }
  0xe4   : > { %v998_v53 = vpop.permute.xlu0 %997 }
  0xe5   : > { %853 = vrot.lane.b32.xlu1 %v844_v34, %s4335_s20  ;;  %887 = vrot.lane.b32.xlu0 %v877_v36, %s4335_s20  ;;  %v1002_v5 = vmul.f32 %v998_v53, %v4664_v43  ;;  %v969_v34 = vmul.f32 %v966_v44, %v4603_v2  ;;  %v1000_v36 = vmul.f32 %v998_v53, %v4627_v13 }
  0xe9   : > { %883 = vrot.lane.b32.xlu1 %v875_v40, %s4335_s20  ;;  %918 = vrot.lane.b32.xlu0 %v908_v41, %s4335_s20  ;;  %v589_v40 = vrot.slane %v4614_v8, %v4600_v63  ;;  %v720_v41 = vmul.f32 %v4612_v7, %v4713_v15  ;;  %v7109_v63 = vmov 26  }
  0xed   : > { %885 = vrot.lane.b32.xlu1 %v876_v47, %s4335_s20  ;;  %949 = vrot.lane.b32.xlu0 %v939_v48, %s4335_s20  ;;  %v4762_v47 = vrot.slane %v589_v40, %v4598_v62  ;;  %v637_v48 = vrot.slane %v4614_v8, %v4622_v12  ;;  %v7115_v62 = vmov 27  }
  0xf1   : > { %914 = vrot.lane.b32.xlu1 %v906_v49, %s4335_s20  ;;  %980 = vrot.lane.b32.xlu0 %v970_v50, %s7185_s21  ;;  %v753_v49 = vmul.f32 %v4635_v17, %v4762_v47  ;;  %v685_v50 = vrot.slane %v4614_v8, %v4661_v42  ;;  %v846_v8 = vmul.f32 %v4673_v46, %v4654_v38 }
  0xf2   : > { %v878_v17 = vmul.f32 %v4694_v57, %v4762_v47  ;;  %v1001_v46 = vmul.f32 %v998_v53, %v4630_v14  ;;  %v1003_v57 = vmul.f32 %v998_v53, %v4762_v47 }
  0xf5   : > { %916 = vrot.lane.b32.xlu1 %v907_v60, %s4335_s20  ;;  %1012 = vrot.lane.b32.xlu0 %v1002_v5, %s7185_s21  ;;  %v4772_v60 = vrot.slane %v637_v48, %v4610_v6  ;;  %v4778_v5 = vrot.slane %v685_v50, %v4641_v33 }
  0xf7   : > { %v784_v7 = vmul.f32 %v4616_v9, %v4772_v60  ;;  %v909_v9 = vmul.f32 %v904_v16, %v4772_v60 }
  0xf9   : > { %945 = vrot.lane.b32.xlu1 %v937_v10, %s4335_s20  ;;  %1028 = vperm.xlu0 %4167, %v4558_v19   ;;  %v815_v10 = vmul.f32 %v4644_v35, %v4778_v5  ;;  %v971_v35 = vmul.f32 %v966_v44, %v4654_v38 }
  0xfd   : > { %947 = vrot.lane.b32.xlu1 %v938_v11, %s4335_s20  ;;  %4168 = vset.pattern.permute.xlu0 %v7078_v18  ;;  %v940_v11 = vmul.f32 %v935_v39, %v4778_v5 }
 0x101   : > { %976 = vrot.lane.b32.xlu1 %v968_v32, %s7185_s21 }
 0x105   : > { %978 = vrot.lane.b32.xlu1 %v969_v34, %s7185_s21 }
 0x109   : > { %1008 = vrot.lane.b32.xlu1 %v1000_v36, %s7185_s21 }
 0x10d   : > { %730 = vrot.lane.b32.xlu1 %v720_v41, %s4334_s29 }
 0x111   : > { %764 = vrot.lane.b32.xlu1 %v753_v49, %s4334_s29 }
 0x115   : > { %795 = vrot.lane.b32.xlu1 %v784_v7, %s4334_s29 }
 0x119   : > { %826 = vrot.lane.b32.xlu1 %v815_v10, %s4334_s29 }
 0x11d   : > { %857 = vrot.lane.b32.xlu1 %v846_v8, %s4335_s20 }
 0x121   : > { %889 = vrot.lane.b32.xlu1 %v878_v17, %s4335_s20 }
 0x125   : > { %920 = vrot.lane.b32.xlu1 %v909_v9, %s4335_s20 }
 0x129   : > { %951 = vrot.lane.b32.xlu1 %v940_v11, %s4335_s20  ;;  %v7076_v11 = vmov 16  }
 0x12d   : > { %982 = vrot.lane.b32.xlu1 %v971_v35, %s7185_s21 }
 0x131   : > { %1010 = vrot.lane.b32.xlu1 %v1001_v46, %s7185_s21 }
 0x135   : > { %1014 = vrot.lane.b32.xlu1 %v1003_v57, %s7185_s21 }
 0x13a   : > { %v4800_v32 = vpop.permute.xlu0 %728  ;;  %v4908_v31 = vpop.permute.xlu1 %726 }
 0x13f   : > { %v4802_v16 = vpop.permute.xlu0 %758 }
 0x143   : > { %v4804_v34 = vpop.permute.xlu0 %732 }
 0x147   : > { %v4806_v39 = vpop.permute.xlu0 %762 }
 0x14b   : > { %v4808_v36 = vpop.permute.xlu0 %793 }
 0x14f   : > { %v4810_v44 = vpop.permute.xlu0 %824 }
 0x153   : > { %v4812_v40 = vpop.permute.xlu0 %855 }
 0x157   : > { %v4814_v41 = vpop.permute.xlu0 %887 }
 0x15b   : > { %v4816_v48 = vpop.permute.xlu0 %918 }
 0x15f   : > { %v4818_v53 = vpop.permute.xlu0 %949 }
 0x163   : > { %v4820_v49 = vpop.permute.xlu0 %980 }
 0x164   : > { %7235 = vst [vmem:[#allocation15_spill] sm:$0xff] %v4820_v49 }
 0x167   : > { %v4822_v50 = vpop.permute.xlu0 %1012 }
 0x168   : > { %7236 = vst [vmem:[#allocation16_spill] sm:$0xff] %v4822_v50 }
 0x178   : > { %v1029_v7 = vpop.permute.xlu0 %1028 }
 0x179   : > { %v1033_v10 = vmul.f32 %v1029_v7, %v4686_v52  ;;  %v1031_v8 = vmul.f32 %v1029_v7, %v4649_v37  ;;  %v1032_v17 = vmul.f32 %v1029_v7, %v4669_v45  ;;  %v1034_v9 = vmul.f32 %v1029_v7, %v4772_v60 }
 0x17b   : > { %1043 = vrot.lane.b32.xlu0 %v1033_v10, %s7185_s21  ;;  %1039 = vrot.lane.b32.xlu1 %v1031_v8, %s7185_s21 }
 0x17f   : > { %1059 = vperm.xlu0 %4168, %v4558_v19   ;;  %1041 = vrot.lane.b32.xlu1 %v1032_v17, %s7185_s21  ;;  %v7074_v17 = vmov 17  }
 0x183   : > { %1045 = vrot.lane.b32.xlu1 %v1034_v9, %s7185_s21  ;;  %4169 = vset.pattern.permute.xlu0 %v7076_v11 }
 0x1ed   : > { %v4834_v35 = vpop.permute.xlu0 %1043 }
 0x1ee   : > { %7237 = vst [vmem:[#allocation17_spill] sm:$0xff] %v4834_v35 }
 0x1fe   : > { %v1060_v46 = vpop.permute.xlu0 %1059 }
 0x1ff   : > { %v1064_v57 = vmul.f32 %v1060_v46, %v4700_v4  ;;  %v1062_v10 = vmul.f32 %v1060_v46, %v4683_v51  ;;  %v1063_v8 = vmul.f32 %v1060_v46, %v4697_v61  ;;  %v1065_v7 = vmul.f32 %v1060_v46, %v4778_v5 }
 0x201   : > { %1074 = vrot.lane.b32.xlu0 %v1064_v57, %s7185_s21  ;;  %1070 = vrot.lane.b32.xlu1 %v1062_v10, %s7185_s21 }
 0x205   : > { %1090 = vperm.xlu0 %4169, %v4558_v19   ;;  %1072 = vrot.lane.b32.xlu1 %v1063_v8, %s7185_s21 }
 0x209   : > { %1076 = vrot.lane.b32.xlu1 %v1065_v7, %s7185_s21  ;;  %4170 = vset.pattern.permute.xlu0 %v7074_v17  ;;  %v7073_v7 = vmov 18   ;;  %s4363_s21 = smov 21  }
 0x273   : > { %v4846_v9 = vpop.permute.xlu0 %1074 }
 0x274   : > { %7238 = vst [vmem:[#allocation18_spill] sm:$0xff] %v4846_v9 }
 0x284   : > { %v1091_v0 = vpop.permute.xlu0 %1090 }
 0x285   : > { %v1095_v57 = vmul.f32 %v1091_v0, %v4713_v15  ;;  %v1093_v10 = vmul.f32 %v1091_v0, %v4606_v3  ;;  %v1094_v8 = vmul.f32 %v1091_v0, %v4603_v2  ;;  %v1096_v46 = vmul.f32 %v1091_v0, %v4654_v38 }
 0x287   : > { %1105 = vrot.lane.b32.xlu0 %v1095_v57, %s7219_s27  ;;  %1101 = vrot.lane.b32.xlu1 %v1093_v10, %s7219_s27 }
 0x28b   : > { %1122 = vperm.xlu0 %4170, %v4558_v19   ;;  %1103 = vrot.lane.b32.xlu1 %v1094_v8, %s7219_s27 }
 0x28f   : > { %1107 = vrot.lane.b32.xlu1 %v1096_v46, %s7219_s27  ;;  %4171 = vset.pattern.permute.xlu0 %v7073_v7  ;;  %v7075_v46 = vmov 19  }
 0x2f9   : > { %v4858_v20 = vpop.permute.xlu0 %1105 }
 0x2fa   : > { %7239 = vst [vmem:[#allocation19_spill] sm:$0xff] %v4858_v20 }
 0x30a   : > { %v1123_v1 = vpop.permute.xlu0 %1122 }
 0x30b   : > { %v1127_v57 = vmul.f32 %v1123_v1, %v4664_v43  ;;  %v1125_v10 = vmul.f32 %v1123_v1, %v4627_v13  ;;  %v1126_v8 = vmul.f32 %v1123_v1, %v4630_v14  ;;  %v1128_v0 = vmul.f32 %v1123_v1, %v4762_v47 }
 0x30d   : > { %1137 = vrot.lane.b32.xlu0 %v1127_v57, %s7219_s27  ;;  %1133 = vrot.lane.b32.xlu1 %v1125_v10, %s7219_s27 }
 0x311   : > { %1153 = vperm.xlu0 %4171, %v4558_v19   ;;  %1135 = vrot.lane.b32.xlu1 %v1126_v8, %s7219_s27 }
 0x315   : > { %1139 = vrot.lane.b32.xlu1 %v1128_v0, %s7219_s27  ;;  %4172 = vset.pattern.permute.xlu0 %v7075_v46  ;;  %v7077_v0 = vmov 20  }
 0x37f   : > { %v4870_v7 = vpop.permute.xlu0 %1137 }
 0x380   : > { %7240 = vst [vmem:[#allocation20_spill] sm:$0xff] %v4870_v7 }
 0x390   : > { %v1154_v17 = vpop.permute.xlu0 %1153 }
 0x391   : > { %v1158_v57 = vmul.f32 %v1154_v17, %v4686_v52  ;;  %v1156_v10 = vmul.f32 %v1154_v17, %v4649_v37  ;;  %v1157_v8 = vmul.f32 %v1154_v17, %v4669_v45  ;;  %v1159_v1 = vmul.f32 %v1154_v17, %v4772_v60 }
 0x393   : > { %1168 = vrot.lane.b32.xlu0 %v1158_v57, %s7219_s27  ;;  %1164 = vrot.lane.b32.xlu1 %v1156_v10, %s7219_s27 }
 0x397   : > { %1184 = vperm.xlu0 %4172, %v4558_v19   ;;  %1166 = vrot.lane.b32.xlu1 %v1157_v8, %s7219_s27 }
 0x39b   : > { %1170 = vrot.lane.b32.xlu1 %v1159_v1, %s7219_s27  ;;  %4173 = vset.pattern.permute.xlu0 %v7077_v0  ;;  %v7079_v1 = vmov 21  }
 0x405   : > { %v4882_v46 = vpop.permute.xlu0 %1168 }
 0x406   : > { %7241 = vst [vmem:[#allocation21_spill] sm:$0xff] %v4882_v46 }
 0x416   : > { %v1185_v11 = vpop.permute.xlu0 %1184 }
 0x417   : > { %v1189_v57 = vmul.f32 %v1185_v11, %v4700_v4  ;;  %v1187_v10 = vmul.f32 %v1185_v11, %v4683_v51  ;;  %v1188_v8 = vmul.f32 %v1185_v11, %v4697_v61  ;;  %v1190_v17 = vmul.f32 %v1185_v11, %v4778_v5 }
 0x419   : > { %1199 = vrot.lane.b32.xlu0 %v1189_v57, %s7219_s27  ;;  %1195 = vrot.lane.b32.xlu1 %v1187_v10, %s7219_s27 }
 0x41d   : > { %1215 = vperm.xlu0 %4173, %v4558_v19   ;;  %1197 = vrot.lane.b32.xlu1 %v1188_v8, %s7219_s27 }
 0x421   : > { %1201 = vrot.lane.b32.xlu1 %v1190_v17, %s7219_s27  ;;  %4174 = vset.pattern.permute.xlu0 %v7079_v1  ;;  %v7082_v17 = vmov 22  }
 0x48b   : > { %v4894_v0 = vpop.permute.xlu0 %1199 }
 0x48c   : > { %7242 = vst [vmem:[#allocation22_spill] sm:$0xff] %v4894_v0 }
 0x49c   : > { %v1216_v18 = vpop.permute.xlu0 %1215 }
 0x49d   : > { %v1220_v57 = vmul.f32 %v1216_v18, %v4713_v15  ;;  %v1218_v10 = vmul.f32 %v1216_v18, %v4606_v3  ;;  %v1219_v8 = vmul.f32 %v1216_v18, %v4603_v2  ;;  %v1221_v11 = vmul.f32 %v1216_v18, %v4654_v38 }
 0x49f   : > { %1230 = vrot.lane.b32.xlu0 %v1220_v57, %s7141_s28  ;;  %1226 = vrot.lane.b32.xlu1 %v1218_v10, %s7141_s28 }
 0x4a3   : > { %1247 = vperm.xlu0 %4174, %v4558_v19   ;;  %1228 = vrot.lane.b32.xlu1 %v1219_v8, %s7141_s28  ;;  %v4914_v8 = vpop.permute.xlu1 %760 }
 0x4a7   : > { %1232 = vrot.lane.b32.xlu1 %v1221_v11, %s7141_s28  ;;  %4175 = vset.pattern.permute.xlu0 %v7082_v17  ;;  %v4920_v17 = vpop.permute.xlu1 %789 }
 0x511   : > { %v4906_v1 = vpop.permute.xlu0 %1230 }
 0x512   : > { %7243 = vst [vmem:[#allocation23_spill] sm:$0xff] %v4906_v1 }
 0x522   : > { %v1248_v57 = vpop.permute.xlu0 %1247 }
 0x523   : > { %v1252_v10 = vmul.f32 %v1248_v57, %v4664_v43  ;;  %v1250_v30 = vmul.f32 %v1248_v57, %v4627_v13  ;;  %v1251_v18 = vmul.f32 %v1248_v57, %v4630_v14  ;;  %v1253_v11 = vmul.f32 %v1248_v57, %v4762_v47 }
 0x525   : > { %1262 = vrot.lane.b32.xlu0 %v1252_v10, %s7141_s28  ;;  %1258 = vrot.lane.b32.xlu1 %v1250_v30, %s7141_s28  ;;  %v4926_v30 = vpop.permute.xlu1 %791 }
 0x529   : > { %1278 = vperm.xlu0 %4175, %v4558_v19   ;;  %1260 = vrot.lane.b32.xlu1 %v1251_v18, %s7141_s28  ;;  %v4932_v57 = vpop.permute.xlu1 %820 }
 0x52d   : > { %1264 = vrot.lane.b32.xlu1 %v1253_v11, %s7141_s28  ;;  %4176 = vset.pattern.permute.xlu0 %v7087_v29  ;;  %v4938_v29 = vpop.permute.xlu1 %822 }
 0x597   : > { %v4924_v10 = vpop.permute.xlu0 %1262 }
 0x598   : > { %7244 = vst [vmem:[#allocation24_spill] sm:$0xff] %v4924_v10 }
 0x5a8   : > { %v1279_v27 = vpop.permute.xlu0 %1278 }
 0x5a9   : > { %v1283_v26 = vmul.f32 %v1279_v27, %v4686_v52  ;;  %v1281_v25 = vmul.f32 %v1279_v27, %v4649_v37  ;;  %v1282_v18 = vmul.f32 %v1279_v27, %v4669_v45  ;;  %v1284_v11 = vmul.f32 %v1279_v27, %v4772_v60 }
 0x5ab   : > { %1293 = vrot.lane.b32.xlu0 %v1283_v26, %s7141_s28  ;;  %1289 = vrot.lane.b32.xlu1 %v1281_v25, %s7141_s28  ;;  %v4944_v25 = vpop.permute.xlu1 %851 }
 0x5af   : > { %1309 = vperm.xlu0 %4176, %v4558_v19   ;;  %1291 = vrot.lane.b32.xlu1 %v1282_v18, %s7141_s28  ;;  %v4950_v27 = vpop.permute.xlu1 %853 }
 0x5b3   : > { %1295 = vrot.lane.b32.xlu1 %v1284_v11, %s7141_s28  ;;  %4177 = vset.pattern.permute.xlu0 %v7092_v23  ;;  %v4956_v23 = vpop.permute.xlu1 %883 }
 0x61d   : > { %v4942_v26 = vpop.permute.xlu0 %1293 }
 0x61e   : > { %7245 = vst [vmem:[#allocation25_spill] sm:$0xff] %v4942_v26 }
 0x62e   : > { %v1310_v21 = vpop.permute.xlu0 %1309 }
 0x62f   : > { %v1314_v24 = vmul.f32 %v1310_v21, %v4700_v4  ;;  %v1312_v22 = vmul.f32 %v1310_v21, %v4683_v51  ;;  %v1313_v18 = vmul.f32 %v1310_v21, %v4697_v61  ;;  %v1315_v11 = vmul.f32 %v1310_v21, %v4778_v5 }
 0x631   : > { %1324 = vrot.lane.b32.xlu0 %v1314_v24, %s7141_s28  ;;  %1320 = vrot.lane.b32.xlu1 %v1312_v22, %s7141_s28  ;;  %v4962_v22 = vpop.permute.xlu1 %885 }
 0x635   : > { %1340 = vperm.xlu0 %4177, %v4558_v19   ;;  %1322 = vrot.lane.b32.xlu1 %v1313_v18, %s7141_s28  ;;  %v4968_v21 = vpop.permute.xlu1 %914 }
 0x639   : > { %1326 = vrot.lane.b32.xlu1 %v1315_v11, %s7141_s28  ;;  %4178 = vset.pattern.permute.xlu0 %v7100_v28  ;;  %v4974_v28 = vpop.permute.xlu1 %916  ;;  %s4367_s28 = smov 3  }
 0x6a3   : > { %v4960_v24 = vpop.permute.xlu0 %1324 }
 0x6a4   : > { %7246 = vst [vmem:[#allocation26_spill] sm:$0xff] %v4960_v24 }
 0x6b4   : > { %v1341_v33 = vpop.permute.xlu0 %1340 }
 0x6b5   : > { %v1345_v42 = vmul.f32 %v1341_v33, %v4713_v15  ;;  %v1343_v12 = vmul.f32 %v1341_v33, %v4606_v3  ;;  %v1344_v18 = vmul.f32 %v1341_v33, %v4603_v2  ;;  %v1346_v11 = vmul.f32 %v1341_v33, %v4654_v38 }
 0x6b7   : > { %1355 = vrot.lane.b32.xlu0 %v1345_v42, %s4316_s30  ;;  %1351 = vrot.lane.b32.xlu1 %v1343_v12, %s4316_s30  ;;  %v4980_v12 = vpop.permute.xlu1 %945 }
 0x6bb   : > { %1372 = vperm.xlu0 %4178, %v4558_v19   ;;  %1353 = vrot.lane.b32.xlu1 %v1344_v18, %s4316_s30  ;;  %v4986_v33 = vpop.permute.xlu1 %947 }
 0x6bf   : > { %1357 = vrot.lane.b32.xlu1 %v1346_v11, %s4316_s30  ;;  %4179 = vset.pattern.permute.xlu0 %v7109_v63  ;;  %v4992_v63 = vpop.permute.xlu1 %976 }
 0x6c0   : > { %7248 = vst [vmem:[#allocation28_spill] sm:$0xff] %v4992_v63 }
 0x729   : > { %v4978_v42 = vpop.permute.xlu0 %1355 }
 0x72a   : > { %7247 = vst [vmem:[#allocation27_spill] sm:$0xff] %v4978_v42 }
 0x73a   : > { %v1373_v56 = vpop.permute.xlu0 %1372 }
 0x73b   : > { %v1377_v6 = vmul.f32 %v1373_v56, %v4664_v43  ;;  %v1375_v55 = vmul.f32 %v1373_v56, %v4627_v13  ;;  %v1376_v18 = vmul.f32 %v1373_v56, %v4630_v14  ;;  %v1378_v11 = vmul.f32 %v1373_v56, %v4762_v47 }
 0x73d   : > { %1387 = vrot.lane.b32.xlu0 %v1377_v6, %s4316_s30  ;;  %1383 = vrot.lane.b32.xlu1 %v1375_v55, %s4316_s30  ;;  %v4998_v55 = vpop.permute.xlu1 %978 }
 0x73e   : > { %7250 = vst [vmem:[#allocation30_spill] sm:$0xff] %v4998_v55 }
 0x741   : > { %1403 = vperm.xlu0 %4179, %v4558_v19   ;;  %1385 = vrot.lane.b32.xlu1 %v1376_v18, %s4316_s30  ;;  %v5004_v56 = vpop.permute.xlu1 %1008 }
 0x742   : > { %7251 = vst [vmem:[#allocation31_spill] sm:$0xff] %v5004_v56 }
 0x745   : > { %1389 = vrot.lane.b32.xlu1 %v1378_v11, %s4316_s30  ;;  %4180 = vset.pattern.permute.xlu0 %v7115_v62  ;;  %v5010_v62 = vpop.permute.xlu1 %730 }
 0x7af   : > { %v4996_v6 = vpop.permute.xlu0 %1387 }
 0x7b0   : > { %7249 = vst [vmem:[#allocation29_spill] sm:$0xff] %v4996_v6  ;;  %v7120_v6 = vmov 28  }
 0x7c0   : > { %v1404_v42 = vpop.permute.xlu0 %1403 }
 0x7c1   : > { %v1408_v24 = vmul.f32 %v1404_v42, %v4686_v52  ;;  %v1406_v26 = vmul.f32 %v1404_v42, %v4649_v37  ;;  %v1407_v18 = vmul.f32 %v1404_v42, %v4669_v45  ;;  %v1409_v11 = vmul.f32 %v1404_v42, %v4772_v60 }
 0x7c3   : > { %1418 = vrot.lane.b32.xlu0 %v1408_v24, %s4316_s30  ;;  %1414 = vrot.lane.b32.xlu1 %v1406_v26, %s4316_s30  ;;  %v5016_v26 = vpop.permute.xlu1 %764 }
 0x7c7   : > { %1434 = vperm.xlu0 %4180, %v4558_v19   ;;  %1416 = vrot.lane.b32.xlu1 %v1407_v18, %s4316_s30  ;;  %v5022_v42 = vpop.permute.xlu1 %795 }
 0x7cb   : > { %1420 = vrot.lane.b32.xlu1 %v1409_v11, %s4316_s30  ;;  %4181 = vset.pattern.permute.xlu0 %v7120_v6  ;;  %v5028_v6 = vpop.permute.xlu1 %826 }
 0x835   : > { %v5014_v24 = vpop.permute.xlu0 %1418 }
 0x836   : > { %7252 = vst [vmem:[#allocation32_spill] sm:$0xff] %v5014_v24  ;;  %v7127_v24 = vmov 29  }
 0x846   : > { %v1435_v10 = vpop.permute.xlu0 %1434 }
 0x847   : > { %v1439_v1 = vmul.f32 %v1435_v10, %v4700_v4  ;;  %v1437_v0 = vmul.f32 %v1435_v10, %v4683_v51  ;;  %v1438_v18 = vmul.f32 %v1435_v10, %v4697_v61  ;;  %v1440_v11 = vmul.f32 %v1435_v10, %v4778_v5 }
 0x849   : > { %1449 = vrot.lane.b32.xlu0 %v1439_v1, %s4316_s30  ;;  %1445 = vrot.lane.b32.xlu1 %v1437_v0, %s4316_s30  ;;  %v5034_v0 = vpop.permute.xlu1 %857 }
 0x84d   : > { %1465 = vperm.xlu0 %4181, %v4558_v19   ;;  %1447 = vrot.lane.b32.xlu1 %v1438_v18, %s4316_s30  ;;  %v5040_v10 = vpop.permute.xlu1 %889 }
 0x851   : > { %1451 = vrot.lane.b32.xlu1 %v1440_v11, %s4316_s30  ;;  %4182 = vset.pattern.permute.xlu0 %v7127_v24  ;;  %v5046_v24 = vpop.permute.xlu1 %920 }
 0x8bb   : > { %v5032_v1 = vpop.permute.xlu0 %1449 }
 0x8bc   : > { %7253 = vst [vmem:[#allocation33_spill] sm:$0xff] %v5032_v1  ;;  %v7132_v1 = vmov 30  }
 0x8cc   : > { %v1466_v46 = vpop.permute.xlu0 %1465 }
 0x8cd   : > { %v1470_v7 = vmul.f32 %v1466_v46, %v4713_v15  ;;  %v1468_v20 = vmul.f32 %v1466_v46, %v4606_v3  ;;  %v1469_v18 = vmul.f32 %v1466_v46, %v4603_v2  ;;  %v1471_v11 = vmul.f32 %v1466_v46, %v4654_v38 }
 0x8cf   : > { %1480 = vrot.lane.b32.xlu0 %v1470_v7, %s4354_s26  ;;  %1476 = vrot.lane.b32.xlu1 %v1468_v20, %s4354_s26  ;;  %v5052_v20 = vpop.permute.xlu1 %951 }
 0x8d0   : > { %7255 = vst [vmem:[#allocation35_spill] sm:$0xff] %v5052_v20 }
 0x8d3   : > { %1497 = vperm.xlu0 %4182, %v4558_v19   ;;  %1478 = vrot.lane.b32.xlu1 %v1469_v18, %s4354_s26  ;;  %v5058_v46 = vpop.permute.xlu1 %982 }
 0x8d4   : > { %7256 = vst [vmem:[#allocation36_spill] sm:$0xff] %v5058_v46 }
 0x8d7   : > { %1482 = vrot.lane.b32.xlu1 %v1471_v11, %s4354_s26  ;;  %4183 = vset.pattern.permute.xlu0 %v7132_v1  ;;  %v5064_v1 = vpop.permute.xlu1 %1010 }
 0x8d8   : > { %7257 = vst [vmem:[#allocation37_spill] sm:$0xff] %v5064_v1 }
 0x8db   : > { %v5070_v56 = vpop.permute.xlu1 %1014 }
 0x8dc   : > { %7259 = vst [vmem:[#allocation39_spill] sm:$0xff] %v5070_v56 }
 0x941   : > { %v5050_v7 = vpop.permute.xlu0 %1480 }
 0x942   : > { %7254 = vst [vmem:[#allocation34_spill] sm:$0xff] %v5050_v7  ;;  %v7136_v7 = vmov 31  }
 0x952   : > { %v1498_v9 = vpop.permute.xlu0 %1497 }
 0x953   : > { %v1502_v35 = vmul.f32 %v1498_v9, %v4664_v43  ;;  %v1500_v50 = vmul.f32 %v1498_v9, %v4627_v13  ;;  %v1501_v18 = vmul.f32 %v1498_v9, %v4630_v14  ;;  %v1503_v11 = vmul.f32 %v1498_v9, %v4762_v47  ;;  %v5076_v9 = vpop.permute.xlu1 %1039 }
 0x954   : > { %7260 = vst [vmem:[#allocation40_spill] sm:$0xff] %v5076_v9 }
 0x955   : > { %1512 = vrot.lane.b32.xlu0 %v1502_v35, %s4354_s26  ;;  %1508 = vrot.lane.b32.xlu1 %v1500_v50, %s4354_s26 }
 0x959   : > { %1528 = vperm.xlu0 %4183, %v4558_v19   ;;  %1510 = vrot.lane.b32.xlu1 %v1501_v18, %s4354_s26 }
 0x95d   : > { %1514 = vrot.lane.b32.xlu1 %v1503_v11, %s4354_s26  ;;  %4184 = vset.pattern.permute.xlu0 %v7136_v7  ;;  %v5082_v7 = vpop.permute.xlu1 %1041 }
 0x95e   : > { %7261 = vst [vmem:[#allocation41_spill] sm:$0xff] %v5082_v7 }
 0x961   : > { %v5088_v56 = vpop.permute.xlu1 %1045 }
 0x962   : > { %7263 = vst [vmem:[#allocation43_spill] sm:$0xff] %v5088_v56 }
 0x9c7   : > { %v5068_v35 = vpop.permute.xlu0 %1512 }
 0x9c8   : > { %7258 = vst [vmem:[#allocation38_spill] sm:$0xff] %v5068_v35  ;;  %v7143_v35 = vmov 32  }
 0x9d8   : > { %v1529_v50 = vpop.permute.xlu0 %1528 }
 0x9d9   : > { %v1533_v46 = vmul.f32 %v1529_v50, %v4686_v52  ;;  %v1531_v49 = vmul.f32 %v1529_v50, %v4649_v37  ;;  %v1532_v18 = vmul.f32 %v1529_v50, %v4669_v45  ;;  %v1534_v11 = vmul.f32 %v1529_v50, %v4772_v60  ;;  %v5094_v50 = vpop.permute.xlu1 %1070 }
 0x9da   : > { %7264 = vst [vmem:[#allocation44_spill] sm:$0xff] %v5094_v50 }
 0x9db   : > { %1543 = vrot.lane.b32.xlu0 %v1533_v46, %s4354_s26  ;;  %1539 = vrot.lane.b32.xlu1 %v1531_v49, %s4354_s26 }
 0x9df   : > { %1559 = vperm.xlu0 %4184, %v4558_v19   ;;  %1541 = vrot.lane.b32.xlu1 %v1532_v18, %s4354_s26 }
 0x9e3   : > { %1545 = vrot.lane.b32.xlu1 %v1534_v11, %s4354_s26  ;;  %4185 = vset.pattern.permute.xlu0 %v7143_v35  ;;  %v4236_v11 = vld [vmem:[%s7060_s1] sm:$0xf] }
 0xa4d   : > { %v5086_v46 = vpop.permute.xlu0 %1543 }
 0xa4e   : > { %7262 = vst [vmem:[#allocation42_spill] sm:$0xff] %v5086_v46  ;;  %v5102_v46 = vpop.permute.xlu1 %1072 }
 0xa4f   : > { %7265 = vst [vmem:[#allocation45_spill] sm:$0xff] %v5102_v46 }
 0xa52   : > { %v5108_v56 = vpop.permute.xlu1 %1076 }
 0xa53   : > { %7267 = vst [vmem:[#allocation47_spill] sm:$0xff] %v5108_v56 }
 0xa5e   : > { %v1560_v49 = vpop.permute.xlu0 %1559 }
 0xa5f   : > { %v1564_v9 = vmul.f32 %v1560_v49, %v4700_v4  ;;  %v1562_v19 = vmul.f32 %v1560_v49, %v4683_v51  ;;  %v1563_v18 = vmul.f32 %v1560_v49, %v4697_v61  ;;  %v1565_v35 = vmul.f32 %v1560_v49, %v4778_v5  ;;  %v5114_v49 = vpop.permute.xlu1 %1101 }
 0xa60   : > { %7268 = vst [vmem:[#allocation48_spill] sm:$0xff] %v5114_v49 }
 0xa61   : > { %1574 = vrot.lane.b32.xlu0 %v1564_v9, %s4354_s26  ;;  %1570 = vrot.lane.b32.xlu1 %v1562_v19, %s4354_s26  ;;  %v7148_v9 = vmov 33  }
 0xa65   : > { %1590 = vperm.xlu0 %4185, %v4236_v11   ;;  %1572 = vrot.lane.b32.xlu1 %v1563_v18, %s4354_s26 }
 0xa69   : > { %1576 = vrot.lane.b32.xlu1 %v1565_v35, %s4354_s26  ;;  %4186 = vset.pattern.permute.xlu0 %v7148_v9  ;;  %v5119_v9 = vpop.permute.xlu1 %1103  ;;  %s7221_s26 = smov 124  }
 0xa6a   : > { %7269 = vst [vmem:[#allocation49_spill] sm:$0xff] %v5119_v9 }
 0xad3   : > { %v5106_v19 = vpop.permute.xlu0 %1574 }
 0xad4   : > { %7266 = vst [vmem:[#allocation46_spill] sm:$0xff] %v5106_v19  ;;  %v7152_v19 = vmov 34  }
 0xae4   : > { %v1591_v50 = vpop.permute.xlu0 %1590 }
 0xae5   : > { %v1595_v7 = vmul.f32 %v1591_v50, %v4713_v15  ;;  %v1593_v1 = vmul.f32 %v1591_v50, %v4606_v3  ;;  %v1594_v35 = vmul.f32 %v1591_v50, %v4603_v2  ;;  %v1596_v18 = vmul.f32 %v1591_v50, %v4654_v38 }
 0xae7   : > { %1605 = vrot.lane.b32.xlu0 %v1595_v7, %s4359_s25  ;;  %1601 = vrot.lane.b32.xlu1 %v1593_v1, %s4359_s25  ;;  %v5125_v1 = vpop.permute.xlu1 %1107 }
 0xae8   : > { %7271 = vst [vmem:[#allocation51_spill] sm:$0xff] %v5125_v1  ;;  %v7158_v1 = vmov 0  }
 0xae9   : > { %4190 = vset.pattern.permute.xlu1 %v7158_v1 }
 0xaeb   : > { %1622 = vperm.xlu0 %4186, %v4236_v11   ;;  %1603 = vrot.lane.b32.xlu1 %v1594_v35, %s4359_s25  ;;  %v5131_v50 = vpop.permute.xlu1 %1133 }
 0xaec   : > { %7272 = vst [vmem:[#allocation52_spill] sm:$0xff] %v5131_v50 }
 0xaef   : > { %1607 = vrot.lane.b32.xlu1 %v1596_v18, %s4359_s25  ;;  %4187 = vset.pattern.permute.xlu0 %v7152_v19  ;;  %v5136_v19 = vpop.permute.xlu1 %1135 }
 0xaf0   : > { %7273 = vst [vmem:[#allocation53_spill] sm:$0xff] %v5136_v19 }
 0xb59   : > { %v5123_v56 = vpop.permute.xlu0 %1605 }
 0xb5a   : > { %7270 = vst [vmem:[#allocation50_spill] sm:$0xff] %v5123_v56  ;;  %v7157_v56 = vmov 35  }
 0xb6a   : > { %v1623_v7 = vpop.permute.xlu0 %1622 }
 0xb6b   : > { %v1627_v49 = vmul.f32 %v1623_v7, %v4664_v43  ;;  %v1625_v46 = vmul.f32 %v1623_v7, %v4627_v13  ;;  %v1626_v35 = vmul.f32 %v1623_v7, %v4630_v14  ;;  %v1628_v18 = vmul.f32 %v1623_v7, %v4762_v47 }
 0xb6d   : > { %1637 = vrot.lane.b32.xlu0 %v1627_v49, %s4359_s25  ;;  %1633 = vrot.lane.b32.xlu1 %v1625_v46, %s4359_s25  ;;  %v5141_v46 = vpop.permute.xlu1 %1139 }
 0xb6e   : > { %7274 = vst [vmem:[#allocation54_spill] sm:$0xff] %v5141_v46 }
 0xb71   : > { %1653 = vperm.xlu0 %4187, %v4236_v11   ;;  %1635 = vrot.lane.b32.xlu1 %v1626_v35, %s4359_s25  ;;  %v5143_v49 = vpop.permute.xlu1 %1164 }
 0xb72   : > { %7275 = vst [vmem:[#allocation55_spill] sm:$0xff] %v5143_v49 }
 0xb75   : > { %1639 = vrot.lane.b32.xlu1 %v1628_v18, %s4359_s25  ;;  %4188 = vset.pattern.permute.xlu0 %v7157_v56  ;;  %v5145_v50 = vpop.permute.xlu1 %1166 }
 0xb76   : > { %7276 = vst [vmem:[#allocation56_spill] sm:$0xff] %v5145_v50 }
 0xb79   : > { %v5147_v9 = vpop.permute.xlu1 %1170 }
 0xb7a   : > { %7277 = vst [vmem:[#allocation57_spill] sm:$0xff] %v5147_v9 }
 0xb7d   : > { %v5151_v7 = vpop.permute.xlu1 %1195 }
 0xb7e   : > { %7279 = vst [vmem:[#allocation59_spill] sm:$0xff] %v5151_v7  ;;  %v7282_v7 = vmov 0  }
 0xb81   : > { %v5157_v1 = vpop.permute.xlu1 %1197 }
 0xb82   : > { %7280 = vst [vmem:[#allocation60_spill] sm:$0xff] %v5157_v1 }
 0xb85   : > { %v5162_v9 = vpop.permute.xlu1 %1201 }
 0xb86   : > { %7281 = vst [vmem:[#allocation61_spill] sm:$0xff] %v5162_v9 }
 0xb89   : > { %v5166_v50 = vpop.permute.xlu1 %1226 }
 0xb8a   : > { %7283 = vst [vmem:[#allocation62_spill] sm:$0xff] %v5166_v50 }
 0xbdf   : > { %v5149_v35 = vpop.permute.xlu0 %1637 }
 0xbe0   : > { %7278 = vst [vmem:[#allocation58_spill] sm:$0xff] %v5149_v35 }
 0xbf0   : > { %v1654_v19 = vpop.permute.xlu0 %1653 }
 0xbf1   : > { %v1658_v18 = vmul.f32 %v1654_v19, %v4686_v52  ;;  %v1656_v56 = vmul.f32 %v1654_v19, %v4649_v37  ;;  %v1657_v49 = vmul.f32 %v1654_v19, %v4669_v45  ;;  %v1659_v35 = vmul.f32 %v1654_v19, %v4772_v60 }
 0xbf3   : > { %1668 = vrot.lane.b32.xlu0 %v1658_v18, %s4359_s25  ;;  %1664 = vrot.lane.b32.xlu1 %v1656_v56, %s4359_s25  ;;  %v5168_v18 = vpop.permute.xlu1 %1228 }
 0xbf4   : > { %7284 = vst [vmem:[#allocation63_spill] sm:$0xff] %v5168_v18 }
 0xbf7   : > { %1684 = vperm.xlu0 %4188, %v4236_v11   ;;  %1666 = vrot.lane.b32.xlu1 %v1657_v49, %s4359_s25  ;;  %v5170_v56 = vpop.permute.xlu1 %1232 }
 0xbf8   : > { %7285 = vst [vmem:[#allocation64_spill] sm:$0xff] %v5170_v56 }
 0xbfb   : > { %4189 = vset.pattern.permute.xlu0 %v7282_v7  ;;  %1670 = vrot.lane.b32.xlu1 %v1659_v35, %s4359_s25  ;;  %v5172_v1 = vpop.permute.xlu1 %1258 }
 0xbfc   : > { %521 = vperm.xlu0 %4189, %v4236_v11   ;;  %7286 = vst [vmem:[#allocation65_spill] sm:$0xff] %v5172_v1 }
 0xbff   : > { %v5174_v46 = vpop.permute.xlu1 %1260 }
 0xc00   : > { %7287 = vst [vmem:[#allocation66_spill] sm:$0xff] %v5174_v46 }
 0xc03   : > { %v5176_v49 = vpop.permute.xlu1 %1264 }
 0xc04   : > { %7288 = vst [vmem:[#allocation67_spill] sm:$0xff] %v5176_v49 }
 0xc07   : > { %v5178_v19 = vpop.permute.xlu1 %1289 }
 0xc08   : > { %7289 = vst [vmem:[#allocation68_spill] sm:$0xff] %v5178_v19 }
 0xc0b   : > { %v5180_v9 = vpop.permute.xlu1 %1291 }
 0xc0c   : > { %7290 = vst [vmem:[#allocation69_spill] sm:$0xff] %v5180_v9 }
 0xc0f   : > { %v5182_v7 = vpop.permute.xlu1 %1295 }
 0xc10   : > { %7291 = vst [vmem:[#allocation70_spill] sm:$0xff] %v5182_v7 }
 0xc13   : > { %v5184_v35 = vpop.permute.xlu1 %1320 }
 0xc14   : > { %7292 = vst [vmem:[#allocation71_spill] sm:$0xff] %v5184_v35 }
 0xc17   : > { %v5186_v11 = vpop.permute.xlu1 %1322 }
 0xc18   : > { %7293 = vst [vmem:[#allocation72_spill] sm:$0xff] %v5186_v11 }
 0xc1b   : > { %v5188_v50 = vpop.permute.xlu1 %1326 }
 0xc1c   : > { %7294 = vst [vmem:[#allocation73_spill] sm:$0xff] %v5188_v50 }
 0xc1f   : > { %v5190_v18 = vpop.permute.xlu1 %1351 }
 0xc20   : > { %7295 = vst [vmem:[#allocation74_spill] sm:$0xff] %v5190_v18 }
 0xc23   : > { %v5192_v56 = vpop.permute.xlu1 %1353 }
 0xc24   : > { %7296 = vst [vmem:[#allocation75_spill] sm:$0xff] %v5192_v56 }
 0xc27   : > { %v5194_v1 = vpop.permute.xlu1 %1357 }
 0xc28   : > { %7297 = vst [vmem:[#allocation76_spill] sm:$0xff] %v5194_v1 }
 0xc2b   : > { %v5196_v46 = vpop.permute.xlu1 %1383 }
 0xc2c   : > { %7298 = vst [vmem:[#allocation77_spill] sm:$0xff] %v5196_v46 }
 0xc2f   : > { %v5198_v49 = vpop.permute.xlu1 %1385 }
 0xc30   : > { %7299 = vst [vmem:[#allocation78_spill] sm:$0xff] %v5198_v49 }
 0xc33   : > { %v5200_v19 = vpop.permute.xlu1 %1389 }
 0xc34   : > { %7300 = vst [vmem:[#allocation79_spill] sm:$0xff] %v5200_v19 }
 0xc37   : > { %v5202_v9 = vpop.permute.xlu1 %1414 }
 0xc38   : > { %7301 = vst [vmem:[#allocation80_spill] sm:$0xff] %v5202_v9  ;;  %v610_v9 = vmul.f32 %v4627_v13, %v4586_v54 }
 0xc3b   : > { %v5204_v7 = vpop.permute.xlu1 %1416 }
 0xc3c   : > { %7302 = vst [vmem:[#allocation81_spill] sm:$0xff] %v5204_v7 }
 0xc3f   : > { %v5206_v35 = vpop.permute.xlu1 %1420 }
 0xc40   : > { %7303 = vst [vmem:[#allocation82_spill] sm:$0xff] %v5206_v35  ;;  %v611_v35 = vmul.f32 %v4630_v14, %v4586_v54 }
 0xc43   : > { %v5208_v11 = vpop.permute.xlu1 %1445 }
 0xc44   : > { %7304 = vst [vmem:[#allocation83_spill] sm:$0xff] %v5208_v11  ;;  %v612_v11 = vmul.f32 %v4664_v43, %v4586_v54  ;;  %v659_v43 = vmul.f32 %v4669_v45, %v4594_v59 }
 0xc47   : > { %v5212_v18 = vpop.permute.xlu1 %1447 }
 0xc48   : > { %7306 = vst [vmem:[#allocation85_spill] sm:$0xff] %v5212_v18  ;;  %v613_v18 = vmul.f32 %v4762_v47, %v4586_v54  ;;  %v660_v54 = vmul.f32 %v4686_v52, %v4594_v59 }
 0xc65   : > { %v5210_v50 = vpop.permute.xlu0 %1668 }
 0xc66   : > { %7305 = vst [vmem:[#allocation84_spill] sm:$0xff] %v5210_v50  ;;  %v1714_v50 = vld [vmem:[%s7061_s2] sm:$0xf] }
 0xc76   : > { %v1685_v56 = vpop.permute.xlu0 %1684 }
 0xc77   : > { %v1689_v1 = vmul.f32 %v1685_v56, %v4700_v4  ;;  %v1687_v46 = vmul.f32 %v1685_v56, %v4683_v51  ;;  %v1688_v13 = vmul.f32 %v1685_v56, %v4697_v61  ;;  %v1690_v45 = vmul.f32 %v1685_v56, %v4778_v5 }
 0xc79   : > { %1699 = vrot.lane.b32.xlu0 %v1689_v1, %s4359_s25  ;;  %1695 = vrot.lane.b32.xlu1 %v1687_v46, %s4359_s25  ;;  %v658_v1 = vmul.f32 %v4649_v37, %v4594_v59  ;;  %v5231_v46 = vpop.permute.xlu1 %1451  ;;  %v661_v37 = vmul.f32 %v4772_v60, %v4594_v59  ;;  %v707_v59 = vmul.f32 %v4697_v61, %v4592_v58 }
 0xc7a   : > { %7307 = vst [vmem:[#allocation86_spill] sm:$0xff] %v5231_v46  ;;  %v708_v60 = vmul.f32 %v4700_v4, %v4592_v58  ;;  %v736_v4 = vsel %vm734_vm9, %v4800_v32, %v5010_v62 }
 0xc7b   : > { %v522_v7 = vpop.permute.xlu0 %521 }
 0xc7c   : > { %v562_v14 = vmul.f32 %v4606_v3, %v522_v7  ;;  %v563_v19 = vmul.f32 %v4603_v2, %v522_v7  ;;  %v564_v49 = vmul.f32 %v4713_v15, %v522_v7  ;;  %v565_v63 = vmul.f32 %v4654_v38, %v522_v7 }
 0xc7d   : > { %1717 = vperm.xlu0 %4189, %v1714_v50   ;;  %1697 = vrot.lane.b32.xlu1 %v1688_v13, %s4359_s25  ;;  %v706_v15 = vmul.f32 %v4683_v51, %v4592_v58  ;;  %v5247_v38 = vpop.permute.xlu1 %1476  ;;  %v7308_v51 = vmov 11  }
 0xc7e   : > { %v614_v47 = vadd.f32 %v610_v9, %v562_v14  ;;  %v615_v3 = vadd.f32 %v611_v35, %v563_v19  ;;  %v616_v46 = vadd.f32 %v612_v11, %v564_v49  ;;  %v617_v2 = vadd.f32 %v613_v18, %v565_v63  ;;  %v1724_v9 = vld [vmem:[%s7062_s3] sm:$0xf] }
 0xc7f   : > { %v709_v63 = vmul.f32 %v4778_v5, %v4592_v58  ;;  %v735_v58 = vsel %vm734_vm9, %v4908_v31, %v4800_v32  ;;  %v737_v5 = vsel %vm734_vm9, %v5010_v62, %v4804_v34  ;;  %v766_v11 = vsel %vm734_vm9, %v4802_v16, %v4914_v8 }
 0xc80   : > { %v662_v7 = vadd.f32 %v658_v1, %v614_v47  ;;  %v663_v55 = vadd.f32 %v659_v43, %v615_v3  ;;  %v664_v52 = vadd.f32 %v660_v54, %v616_v46  ;;  %v665_v20 = vadd.f32 %v661_v37, %v617_v2 }
 0xc81   : > { %1701 = vrot.lane.b32.xlu1 %v1690_v45, %s4359_s25  ;;  %4198 = vset.pattern.permute.xlu0 %v7308_v51  ;;  %v5261_v61 = vpop.permute.xlu1 %1478  ;;  %v767_v31 = vsel %vm734_vm9, %v4914_v8, %v4806_v39  ;;  %v768_v32 = vsel %vm734_vm9, %v4806_v39, %v5016_v26  ;;  %v798_v16 = vsel %vm734_vm9, %v4926_v30, %v4808_v36 }
 0xc82   : > { %v710_v50 = vadd.f32 %v706_v15, %v662_v7  ;;  %v711_v18 = vadd.f32 %v707_v59, %v663_v55  ;;  %v712_v56 = vadd.f32 %v708_v60, %v664_v52  ;;  %v713_v49 = vadd.f32 %v709_v63, %v665_v20 }
 0xc83   : > { %v799_v8 = vsel %vm734_vm9, %v4808_v36, %v5022_v42  ;;  %v830_v36 = vsel %vm734_vm9, %v4810_v44, %v5028_v6 }
 0xc84   : > { %v742_v19 = vadd.f32 %v735_v58, %v710_v50  ;;  %v743_v35 = vadd.f32 %v736_v4, %v711_v18  ;;  %v744_v55 = vadd.f32 %v737_v5, %v712_v56  ;;  %v745_v20 = vadd.f32 %v4804_v34, %v713_v49 }
 0xc85   : > { %1727 = vperm.xlu1 %4190, %v1724_v9   ;;  %v5282_v1 = vpop.permute.xlu1 %1482  ;;  %v797_v34 = vsel %vm734_vm9, %v4920_v17, %v4926_v30  ;;  %v829_v17 = vsel %vm734_vm9, %v4938_v29, %v4810_v44 }
 0xc86   : > { %v773_v62 = vadd.f32 %v766_v11, %v742_v19  ;;  %v774_v46 = vadd.f32 %v767_v31, %v743_v35  ;;  %v775_v13 = vadd.f32 %v768_v32, %v744_v55  ;;  %v776_v14 = vadd.f32 %v5016_v26, %v745_v20  ;;  %v7311_v55 = vld [vmem:[#allocation28_spill] sm:$0xff]  ;;  %v7312_v20 = vld [vmem:[#allocation15_spill] sm:$0xff] }
 0xc87   : > { %v828_v26 = vsel %vm734_vm9, %v4932_v57, %v4938_v29  ;;  %v860_v57 = vsel %vm859_vm10, %v4944_v25, %v4950_v27  ;;  %v861_v29 = vsel %vm859_vm10, %v4950_v27, %v4812_v40  ;;  %v892_v25 = vsel %vm859_vm10, %v4962_v22, %v4814_v41  ;;  %v7313_v11 = vld [vmem:[#allocation36_spill] sm:$0xff] }
 0xc88   : > { %v804_v43 = vadd.f32 %v797_v34, %v773_v62  ;;  %v805_v54 = vadd.f32 %v798_v16, %v774_v46  ;;  %v806_v37 = vadd.f32 %v799_v8, %v775_v13  ;;  %v807_v47 = vadd.f32 %v5022_v42, %v776_v14  ;;  %v7314_v13 = vld [vmem:[#allocation37_spill] sm:$0xff]  ;;  %v7315_v14 = vld [vmem:[#allocation31_spill] sm:$0xff]  ;;  %v7316_v16 = vld [vmem:[#allocation16_spill] sm:$0xff] }
 0xc89   : > { %v5294_v39 = vpop.permute.xlu1 %1508  ;;  %v862_v42 = vsel %vm859_vm10, %v4812_v40, %v5034_v0  ;;  %v893_v27 = vsel %vm859_vm10, %v4814_v41, %v5040_v10  ;;  %v987_v31 = vsel %vm984_vm11, %v7312_v20, %v7313_v11  ;;  %v1016_v34 = vsel %vm984_vm11, %v7315_v14, %v7314_v13 }
 0xc8a   : > { %v835_v30 = vadd.f32 %v828_v26, %v804_v43  ;;  %v836_v3 = vadd.f32 %v829_v17, %v805_v54  ;;  %v837_v2 = vadd.f32 %v830_v36, %v806_v37  ;;  %v838_v15 = vadd.f32 %v5028_v6, %v807_v47  ;;  %v7317_v43 = vld [vmem:[#allocation39_spill] sm:$0xff] }
 0xc8b   : > { %v891_v6 = vsel %vm859_vm10, %v4956_v23, %v4962_v22  ;;  %v923_v23 = vsel %vm859_vm10, %v4974_v28, %v4816_v48  ;;  %v924_v22 = vsel %vm859_vm10, %v4816_v48, %v5046_v24  ;;  %v1017_v8 = vsel %vm984_vm11, %v7314_v13, %v7316_v16 }
 0xc8c   : > { %v867_v44 = vadd.f32 %v860_v57, %v835_v30  ;;  %v868_v7 = vadd.f32 %v861_v29, %v836_v3  ;;  %v869_v52 = vadd.f32 %v862_v42, %v837_v2  ;;  %v870_v59 = vadd.f32 %v5034_v0, %v838_v15  ;;  %v7318_v30 = vld [vmem:[#allocation41_spill] sm:$0xff]  ;;  %v7319_v3 = vld [vmem:[#allocation40_spill] sm:$0xff]  ;;  %v7321_v29 = vld [vmem:[#allocation43_spill] sm:$0xff] }
 0xc8d   : > { %v5307_v45 = vpop.permute.xlu1 %1510  ;;  %v922_v0 = vsel %vm859_vm10, %v4968_v21, %v4974_v28  ;;  %v954_v21 = vsel %vm859_vm10, %v4986_v33, %v4818_v53  ;;  %v7309_v28 = vld [vmem:[#allocation35_spill] sm:$0xff]  ;;  %v1018_v54 = vsel %vm984_vm11, %v7316_v16, %v7317_v43  ;;  %v1047_v2 = vsel %vm984_vm11, %v7319_v3, %v7318_v30  ;;  %v7320_v15 = vld [vmem:[#allocation17_spill] sm:$0xff]  ;;  %v7334_v16 = vld [vmem:[#allocation56_spill] sm:$0xff] }
 0xc8e   : > { %v898_v40 = vadd.f32 %v891_v6, %v867_v44  ;;  %v899_v63 = vadd.f32 %v892_v25, %v868_v7  ;;  %v900_v51 = vadd.f32 %v893_v27, %v869_v52  ;;  %v901_v9 = vadd.f32 %v5040_v10, %v870_v59  ;;  %v7322_v25 = vld [vmem:[#allocation45_spill] sm:$0xff]  ;;  %v7323_v27 = vld [vmem:[#allocation44_spill] sm:$0xff] }
 0xc8f   : > { %v953_v10 = vsel %vm859_vm10, %v4980_v12, %v4986_v33  ;;  %v955_v48 = vsel %vm859_vm10, %v4818_v53, %v7309_v28  ;;  %v1048_v57 = vsel %vm984_vm11, %v7318_v30, %v7320_v15  ;;  %v1049_v42 = vsel %vm984_vm11, %v7320_v15, %v7321_v29 }
 0xc90   : > { %v929_v50 = vadd.f32 %v922_v0, %v898_v40  ;;  %v930_v18 = vadd.f32 %v923_v23, %v899_v63  ;;  %v931_v56 = vadd.f32 %v924_v22, %v900_v51  ;;  %v932_v49 = vadd.f32 %v5046_v24, %v901_v9  ;;  %v7310_v24 = vld [vmem:[#allocation30_spill] sm:$0xff]  ;;  %v7325_v9 = vld [vmem:[#allocation47_spill] sm:$0xff] }
 0xc91   : > { %v5328_v60 = vpop.permute.xlu1 %1514  ;;  %v985_v12 = vsel %vm984_vm11, %v7311_v55, %v7310_v24  ;;  %v986_v33 = vsel %vm984_vm11, %v7310_v24, %v7312_v20  ;;  %v1078_v40 = vsel %vm984_vm11, %v7323_v27, %v7322_v25  ;;  %v7324_v63 = vld [vmem:[#allocation18_spill] sm:$0xff]  ;;  %v7331_v20 = vld [vmem:[#allocation52_spill] sm:$0xff] }
 0xc92   : > { %v960_v58 = vadd.f32 %v953_v10, %v929_v50  ;;  %v961_v4 = vadd.f32 %v954_v21, %v930_v18  ;;  %v962_v5 = vadd.f32 %v955_v48, %v931_v56  ;;  %v963_v19 = vadd.f32 %v7309_v28, %v932_v49  ;;  %v7326_v49 = vld [vmem:[#allocation49_spill] sm:$0xff]  ;;  %v7327_v10 = vld [vmem:[#allocation48_spill] sm:$0xff]  ;;  %v7328_v28 = vld [vmem:[#allocation19_spill] sm:$0xff] }
 0xc93   : > { %v1079_v51 = vsel %vm984_vm11, %v7322_v25, %v7324_v63  ;;  %v1080_v0 = vsel %vm984_vm11, %v7324_v63, %v7325_v9  ;;  %v1110_v21 = vsel %vm1109_vm12, %v7327_v10, %v7326_v49  ;;  %v1111_v48 = vsel %vm1109_vm12, %v7326_v49, %v7328_v28 }
 0xc94   : > { %v992_v53 = vadd.f32 %v985_v12, %v960_v58  ;;  %v993_v32 = vadd.f32 %v986_v33, %v961_v4  ;;  %v994_v62 = vadd.f32 %v987_v31, %v962_v5  ;;  %v995_v46 = vadd.f32 %v7313_v11, %v963_v19  ;;  %v7329_v58 = vld [vmem:[#allocation51_spill] sm:$0xff]  ;;  %v7330_v12 = vld [vmem:[#allocation53_spill] sm:$0xff]  ;;  %v7332_v11 = vld [vmem:[#allocation20_spill] sm:$0xff] }
 0xc95   : > { %v5340_v41 = vpop.permute.xlu1 %1539  ;;  %v1112_v4 = vsel %vm1109_vm12, %v7328_v28, %v7329_v58  ;;  %v1141_v33 = vsel %vm1109_vm12, %v7331_v20, %v7330_v12  ;;  %v1142_v31 = vsel %vm1109_vm12, %v7330_v12, %v7332_v11 }
 0xc96   : > { %v1023_v47 = vadd.f32 %v1016_v34, %v992_v53  ;;  %v1024_v26 = vadd.f32 %v1017_v8, %v993_v32  ;;  %v1025_v17 = vadd.f32 %v1018_v54, %v994_v62  ;;  %v1026_v36 = vadd.f32 %v7317_v43, %v995_v46  ;;  %v7333_v53 = vld [vmem:[#allocation54_spill] sm:$0xff]  ;;  %v7335_v8 = vld [vmem:[#allocation55_spill] sm:$0xff]  ;;  %v7336_v54 = vld [vmem:[#allocation21_spill] sm:$0xff] }
 0xc97   : > { %v1143_v32 = vsel %vm1109_vm12, %v7332_v11, %v7333_v53  ;;  %v1172_v43 = vsel %vm1109_vm12, %v7335_v8, %v7334_v16 }
 0xc98   : > { %v1054_v7 = vadd.f32 %v1047_v2, %v1023_v47  ;;  %v1055_v52 = vadd.f32 %v1048_v57, %v1024_v26  ;;  %v1056_v59 = vadd.f32 %v1049_v42, %v1025_v17  ;;  %v1057_v6 = vadd.f32 %v7321_v29, %v1026_v36  ;;  %v7337_v26 = vld [vmem:[#allocation57_spill] sm:$0xff]  ;;  %v7338_v57 = vld [vmem:[#allocation60_spill] sm:$0xff]  ;;  %v7339_v29 = vld [vmem:[#allocation59_spill] sm:$0xff] }
 0xc99   : > { %v5353_v35 = vpop.permute.xlu1 %1541  ;;  %v1173_v47 = vsel %vm1109_vm12, %v7334_v16, %v7336_v54  ;;  %v1174_v17 = vsel %vm1109_vm12, %v7336_v54, %v7337_v26  ;;  %v1203_v42 = vsel %vm1109_vm12, %v7339_v29, %v7338_v57  ;;  %v7353_v16 = vld [vmem:[#allocation70_spill] sm:$0xff]  ;;  %v7357_v29 = vld [vmem:[#allocation73_spill] sm:$0xff] }
 0xc9a   : > { %v1085_v23 = vadd.f32 %v1078_v40, %v1054_v7  ;;  %v1086_v22 = vadd.f32 %v1079_v51, %v1055_v52  ;;  %v1087_v50 = vadd.f32 %v1080_v0, %v1056_v59  ;;  %v1088_v18 = vadd.f32 %v7325_v9, %v1057_v6  ;;  %v7340_v7 = vld [vmem:[#allocation22_spill] sm:$0xff]  ;;  %v7341_v59 = vld [vmem:[#allocation61_spill] sm:$0xff]  ;;  %v7342_v9 = vld [vmem:[#allocation63_spill] sm:$0xff] }
 0xc9b   : > { %v1204_v52 = vsel %vm1109_vm12, %v7338_v57, %v7340_v7  ;;  %v1205_v6 = vsel %vm1109_vm12, %v7340_v7, %v7341_v59  ;;  %v7343_v0 = vld [vmem:[#allocation62_spill] sm:$0xff] }
 0xc9c   : > { %v1117_v5 = vadd.f32 %v1110_v21, %v1085_v23  ;;  %v1118_v19 = vadd.f32 %v1111_v48, %v1086_v22  ;;  %v1119_v24 = vadd.f32 %v1112_v4, %v1087_v50  ;;  %v1120_v55 = vadd.f32 %v7329_v58, %v1088_v18  ;;  %v7344_v22 = vld [vmem:[#allocation23_spill] sm:$0xff]  ;;  %v7345_v18 = vld [vmem:[#allocation64_spill] sm:$0xff]  ;;  %v7346_v58 = vld [vmem:[#allocation66_spill] sm:$0xff] }
 0xc9d   : > { %v5374_v37 = vpop.permute.xlu1 %1545  ;;  %v1235_v23 = vsel %vm1234_vm13, %v7343_v0, %v7342_v9  ;;  %v1236_v50 = vsel %vm1234_vm13, %v7342_v9, %v7344_v22  ;;  %v1237_v49 = vsel %vm1234_vm13, %v7344_v22, %v7345_v18  ;;  %v7347_v4 = vld [vmem:[#allocation65_spill] sm:$0xff]  ;;  %v7360_v9 = vld [vmem:[#allocation27_spill] sm:$0xff] }
 0xc9e   : > { %v1148_v46 = vadd.f32 %v1141_v33, %v1117_v5  ;;  %v1149_v13 = vadd.f32 %v1142_v31, %v1118_v19  ;;  %v1150_v14 = vadd.f32 %v1143_v32, %v1119_v24  ;;  %v1151_v34 = vadd.f32 %v7333_v53, %v1120_v55  ;;  %v7348_v19 = vld [vmem:[#allocation24_spill] sm:$0xff]  ;;  %v7349_v55 = vld [vmem:[#allocation67_spill] sm:$0xff]  ;;  %v7350_v32 = vld [vmem:[#allocation69_spill] sm:$0xff] }
 0xc9f   : > { %v1266_v5 = vsel %vm1234_vm13, %v7347_v4, %v7346_v58  ;;  %v1267_v24 = vsel %vm1234_vm13, %v7346_v58, %v7348_v19  ;;  %v1268_v12 = vsel %vm1234_vm13, %v7348_v19, %v7349_v55  ;;  %v7364_v58 = vld [vmem:[#allocation29_spill] sm:$0xff] }
 0xca0   : > { %v1179_v30 = vadd.f32 %v1172_v43, %v1148_v46  ;;  %v1180_v3 = vadd.f32 %v1173_v47, %v1149_v13  ;;  %v1181_v2 = vadd.f32 %v1174_v17, %v1150_v14  ;;  %v1182_v15 = vadd.f32 %v7337_v26, %v1151_v34  ;;  %v7351_v46 = vld [vmem:[#allocation68_spill] sm:$0xff]  ;;  %v7352_v14 = vld [vmem:[#allocation25_spill] sm:$0xff] }
 0xca1   : > { %v5386_v44 = vpop.permute.xlu1 %1570  ;;  %v1297_v13 = vsel %vm1234_vm13, %v7351_v46, %v7350_v32  ;;  %v1298_v34 = vsel %vm1234_vm13, %v7350_v32, %v7352_v14  ;;  %v1299_v8 = vsel %vm1234_vm13, %v7352_v14, %v7353_v16  ;;  %v7368_v46 = vld [vmem:[#allocation32_spill] sm:$0xff]  ;;  %v7369_v14 = vld [vmem:[#allocation82_spill] sm:$0xff] }
 0xca2   : > { %v1210_v25 = vadd.f32 %v1203_v42, %v1179_v30  ;;  %v1211_v27 = vadd.f32 %v1204_v52, %v1180_v3  ;;  %v1212_v40 = vadd.f32 %v1205_v6, %v1181_v2  ;;  %v1213_v63 = vadd.f32 %v7341_v59, %v1182_v15  ;;  %v7354_v30 = vld [vmem:[#allocation72_spill] sm:$0xff]  ;;  %v7355_v3 = vld [vmem:[#allocation71_spill] sm:$0xff]  ;;  %v7356_v15 = vld [vmem:[#allocation26_spill] sm:$0xff] }
 0xca3   : > { %v1328_v2 = vsel %vm1234_vm13, %v7355_v3, %v7354_v30  ;;  %v1329_v57 = vsel %vm1234_vm13, %v7354_v30, %v7356_v15  ;;  %v1330_v42 = vsel %vm1234_vm13, %v7356_v15, %v7357_v29  ;;  %v7371_v30 = vld [vmem:[#allocation83_spill] sm:$0xff] }
 0xca4   : > { %v1242_v10 = vadd.f32 %v1235_v23, %v1210_v25  ;;  %v1243_v21 = vadd.f32 %v1236_v50, %v1211_v27  ;;  %v1244_v28 = vadd.f32 %v1237_v49, %v1212_v40  ;;  %v1245_v48 = vadd.f32 %v7345_v18, %v1213_v63  ;;  %v7358_v27 = vld [vmem:[#allocation75_spill] sm:$0xff]  ;;  %v7359_v40 = vld [vmem:[#allocation74_spill] sm:$0xff]  ;;  %v7361_v23 = vld [vmem:[#allocation76_spill] sm:$0xff] }
 0xca5   : > { %v5399_v56 = vpop.permute.xlu1 %1572  ;;  %v1360_v63 = vsel %vm1359_vm14, %v7359_v40, %v7358_v27  ;;  %v1361_v0 = vsel %vm1359_vm14, %v7358_v27, %v7360_v9  ;;  %v1362_v22 = vsel %vm1359_vm14, %v7360_v9, %v7361_v23  ;;  %v1485_v27 = vsel %vm1484_vm15, %v5247_v38, %v5261_v61  ;;  %v7374_v40 = vld [vmem:[#allocation34_spill] sm:$0xff] }
 0xca6   : > { %v1273_v33 = vadd.f32 %v1266_v5, %v1242_v10  ;;  %v1274_v11 = vadd.f32 %v1267_v24, %v1243_v21  ;;  %v1275_v31 = vadd.f32 %v1268_v12, %v1244_v28  ;;  %v1276_v53 = vadd.f32 %v7349_v55, %v1245_v48  ;;  %v7362_v21 = vld [vmem:[#allocation78_spill] sm:$0xff]  ;;  %v7363_v28 = vld [vmem:[#allocation77_spill] sm:$0xff]  ;;  %v7365_v5 = vld [vmem:[#allocation79_spill] sm:$0xff] }
 0xca7   : > { %v1391_v48 = vsel %vm1359_vm14, %v7363_v28, %v7362_v21  ;;  %v1392_v4 = vsel %vm1359_vm14, %v7362_v21, %v7364_v58  ;;  %v1393_v19 = vsel %vm1359_vm14, %v7364_v58, %v7365_v5  ;;  %v1487_v9 = vsel %vm1484_vm15, %v7374_v40, %v5282_v1 }
 0xca8   : > { %v1304_v54 = vadd.f32 %v1297_v13, %v1273_v33  ;;  %v1305_v47 = vadd.f32 %v1298_v34, %v1274_v11  ;;  %v1306_v26 = vadd.f32 %v1299_v8, %v1275_v31  ;;  %v1307_v17 = vadd.f32 %v7353_v16, %v1276_v53  ;;  %v7366_v31 = vld [vmem:[#allocation81_spill] sm:$0xff]  ;;  %v7367_v53 = vld [vmem:[#allocation80_spill] sm:$0xff] }
 0xca9   : > { %v5420_v62 = vpop.permute.xlu1 %1576  ;;  %v1422_v32 = vsel %vm1359_vm14, %v7367_v53, %v7366_v31  ;;  %v1423_v13 = vsel %vm1359_vm14, %v7366_v31, %v7368_v46  ;;  %v1424_v34 = vsel %vm1359_vm14, %v7368_v46, %v7369_v14 }
 0xcaa   : > { %v1335_v7 = vadd.f32 %v1328_v2, %v1304_v54  ;;  %v1336_v52 = vadd.f32 %v1329_v57, %v1305_v47  ;;  %v1337_v59 = vadd.f32 %v1330_v42, %v1306_v26  ;;  %v1338_v6 = vadd.f32 %v7357_v29, %v1307_v17  ;;  %v7370_v17 = vld [vmem:[#allocation85_spill] sm:$0xff]  ;;  %v7373_v57 = vld [vmem:[#allocation86_spill] sm:$0xff] }
 0xcab   : > { %v1453_v3 = vsel %vm1359_vm14, %v7371_v30, %v7370_v17  ;;  %v7372_v2 = vld [vmem:[#allocation33_spill] sm:$0xff] }
 0xcac   : > { %v1367_v50 = vadd.f32 %v1360_v63, %v1335_v7  ;;  %v1368_v18 = vadd.f32 %v1361_v0, %v1336_v52  ;;  %v1369_v49 = vadd.f32 %v1362_v22, %v1337_v59  ;;  %v1370_v10 = vadd.f32 %v7361_v23, %v1338_v6 }
 0xcad   : > { %v5432_v36 = vpop.permute.xlu1 %1601  ;;  %v1454_v15 = vsel %vm1359_vm14, %v7370_v17, %v7372_v2  ;;  %v1455_v29 = vsel %vm1359_vm14, %v7372_v2, %v7373_v57  ;;  %v1486_v63 = vsel %vm1484_vm15, %v5261_v61, %v7374_v40 }
 0xcae   : > { %v1398_v55 = vadd.f32 %v1391_v48, %v1367_v50  ;;  %v1399_v12 = vadd.f32 %v1392_v4, %v1368_v18  ;;  %v1400_v33 = vadd.f32 %v1393_v19, %v1369_v49  ;;  %v1401_v11 = vadd.f32 %v7365_v5, %v1370_v10  ;;  %v7375_v49 = vld [vmem:[#allocation38_spill] sm:$0xff] }
 0xcaf   : > { %v1516_v18 = vsel %vm1484_vm15, %v5294_v39, %v5307_v45  ;;  %v1517_v38 = vsel %vm1484_vm15, %v5307_v45, %v7375_v49  ;;  %v1518_v61 = vsel %vm1484_vm15, %v7375_v49, %v5328_v60  ;;  %v7376_v4 = vld [vmem:[#allocation42_spill] sm:$0xff] }
 0xcb0   : > { %v1429_v8 = vadd.f32 %v1422_v32, %v1398_v55  ;;  %v1430_v54 = vadd.f32 %v1423_v13, %v1399_v12  ;;  %v1431_v47 = vadd.f32 %v1424_v34, %v1400_v33  ;;  %v1432_v26 = vadd.f32 %v7369_v14, %v1401_v11  ;;  %v7377_v11 = vld [vmem:[#allocation46_spill] sm:$0xff] }
 0xcb1   : > { %v5445_v51 = vpop.permute.xlu1 %1603  ;;  %v1548_v39 = vsel %vm1484_vm15, %v5353_v35, %v7376_v4  ;;  %v1549_v45 = vsel %vm1484_vm15, %v7376_v4, %v5374_v37 }
 0xcb2   : > { %v1460_v42 = vadd.f32 %v1453_v3, %v1429_v8  ;;  %v1461_v7 = vadd.f32 %v1454_v15, %v1430_v54  ;;  %v1462_v52 = vadd.f32 %v1455_v29, %v1431_v47  ;;  %v1463_v59 = vadd.f32 %v7373_v57, %v1432_v26  ;;  %v7379_v26 = vld [vmem:[#allocation58_spill] sm:$0xff]  ;;  %v7380_v29 = vld [vmem:[#allocation84_spill] sm:$0xff] }
 0xcb4   : > { %v1492_v0 = vadd.f32 %v1485_v27, %v1460_v42  ;;  %v1493_v23 = vadd.f32 %v1486_v63, %v1461_v7  ;;  %v1494_v22 = vadd.f32 %v1487_v9, %v1462_v52  ;;  %v1495_v50 = vadd.f32 %v5282_v1, %v1463_v59 }
 0xcb5   : > { %v5466_v20 = vpop.permute.xlu1 %1607  ;;  %v1547_v1 = vsel %vm1484_vm15, %v5340_v41, %v5353_v35  ;;  %v1579_v41 = vsel %vm1484_vm15, %v5399_v56, %v7377_v11  ;;  %v1580_v35 = vsel %vm1484_vm15, %v7377_v11, %v5420_v62 }
 0xcb6   : > { %v1523_v21 = vadd.f32 %v1516_v18, %v1492_v0  ;;  %v1524_v28 = vadd.f32 %v1517_v38, %v1493_v23  ;;  %v1525_v48 = vadd.f32 %v1518_v61, %v1494_v22  ;;  %v1526_v58 = vadd.f32 %v5328_v60, %v1495_v50 }
 0xcb7   : > { %v1578_v60 = vsel %vm1484_vm15, %v5386_v44, %v5399_v56  ;;  %v7378_v44 = vld [vmem:[#allocation50_spill] sm:$0xff] }
 0xcb8   : > { %v1554_v19 = vadd.f32 %v1547_v1, %v1523_v21  ;;  %v1555_v55 = vadd.f32 %v1548_v39, %v1524_v28  ;;  %v1556_v12 = vadd.f32 %v1549_v45, %v1525_v48  ;;  %v1557_v33 = vadd.f32 %v5374_v37, %v1526_v58 }
 0xcb9   : > { %v5478_v43 = vpop.permute.xlu1 %1633  ;;  %v1610_v37 = vsel %vm1609_vm0, %v5432_v36, %v5445_v51  ;;  %v1611_v14 = vsel %vm1609_vm0, %v5445_v51, %v7378_v44  ;;  %v1612_v56 = vsel %vm1609_vm0, %v7378_v44, %v5466_v20 }
 0xcba   : > { %v1585_v31 = vadd.f32 %v1578_v60, %v1554_v19  ;;  %v1586_v53 = vadd.f32 %v1579_v41, %v1555_v55  ;;  %v1587_v32 = vadd.f32 %v1580_v35, %v1556_v12  ;;  %v1588_v46 = vadd.f32 %v5420_v62, %v1557_v33  ;;  %v7382_v55 = vld [vmem:[#allocation7_spill] sm:$0xff] }
 0xcbb   : > { %v7383_v33 = vld [vmem:[#allocation11_spill] sm:$0xff] }
 0xcbc   : > { %v1617_v34 = vadd.f32 %v1610_v37, %v1585_v31  ;;  %v1618_v8 = vadd.f32 %v1611_v14, %v1586_v53  ;;  %v1619_v54 = vadd.f32 %v1612_v56, %v1587_v32  ;;  %v1620_v47 = vadd.f32 %v5466_v20, %v1588_v46 }
 0xcbd   : > { %v5491_v25 = vpop.permute.xlu1 %1635 }
 0xcbe   : > { %v1641_v62 = vsel %vm1609_vm0, %v5478_v43, %v5491_v25  ;;  %v1642_v36 = vsel %vm1609_vm0, %v5491_v25, %v7379_v26 }
 0xcbf   : > { %v1648_v17 = vadd.f32 %v1641_v62, %v1617_v34  ;;  %v1649_v30 = vadd.f32 %v1642_v36, %v1618_v8  ;;  %v5627_v62 = vld [vmem:[%s7060_s1 + $0x4] sm:$0xf]  ;;  %v7385_v36 = vmov 5  }
 0xcc1   : > { %v5512_v24 = vpop.permute.xlu1 %1639 }
 0xcc2   : > { %v1643_v51 = vsel %vm1609_vm0, %v7379_v26, %v5512_v24  ;;  %v1651_v2 = vadd.f32 %v5512_v24, %v1620_v47  ;;  %v7384_v26 = vmov 4  }
 0xcc3   : > { %v1650_v3 = vadd.f32 %v1643_v51, %v1619_v54  ;;  %v7386_v51 = vmov 6  }
 0xcc5   : > { %v5524_v16 = vpop.permute.xlu1 %1664 }
 0xcc9   : > { %v1667_v6 = vpop.permute.xlu1 %1666 }
 0xcca   : > { %v1672_v20 = vsel %vm1609_vm0, %v5524_v16, %v1667_v6  ;;  %v1673_v43 = vsel %vm1609_vm0, %v1667_v6, %v7380_v29 }
 0xccb   : > { %v1679_v59 = vadd.f32 %v1672_v20, %v1648_v17  ;;  %v1680_v27 = vadd.f32 %v1673_v43, %v1649_v30  ;;  %v7387_v17 = vmov 7   ;;  %v7388_v30 = vmov 8  }
 0xccc   : > { %v7393_v20 = vmov 14   ;;  %v7395_v43 = vmov 16  }
 0xccd   : > { %v1671_v10 = vpop.permute.xlu1 %1670 }
 0xcce   : > { %v1674_v25 = vsel %vm1609_vm0, %v7380_v29, %v1671_v10  ;;  %v1682_v40 = vadd.f32 %v1671_v10, %v1651_v2  ;;  %v1758_v10 = vld [vmem:[%s7063_s4] sm:$0x7]  ;;  %v7390_v2 = vmov 10   ;;  %v7394_v29 = vmov 15  }
 0xccf   : > { %v1681_v24 = vadd.f32 %v1674_v25, %v1650_v3  ;;  %v1763_v12 = vrot.slane %v1758_v10, %v7382_v55  ;;  %v1771_v60 = vrot.slane %v1758_v10, %v7383_v33  ;;  %v7389_v3 = vmov 9  }
 0xcd0   : > { %v7396_v25 = vmov 17  }
 0xceb   : > { %v1696_v5 = vpop.permute.xlu1 %1695  ;;  %v1700_v57 = vpop.permute.xlu0 %1699 }
 0xcef   : > { %v1698_v13 = vpop.permute.xlu1 %1697 }
 0xcf0   : > { %v1703_v42 = vsel %vm1609_vm0, %v1696_v5, %v1698_v13  ;;  %v1704_v7 = vsel %vm1609_vm0, %v1698_v13, %v1700_v57  ;;  %v7381_v5 = vld [vmem:[#allocation9_spill] sm:$0xff] }
 0xcf1   : > { %v1710_v9 = vadd.f32 %v1703_v42, %v1679_v59  ;;  %v1711_v0 = vadd.f32 %v1704_v7, %v1680_v27  ;;  %v1767_v19 = vrot.slane %v1758_v10, %v7381_v5  ;;  %v7397_v42 = vmov 18  }
 0xcf2   : > { %v7398_v7 = vmov 19   ;;  %v7400_v59 = vmov 21   ;;  %v7401_v27 = vmov 22   ;;  %v7409_v10 = vmov 32  }
 0xcf3   : > { %v1702_v15 = vpop.permute.xlu1 %1701 }
 0xcf4   : > { %v1705_v52 = vsel %vm1609_vm0, %v1700_v57, %v1702_v15  ;;  %v1713_v23 = vadd.f32 %v1702_v15, %v1682_v40  ;;  %v7391_v15 = vmov 12   ;;  %v7392_v57 = vmov 13  }
 0xcf5   : > { %v1712_v16 = vadd.f32 %v1705_v52, %v1681_v24  ;;  %v7399_v52 = vmov 20   ;;  %v7402_v24 = vmov 24   ;;  %v7403_v40 = vmov 25  }
 0xcfc   : > { %v1718_v63 = vpop.permute.xlu0 %1717 }
 0xcfd   : > { %v1720_v22 = vmul.f32 %v1718_v63, %v1710_v9  ;;  %v1721_v6 = vmul.f32 %v1718_v63, %v1711_v0  ;;  %v1722_v50 = vmul.f32 %v1718_v63, %v1712_v16  ;;  %v1723_v18 = vmul.f32 %v1718_v63, %v1713_v23 }
 0xcfe   : > { %v7404_v63 = vmov 27   ;;  %v7405_v23 = vmov 28  }
 0xd04   : > { %v1728_v49 = vpop.permute.xlu1 %1727 }
 0xd05   : > { %v1730_v38 = vadd.f32 %v1728_v49, %v1720_v22  ;;  %v1731_v61 = vadd.f32 %v1728_v49, %v1721_v6  ;;  %v1732_v21 = vadd.f32 %v1728_v49, %v1722_v50  ;;  %v1733_v28 = vadd.f32 %v1728_v49, %v1723_v18 }
 0xd07   : > { %v1734_v48 = vmax.f32 %v1730_v38, 0.0  ;;  %v1735_v58 = vmax.f32 %v1731_v61, 0.0  ;;  %v1736_v1 = vmax.f32 %v1732_v21, 0.0  ;;  %v1737_v4 = vmax.f32 %v1733_v28, 0.0 }
 0xd08   : > { %v7406_v28 = vmov 30  }
 0xd09   : > { %v1743_v39 = vcombine.low %v1736_v1, %v1737_v4  ;;  %v1742_v45 = vcombine.low %v1734_v48, %v1735_v58 }
 0xd0b   : > { %1746 = vrot.lane.b32.xlu0 %v1743_v39, %s7219_s27  ;;  %1744 = vrot.lane.b32.xlu1 %v1742_v45, %s7219_s27  ;;  %v7410_v45 = vmov 33  }
 0xd0f   : > { %1774 = vrot.lane.b32.xlu0 %v1767_v19, %s4363_s21  ;;  %1772 = vrot.lane.b32.xlu1 %v1763_v12, %s4363_s21  ;;  %v5694_v19 = vld [vmem:[#allocation2] sm:$0xff] }
 0xd10   : > { %v1981_v12 = vrot.slane %v5694_v19, %v7382_v55 }
 0xd13   : > { %1776 = vrot.lane.b32.xlu1 %v1771_v60, %s4363_s21 }
 0xd7d   : > { %v1747_v11 = vpop.permute.xlu0 %1746  ;;  %v1745_v41 = vpop.permute.xlu1 %1744 }
 0xd7e   : > { %v1749_v35 = vrot.slane %v1747_v11, 4  ;;  %v1748_v31 = vrot.slane %v1745_v41, 4 }
 0xd80   : > { %v1753_v53 = vsel %vm1109_vm12, %v1747_v11, %v1749_v35  ;;  %v1751_v32 = vsel %vm1750_vm1, %v1748_v31, %v1749_v35  ;;  %v7411_v11 = vmov 34   ;;  %v7412_v35 = vld [vmem:[#allocation8_spill] sm:$0xff] }
 0xd81   : > { %1757 = vst [vmem:[#allocation3 + $0x8] sm:$0xf] %v1753_v53  ;;  %v1752_v46 = vsel %vm1109_vm12, %v1745_v41, %v1751_v32  ;;  %v1775_v13 = vpop.permute.xlu0 %1774  ;;  %v1773_v37 = vpop.permute.xlu1 %1772  ;;  %v5704_v41 = vrot.slane %v1981_v12, %v7382_v55  ;;  %v1985_v31 = vrot.slane %v5694_v19, %v7412_v35 }
 0xd82   : > { %1756 = vst [vmem:[#allocation3] sm:$0xff] %v1752_v46  ;;  %v1779_v44 = vsel %vm1778_vm3, %v1773_v37, %v1775_v13  ;;  %v1785_v14 = vmul.f32 %v1773_v37, %v1734_v48  ;;  %v7413_v46 = vmov 23   ;;  %v5718_v37 = vld [vmem:[#allocation2 + $0x8] sm:$0xff] }
 0xd83   : > { %v1786_v56 = vmul.f32 %v1779_v44, %v1735_v58  ;;  %v7407_v58 = vmov 1   ;;  %v1993_v44 = vrot.slane %v5718_v37, %v7412_v35 }
 0xd84   : > { %1793 = vrot.lane.b32.xlu0 %v1785_v14, %s7219_s27  ;;  %v7414_v14 = vmov 0  }
 0xd85   : > { %1795 = vrot.lane.b32.xlu1 %v1786_v56, %s7219_s27  ;;  %v1777_v34 = vpop.permute.xlu1 %1776 }
 0xd86   : > { %v1780_v8 = vsel %vm1778_vm3, %v1775_v13, %v1777_v34  ;;  %v1788_v54 = vmul.f32 %v1777_v34, %v1737_v4  ;;  %v5716_v13 = vrot.slane %v1985_v31, %v7382_v55 }
 0xd87   : > { %v1787_v47 = vmul.f32 %v1780_v8, %v1736_v1  ;;  %v7408_v1 = vmov 2   ;;  %v7415_v8 = vmov 26  }
 0xd89   : > { %1799 = vrot.lane.b32.xlu1 %v1788_v54, %s7219_s27  ;;  %1797 = vrot.lane.b32.xlu0 %v1787_v47, %s7219_s27  ;;  %v5730_v54 = vrot.slane %v1993_v44, %v7382_v55  ;;  %v7416_v47 = vld [vmem:[#allocation10_spill] sm:$0xff]  ;;  %s4373_s27 = smov 9  }
 0xd8d   : > { %1821 = vperm.xlu1 %4190, %v5627_v62  }
 0xd91   : > { %4191 = vset.pattern.permute.xlu1 %v7384_v26  ;;  %v2050_v26 = vrot.slane %v5694_v19, %v7416_v47 }
 0xd92   : > { %1973 = vperm.xlu1 %4191, %v5627_v62  }
 0xd96   : > { %4192 = vset.pattern.permute.xlu1 %v7385_v36 }
 0xd97   : > { %2040 = vperm.xlu1 %4192, %v5627_v62  }
 0xd9b   : > { %4193 = vset.pattern.permute.xlu1 %v7386_v51 }
 0xd9c   : > { %2105 = vperm.xlu1 %4193, %v5627_v62  }
 0xda0   : > { %4194 = vset.pattern.permute.xlu1 %v7387_v17  ;;  %v5741_v17 = vrot.slane %v2050_v26, %v7381_v5 }
 0xda1   : > { %2170 = vperm.xlu1 %4194, %v5627_v62  }
 0xda5   : > { %4195 = vset.pattern.permute.xlu1 %v7388_v30  ;;  %v2058_v30 = vrot.slane %v5718_v37, %v7416_v47 }
 0xda6   : > { %2235 = vperm.xlu1 %4195, %v5627_v62  }
 0xdaa   : > { %4196 = vset.pattern.permute.xlu1 %v7389_v3  ;;  %v7417_v3 = vmov 29  }
 0xdab   : > { %2265 = vperm.xlu1 %4196, %v5627_v62  }
 0xdaf   : > { %4197 = vset.pattern.permute.xlu1 %v7390_v2 }
 0xdb0   : > { %2294 = vperm.xlu1 %4197, %v5627_v62  }
 0xdb4   : > { %4199 = vset.pattern.permute.xlu1 %v7391_v15  ;;  %v5751_v15 = vrot.slane %v2058_v30, %v7381_v5 }
 0xdb5   : > { %2352 = vperm.xlu1 %4199, %v5627_v62  }
 0xdb9   : > { %4200 = vset.pattern.permute.xlu1 %v7392_v57  ;;  %v7418_v57 = vld [vmem:[#allocation12_spill] sm:$0xff] }
 0xdba   : > { %2381 = vperm.xlu1 %4200, %v5627_v62  }
 0xdbe   : > { %4201 = vset.pattern.permute.xlu1 %v7393_v20  ;;  %v2115_v20 = vrot.slane %v5694_v19, %v7418_v57 }
 0xdbf   : > { %2410 = vperm.xlu1 %4201, %v5627_v62  }
 0xdc3   : > { %4202 = vset.pattern.permute.xlu1 %v7394_v29 }
 0xdc4   : > { %2439 = vperm.xlu1 %4202, %v5627_v62  }
 0xdc8   : > { %4203 = vset.pattern.permute.xlu1 %v7395_v43  ;;  %v7419_v43 = vmov 31  }
 0xdc9   : > { %2468 = vperm.xlu1 %4203, %v5627_v62  }
 0xdcd   : > { %4204 = vset.pattern.permute.xlu1 %v7396_v25 }
 0xdce   : > { %2497 = vperm.xlu1 %4204, %v5627_v62  }
 0xdd2   : > { %4205 = vset.pattern.permute.xlu1 %v7397_v42  ;;  %v5763_v42 = vrot.slane %v2115_v20, %v7383_v33 }
 0xdd3   : > { %2526 = vperm.xlu1 %4205, %v5627_v62  }
 0xdd7   : > { %4206 = vset.pattern.permute.xlu1 %v7398_v7  ;;  %v2123_v7 = vrot.slane %v5718_v37, %v7418_v57 }
 0xdd8   : > { %2555 = vperm.xlu1 %4206, %v5627_v62  }
 0xddc   : > { %4207 = vset.pattern.permute.xlu1 %v7399_v52 }
 0xddd   : > { %2584 = vperm.xlu1 %4207, %v5627_v62  }
 0xde1   : > { %4208 = vset.pattern.permute.xlu1 %v7400_v59 }
 0xde2   : > { %2613 = vperm.xlu1 %4208, %v5627_v62  }
 0xde6   : > { %4209 = vset.pattern.permute.xlu1 %v7401_v27  ;;  %v7420_v27 = vmov 3  }
 0xde7   : > { %2642 = vperm.xlu1 %4209, %v5627_v62  }
 0xdeb   : > { %4211 = vset.pattern.permute.xlu1 %v7402_v24  ;;  %v5775_v24 = vrot.slane %v2123_v7, %v7383_v33 }
 0xdec   : > { %2700 = vperm.xlu1 %4211, %v5627_v62  }
 0xdf0   : > { %4212 = vset.pattern.permute.xlu1 %v7403_v40  ;;  %v7421_v40 = vld [vmem:[#allocation14_spill] sm:$0xff] }
 0xdf1   : > { %2730 = vperm.xlu1 %4212, %v5627_v62  }
 0xdf5   : > { %4214 = vset.pattern.permute.xlu1 %v7404_v63  ;;  %v2180_v63 = vrot.slane %v5694_v19, %v7421_v40 }
 0xdf6   : > { %v1794_v9 = vpop.permute.xlu0 %1793  ;;  %2788 = vperm.xlu1 %4214, %v5627_v62  }
 0xdf7   : > { %v1796_v0 = vpop.permute.xlu1 %1795 }
 0xdf8   : > { %v1801_v16 = vsel %vm1109_vm12, %v1794_v9, %v1796_v0  ;;  %v1989_v9 = vrot.slane %v5718_v37, %v7382_v55 }
 0xdf9   : > { %v1807_v49 = vsel %vm1750_vm1, %v1801_v16, 0.0  ;;  %v7422_v16 = vmov 35  }
 0xdfa   : > { %4215 = vset.pattern.permute.xlu1 %v7405_v23  ;;  %v7423_v23 = vld [vmem:[#allocation13_spill] sm:$0xff] }
 0xdfb   : > { %2817 = vperm.xlu1 %4215, %v5627_v62   ;;  %v1798_v22 = vpop.permute.xlu0 %1797  ;;  %v1800_v6 = vpop.permute.xlu1 %1799  ;;  %v2184_v30 = vrot.slane %v5718_v37, %v7423_v23 }
 0xdfc   : > { %v1802_v50 = vsel %vm1109_vm12, %v1796_v0, %v1798_v22  ;;  %v1803_v18 = vsel %vm1109_vm12, %v1798_v22, %v1800_v6  ;;  %v5786_v22 = vrot.slane %v2180_v63, %v7423_v23  ;;  %v2188_v6 = vrot.slane %v5718_v37, %v7421_v40 }
 0xdfd   : > { %v1808_v38 = vsel %vm1750_vm1, %v1802_v50, 0.0  ;;  %v1810_v21 = vsel %vm1750_vm1, %v1803_v18, 0.0  ;;  %v5794_v18 = vrot.slane %v1989_v9, %v7382_v55 }
 0xdfe   : > { %v1809_v61 = vadd.f32 %v1808_v38, %v1807_v49  ;;  %v2046_v49 = vrot.slane %v5694_v19, %v7381_v5 }
 0xdff   : > { %4217 = vset.pattern.permute.xlu1 %v7406_v28  ;;  %v2054_v28 = vrot.slane %v5718_v37, %v7381_v5 }
 0xe00   : > { %v1811_v48 = vadd.f32 %v1810_v21, %v1809_v61  ;;  %2876 = vperm.xlu1 %4217, %v5627_v62   ;;  %v5804_v21 = vrot.slane %v2188_v6, %v7423_v23 }
 0xe02   : > { %1812 = vadd.xlane.f32.xlu0 %v1811_v48 }
 0xe04   : > { %4218 = vset.pattern.permute.xlu1 %v7407_v58 }
 0xe05   : > { %1860 = vperm.xlu1 %4218, %v5627_v62  }
 0xe09   : > { %4220 = vset.pattern.permute.xlu1 %v7408_v1 }
 0xe0a   : > { %1897 = vperm.xlu1 %4220, %v5627_v62  }
 0xe0c   : > { %v5686_v4 = vpop.permute.xlu1 %1821 }
 0xe0e   : > { %4221 = vset.pattern.permute.xlu1 %v7409_v10  ;;  %v5822_v10 = vrot.slane %v2054_v28, %v7381_v5 }
 0xe0f   : > { %2934 = vperm.xlu1 %4221, %v5627_v62  }
 0xe11   : > { %v5690_v39 = vpop.permute.xlu1 %1973 }
 0xe12   : > { %v2014_v32 = vmul.f32 %v5704_v41, %v5690_v39  ;;  %v2015_v56 = vmul.f32 %v5716_v13, %v5690_v39  ;;  %v2017_v36 = vmul.f32 %v5730_v54, %v5690_v39  ;;  %v2016_v61 = vmul.f32 %v5794_v18, %v5690_v39 }
 0xe13   : > { %4223 = vset.pattern.permute.xlu1 %v7410_v45  ;;  %v2111_v39 = vrot.slane %v5694_v19, %v7383_v33 }
 0xe14   : > { %2964 = vperm.xlu1 %4223, %v5627_v62  }
 0xe15   : > { %v5835_v31 = vrot.slane %v2111_v39, %v7383_v33 }
 0xe16   : > { %v5698_v60 = vpop.permute.xlu1 %2040 }
 0xe17   : > { %v2080_v2 = vmul.f32 %v5741_v17, %v5698_v60  ;;  %v2082_v25 = vmul.f32 %v5751_v15, %v5698_v60  ;;  %v2081_v12 = vmul.f32 %v5822_v10, %v5698_v60 }
 0xe18   : > { %4224 = vset.pattern.permute.xlu1 %v7411_v11  ;;  %2323 = vperm.xlu0 %4198, %v5627_v62  }
 0xe19   : > { %2993 = vperm.xlu1 %4224, %v5627_v62  }
 0xe1b   : > { %v5708_v53 = vpop.permute.xlu1 %2105 }
 0xe1c   : > { %4210 = vset.pattern.permute.xlu0 %v7413_v46  ;;  %v2145_v52 = vmul.f32 %v5763_v42, %v5708_v53  ;;  %v2147_v0 = vmul.f32 %v5775_v24, %v5708_v53  ;;  %v2144_v44 = vmul.f32 %v5835_v31, %v5708_v53 }
 0xe1d   : > { %2671 = vperm.xlu0 %4210, %v5627_v62   ;;  %2022 = vrot.lane.b32.xlu1 %v2014_v32, %s4335_s20  ;;  %v2119_v32 = vrot.slane %v5718_v37, %v7383_v33 }
 0xe1e   : > { %4226 = vset.pattern.permute.xlu1 %v7414_v14 }
 0xe20   : > { %v5725_v34 = vpop.permute.xlu1 %2170 }
 0xe21   : > { %4213 = vset.pattern.permute.xlu0 %v7415_v8  ;;  %2024 = vrot.lane.b32.xlu1 %v2015_v56, %s4335_s20  ;;  %v2210_v38 = vmul.f32 %v5786_v22, %v5725_v34  ;;  %v2212_v48 = vmul.f32 %v5804_v21, %v5725_v34 }
 0xe22   : > { %2759 = vperm.xlu0 %4213, %v5627_v62  }
 0xe25   : > { %2028 = vrot.lane.b32.xlu1 %v2017_v36, %s4335_s20  ;;  %v5738_v51 = vpop.permute.xlu1 %2235 }
 0xe26   : > { %4216 = vset.pattern.permute.xlu0 %v7417_v3  ;;  %v2239_v45 = vmul.f32 %v5738_v51, %v5716_v13  ;;  %v2241_v46 = vmul.f32 %v5738_v51, %v5730_v54  ;;  %v2238_v7 = vmul.f32 %v5738_v51, %v5704_v41 }
 0xe27   : > { %2847 = vperm.xlu0 %4216, %v5627_v62  }
 0xe29   : > { %2089 = vrot.lane.b32.xlu1 %v2080_v2, %s4335_s20 }
 0xe2a   : > { %v5755_v29 = vpop.permute.xlu1 %2265 }
 0xe2b   : > { %4219 = vset.pattern.permute.xlu0 %v7419_v43  ;;  %v2269_v56 = vmul.f32 %v5755_v29, %v5741_v17  ;;  %v2270_v9 = vmul.f32 %v5755_v29, %v5822_v10 }
 0xe2c   : > { %2905 = vperm.xlu0 %4219, %v5627_v62  }
 0xe2d   : > { %2093 = vrot.lane.b32.xlu1 %v2082_v25, %s4335_s20 }
 0xe2f   : > { %v5769_v59 = vpop.permute.xlu1 %2294 }
 0xe30   : > { %4222 = vset.pattern.permute.xlu0 %v7420_v27  ;;  %v2298_v20 = vmul.f32 %v5769_v59, %v5763_v42  ;;  %v2300_v43 = vmul.f32 %v5769_v59, %v5775_v24 }
 0xe31   : > { %1934 = vperm.xlu0 %4222, %v5627_v62   ;;  %2154 = vrot.lane.b32.xlu1 %v2145_v52, %s4335_s20  ;;  %v2240_v52 = vmul.f32 %v5738_v51, %v5794_v18 }
 0xe34   : > { %v5790_v50 = vpop.permute.xlu1 %2352 }
 0xe35   : > { %4225 = vset.pattern.permute.xlu0 %v7422_v16  ;;  %2158 = vrot.lane.b32.xlu1 %v2147_v0, %s4335_s20  ;;  %v2297_v0 = vmul.f32 %v5769_v59, %v5835_v31 }
 0xe36   : > { %3022 = vperm.xlu0 %4225, %v5627_v62   ;;  %v5808_v62 = vrot.slane %v2046_v49, %v7381_v5 }
 0xe38   : > { %v2079_v1 = vmul.f32 %v5808_v62, %v5698_v60  ;;  %v5846_v60 = vrot.slane %v2119_v32, %v7383_v33  ;;  %v2268_v27 = vmul.f32 %v5755_v29, %v5808_v62 }
 0xe39   : > { %2219 = vrot.lane.b32.xlu1 %v2210_v38, %s4335_s20  ;;  %v5815_v58 = vpop.permute.xlu1 %2381 }
 0xe3a   : > { %2026 = vrot.lane.b32.xlu0 %v2016_v61, %s4335_s20  ;;  %v2146_v26 = vmul.f32 %v5846_v60, %v5708_v53  ;;  %v5872_v53 = vrot.slane %v2184_v30, %v7423_v23  ;;  %v2299_v16 = vmul.f32 %v5769_v59, %v5846_v60 }
 0xe3b   : > { %4227 = vset.pattern.permute.xlu0 %v7414_v14  ;;  %v2176_v14 = vrot.slane %v5694_v19, %v7423_v23  ;;  %v2271_v19 = vmul.f32 %v5755_v29, %v5751_v15 }
 0xe3c   : > { %v2211_v37 = vmul.f32 %v5872_v53, %v5725_v34 }
 0xe3d   : > { %2223 = vrot.lane.b32.xlu1 %v2212_v48, %s4335_s20  ;;  %v5859_v36 = vrot.slane %v2176_v14, %v7423_v23 }
 0xe3e   : > { %2087 = vrot.lane.b32.xlu0 %v2079_v1, %s4335_s20  ;;  %v5831_v11 = vpop.permute.xlu1 %2410 }
 0xe3f   : > { %v2209_v3 = vmul.f32 %v5859_v36, %v5725_v34 }
 0xe41   : > { %2248 = vrot.lane.b32.xlu1 %v2239_v45, %s7221_s26 }
 0xe42   : > { %2091 = vrot.lane.b32.xlu0 %v2081_v12, %s4335_s20 }
 0xe43   : > { %v5852_v8 = vpop.permute.xlu1 %2439 }
 0xe45   : > { %2252 = vrot.lane.b32.xlu1 %v2241_v46, %s7221_s26 }
 0xe46   : > { %2152 = vrot.lane.b32.xlu0 %v2144_v44, %s4335_s20 }
 0xe48   : > { %v5868_v2 = vpop.permute.xlu1 %2468 }
 0xe49   : > { %2278 = vrot.lane.b32.xlu1 %v2269_v56, %s7221_s26  ;;  %v2356_v56 = vmul.f32 %v5790_v50, %v5716_v13 }
 0xe4a   : > { %2156 = vrot.lane.b32.xlu0 %v2146_v26, %s4335_s20  ;;  %v2355_v26 = vmul.f32 %v5790_v50, %v5704_v41 }
 0xe4d   : > { %2282 = vrot.lane.b32.xlu1 %v2271_v19, %s7221_s26  ;;  %v5882_v25 = vpop.permute.xlu1 %2497 }
 0xe4e   : > { %2217 = vrot.lane.b32.xlu0 %v2209_v3, %s4335_s20  ;;  %v2358_v3 = vmul.f32 %v5790_v50, %v5730_v54 }
 0xe51   : > { %2307 = vrot.lane.b32.xlu1 %v2298_v20, %s7221_s26  ;;  %v2357_v20 = vmul.f32 %v5790_v50, %v5794_v18  ;;  %v2387_v50 = vmul.f32 %v5815_v58, %v5751_v15 }
 0xe52   : > { %2221 = vrot.lane.b32.xlu0 %v2211_v37, %s4335_s20  ;;  %v5890_v34 = vpop.permute.xlu1 %2526 }
 0xe55   : > { %2311 = vrot.lane.b32.xlu1 %v2300_v43, %s7221_s26 }
 0xe56   : > { %2246 = vrot.lane.b32.xlu0 %v2238_v7, %s7221_s26  ;;  %v2385_v7 = vmul.f32 %v5815_v58, %v5741_v17 }
 0xe57   : > { %v5896_v63 = vpop.permute.xlu1 %2555 }
 0xe5a   : > { %2250 = vrot.lane.b32.xlu0 %v2240_v52, %s7221_s26  ;;  %v2384_v52 = vmul.f32 %v5815_v58, %v5808_v62 }
 0xe5c   : > { %v5903_v51 = vpop.permute.xlu1 %2584 }
 0xe5e   : > { %2276 = vrot.lane.b32.xlu0 %v2268_v27, %s7221_s26  ;;  %v2386_v27 = vmul.f32 %v5815_v58, %v5822_v10 }
 0xe61   : > { %v5909_v6 = vpop.permute.xlu1 %2613 }
 0xe62   : > { %2280 = vrot.lane.b32.xlu0 %v2270_v9, %s7221_s26 }
 0xe66   : > { %2305 = vrot.lane.b32.xlu0 %v2297_v0, %s7221_s26  ;;  %v5911_v49 = vpop.permute.xlu1 %2642 }
 0xe6a   : > { %2309 = vrot.lane.b32.xlu0 %v2299_v16, %s7221_s26  ;;  %v2414_v16 = vmul.f32 %v5831_v11, %v5763_v42 }
 0xe6b   : > { %v5913_v38 = vpop.permute.xlu1 %2700 }
 0xe70   : > { %v5915_v29 = vpop.permute.xlu1 %2730 }
 0xe75   : > { %v5917_v61 = vpop.permute.xlu1 %2788 }
 0xe7a   : > { %v5919_v28 = vpop.permute.xlu1 %2817 }
 0xe7f   : > { %v5921_v48 = vpop.permute.xlu1 %2876 }
 0xe84   : > { %v5925_v39 = vpop.permute.xlu1 %1860 }
 0xe89   : > { %v5931_v32 = vpop.permute.xlu1 %1897 }
 0xe8e   : > { %v5943_v30 = vpop.permute.xlu1 %2934 }
 0xe8f   : > { %v5923_v1 = vpop.xlane.xlu0 %1812 }
 0xe90   : > { %7424 = vst [vmem:[#allocation35_spill] sm:$0xff] %v5923_v1  ;;  %v2588_v1 = vmul.f32 %v5903_v51, %v5716_v13 }
 0xe93   : > { %v5955_v37 = vpop.permute.xlu1 %2964 }
 0xe97   : > { %v2324_v59 = vpop.permute.xlu0 %2323 }
 0xe98   : > { %v2327_v45 = vmul.f32 %v2324_v59, %v5786_v22  ;;  %v2326_v12 = vmul.f32 %v2324_v59, %v5859_v36  ;;  %v2329_v44 = vmul.f32 %v2324_v59, %v5804_v21  ;;  %v2328_v14 = vmul.f32 %v2324_v59, %v5872_v53  ;;  %v5969_v9 = vpop.permute.xlu1 %2993 }
 0xe99   : > { %v2413_v59 = vmul.f32 %v5831_v11, %v5835_v31 }
 0xe9a   : > { %2336 = vrot.lane.b32.xlu1 %v2327_v45, %s7221_s26  ;;  %2334 = vrot.lane.b32.xlu0 %v2326_v12, %s7221_s26  ;;  %v2416_v12 = vmul.f32 %v5831_v11, %v5775_v24 }
 0xe9c   : > { %v5933_v46 = vpop.permute.xlu0 %2671  ;;  %v5981_v45 = vpop.permute.xlu1 %2022 }
 0xe9e   : > { %2340 = vrot.lane.b32.xlu1 %v2329_v44, %s7221_s26  ;;  %2338 = vrot.lane.b32.xlu0 %v2328_v14, %s7221_s26  ;;  %v2415_v44 = vmul.f32 %v5831_v11, %v5846_v60  ;;  %v2443_v14 = vmul.f32 %v5852_v8, %v5786_v22  ;;  %v2445_v11 = vmul.f32 %v5852_v8, %v5804_v21  ;;  %s4374_s26 = smov 6  }
 0xea1   : > { %v5945_v19 = vpop.permute.xlu0 %2759 }
 0xea2   : > { %2365 = vrot.lane.b32.xlu1 %v2356_v56, %s4316_s30  ;;  %2363 = vrot.lane.b32.xlu0 %v2355_v26, %s4316_s30  ;;  %v2442_v56 = vmul.f32 %v5852_v8, %v5859_v36  ;;  %v5995_v26 = vpop.permute.xlu1 %2024 }
 0xea6   : > { %2369 = vrot.lane.b32.xlu1 %v2358_v3, %s4316_s30  ;;  %2367 = vrot.lane.b32.xlu0 %v2357_v20, %s4316_s30  ;;  %v5957_v43 = vpop.permute.xlu0 %2847  ;;  %v2444_v20 = vmul.f32 %v5852_v8, %v5872_v53  ;;  %v2474_v8 = vmul.f32 %v5868_v2, %v5730_v54 }
 0xeaa   : > { %2394 = vrot.lane.b32.xlu1 %v2385_v7, %s4316_s30  ;;  %2392 = vrot.lane.b32.xlu0 %v2384_v52, %s4316_s30  ;;  %v6007_v7 = vpop.permute.xlu1 %2028 }
 0xeab   : > { %v5971_v0 = vpop.permute.xlu0 %2905 }
 0xeae   : > { %2398 = vrot.lane.b32.xlu1 %v2387_v50, %s4316_s30  ;;  %2396 = vrot.lane.b32.xlu0 %v2386_v27, %s4316_s30  ;;  %v2472_v50 = vmul.f32 %v5868_v2, %v5716_v13  ;;  %v2471_v27 = vmul.f32 %v5868_v2, %v5704_v41 }
 0xeb0   : > { %v5983_v58 = vpop.permute.xlu0 %1934 }
 0xeb2   : > { %2423 = vrot.lane.b32.xlu1 %v2414_v16, %s4316_s30  ;;  %2421 = vrot.lane.b32.xlu0 %v2413_v59, %s4316_s30  ;;  %v2473_v16 = vmul.f32 %v5868_v2, %v5794_v18  ;;  %v6021_v59 = vpop.permute.xlu1 %2089 }
 0xeb5   : > { %v5997_v3 = vpop.permute.xlu0 %3022 }
 0xeb6   : > { %2427 = vrot.lane.b32.xlu1 %v2416_v12, %s4316_s30  ;;  %2425 = vrot.lane.b32.xlu0 %v2415_v44, %s4316_s30  ;;  %v2501_v44 = vmul.f32 %v5882_v25, %v5741_v17 }
 0xeb9   : > { %v6009_v52 = vpop.permute.xlu0 %2026 }
 0xeba   : > { %2452 = vrot.lane.b32.xlu1 %v2443_v14, %s4316_s30  ;;  %2450 = vrot.lane.b32.xlu0 %v2442_v56, %s4316_s30  ;;  %v2500_v14 = vmul.f32 %v5882_v25, %v5808_v62  ;;  %v6033_v56 = vpop.permute.xlu1 %2093 }
 0xebd   : > { %v6023_v12 = vpop.permute.xlu0 %2087 }
 0xebe   : > { %2456 = vrot.lane.b32.xlu1 %v2445_v11, %s4316_s30  ;;  %2454 = vrot.lane.b32.xlu0 %v2444_v20, %s4316_s30  ;;  %v2503_v11 = vmul.f32 %v5882_v25, %v5751_v15  ;;  %v2502_v20 = vmul.f32 %v5882_v25, %v5822_v10  ;;  %v2532_v25 = vmul.f32 %v5890_v34, %v5775_v24  ;;  %s4365_s30 = smov 46  }
 0xec1   : > { %v6035_v2 = vpop.permute.xlu0 %2091 }
 0xec2   : > { %2481 = vrot.lane.b32.xlu1 %v2472_v50, %s4359_s25  ;;  %2479 = vrot.lane.b32.xlu0 %v2471_v27, %s4359_s25  ;;  %v2530_v50 = vmul.f32 %v5890_v34, %v5763_v42  ;;  %v2529_v27 = vmul.f32 %v5890_v34, %v5835_v31 }
 0xec6   : > { %2485 = vrot.lane.b32.xlu1 %v2474_v8, %s4359_s25  ;;  %2483 = vrot.lane.b32.xlu0 %v2473_v16, %s4359_s25  ;;  %v6047_v8 = vpop.permute.xlu1 %2154  ;;  %v6049_v16 = vpop.permute.xlu0 %2152 }
 0xeca   : > { %2510 = vrot.lane.b32.xlu1 %v2501_v44, %s4359_s25  ;;  %2508 = vrot.lane.b32.xlu0 %v2500_v14, %s4359_s25  ;;  %v2531_v44 = vmul.f32 %v5890_v34, %v5846_v60  ;;  %v6059_v14 = vpop.permute.xlu1 %2158  ;;  %v2561_v34 = vmul.f32 %v5896_v63, %v5804_v21 }
 0xecb   : > { %7425 = vst [vmem:[#allocation30_spill] sm:$0xff] %v6059_v14  ;;  %v2590_v14 = vmul.f32 %v5903_v51, %v5730_v54 }
 0xece   : > { %2514 = vrot.lane.b32.xlu1 %v2503_v11, %s4359_s25  ;;  %2512 = vrot.lane.b32.xlu0 %v2502_v20, %s4359_s25  ;;  %v6061_v11 = vpop.permute.xlu0 %2156  ;;  %v2559_v20 = vmul.f32 %v5896_v63, %v5786_v22 }
 0xed2   : > { %2539 = vrot.lane.b32.xlu1 %v2530_v50, %s4359_s25  ;;  %2537 = vrot.lane.b32.xlu0 %v2529_v27, %s4359_s25  ;;  %v2558_v50 = vmul.f32 %v5896_v63, %v5859_v36  ;;  %v2560_v27 = vmul.f32 %v5896_v63, %v5872_v53 }
 0xed6   : > { %2543 = vrot.lane.b32.xlu1 %v2532_v25, %s4359_s25  ;;  %2541 = vrot.lane.b32.xlu0 %v2531_v44, %s4359_s25  ;;  %v6073_v25 = vpop.permute.xlu1 %2219  ;;  %v6075_v44 = vpop.permute.xlu0 %2217 }
 0xeda   : > { %2568 = vrot.lane.b32.xlu1 %v2559_v20, %s4359_s25  ;;  %2566 = vrot.lane.b32.xlu0 %v2558_v50, %s4359_s25  ;;  %v2587_v20 = vmul.f32 %v5903_v51, %v5704_v41  ;;  %v6085_v50 = vpop.permute.xlu1 %2223  ;;  %v6087_v63 = vpop.permute.xlu0 %2221 }
 0xedb   : > { %7426 = vst [vmem:[#allocation28_spill] sm:$0xff] %v6085_v50  ;;  %7427 = vst [vmem:[#allocation15_spill] sm:$0xff] %v6087_v63 }
 0xede   : > { %2572 = vrot.lane.b32.xlu1 %v2561_v34, %s4359_s25  ;;  %2570 = vrot.lane.b32.xlu0 %v2560_v27, %s4359_s25  ;;  %v2589_v34 = vmul.f32 %v5903_v51, %v5794_v18  ;;  %v2617_v27 = vmul.f32 %v5909_v6, %v5741_v17  ;;  %v6101_v50 = vpop.permute.xlu0 %2246  ;;  %v2619_v51 = vmul.f32 %v5909_v6, %v5751_v15  ;;  %s4369_s25 = smov 5  }
 0xedf   : > { %7428 = vst [vmem:[#allocation36_spill] sm:$0xff] %v6101_v50  ;;  %v2646_v50 = vmul.f32 %v5911_v49, %v5763_v42 }
 0xee2   : > { %2597 = vrot.lane.b32.xlu1 %v2588_v1, %s4317_s12  ;;  %2595 = vrot.lane.b32.xlu0 %v2587_v20, %s4317_s12  ;;  %v2616_v1 = vmul.f32 %v5909_v6, %v5808_v62  ;;  %v6099_v20 = vpop.permute.xlu1 %2248  ;;  %v6113_v63 = vpop.permute.xlu0 %2250 }
 0xee3   : > { %7430 = vst [vmem:[#allocation31_spill] sm:$0xff] %v6113_v63  ;;  %v2676_v63 = vmul.f32 %v5933_v46, %v5872_v53 }
 0xee6   : > { %2601 = vrot.lane.b32.xlu1 %v2590_v14, %s4317_s12  ;;  %2599 = vrot.lane.b32.xlu0 %v2589_v34, %s4317_s12  ;;  %v2618_v14 = vmul.f32 %v5909_v6, %v5822_v10  ;;  %v6111_v34 = vpop.permute.xlu1 %2252  ;;  %v2648_v6 = vmul.f32 %v5911_v49, %v5775_v24 }
 0xee7   : > { %7429 = vst [vmem:[#allocation37_spill] sm:$0xff] %v6111_v34  ;;  %v2674_v34 = vmul.f32 %v5933_v46, %v5859_v36 }
 0xeea   : > { %2626 = vrot.lane.b32.xlu1 %v2617_v27, %s4317_s12  ;;  %2624 = vrot.lane.b32.xlu0 %v2616_v1, %s4317_s12  ;;  %v2645_v27 = vmul.f32 %v5911_v49, %v5835_v31  ;;  %v2647_v1 = vmul.f32 %v5911_v49, %v5846_v60 }
 0xeee   : > { %2630 = vrot.lane.b32.xlu1 %v2619_v51, %s4317_s12  ;;  %2628 = vrot.lane.b32.xlu0 %v2618_v14, %s4317_s12  ;;  %v6125_v51 = vpop.permute.xlu1 %2278  ;;  %v6127_v14 = vpop.permute.xlu0 %2276 }
 0xef2   : > { %2655 = vrot.lane.b32.xlu1 %v2646_v50, %s4317_s12  ;;  %2653 = vrot.lane.b32.xlu0 %v2645_v27, %s4317_s12  ;;  %v2675_v50 = vmul.f32 %v5933_v46, %v5786_v22  ;;  %v6137_v27 = vpop.permute.xlu1 %2282  ;;  %v6139_v49 = vpop.permute.xlu0 %2280 }
 0xef3   : > { %7431 = vst [vmem:[#allocation16_spill] sm:$0xff] %v6137_v27  ;;  %7432 = vst [vmem:[#allocation39_spill] sm:$0xff] %v6139_v49 }
 0xef6   : > { %2659 = vrot.lane.b32.xlu1 %v2648_v6, %s4317_s12  ;;  %2657 = vrot.lane.b32.xlu0 %v2647_v1, %s4317_s12  ;;  %v2677_v6 = vmul.f32 %v5933_v46, %v5804_v21  ;;  %v2703_v1 = vmul.f32 %v5913_v38, %v5704_v41  ;;  %v6153_v27 = vpop.permute.xlu0 %2305  ;;  %v2705_v46 = vmul.f32 %v5913_v38, %v5794_v18 }
 0xef7   : > { %7433 = vst [vmem:[#allocation41_spill] sm:$0xff] %v6153_v27  ;;  %v2733_v27 = vmul.f32 %v5915_v29, %v5808_v62 }
 0xefa   : > { %2682 = vrot.lane.b32.xlu0 %v2674_v34, %s4317_s12  ;;  %2684 = vrot.lane.b32.xlu1 %v2675_v50, %s4317_s12  ;;  %v2704_v34 = vmul.f32 %v5913_v38, %v5716_v13  ;;  %v6151_v50 = vpop.permute.xlu1 %2307  ;;  %v6165_v49 = vpop.permute.xlu0 %2309 }
 0xefb   : > { %7435 = vst [vmem:[#allocation17_spill] sm:$0xff] %v6165_v49 }
 0xefe   : > { %2686 = vrot.lane.b32.xlu0 %v2676_v63, %s4317_s12  ;;  %2688 = vrot.lane.b32.xlu1 %v2677_v6, %s4317_s12  ;;  %v2706_v63 = vmul.f32 %v5913_v38, %v5730_v54  ;;  %v6163_v6 = vpop.permute.xlu1 %2311  ;;  %s4378_s12 = smov 10  }
 0xeff   : > { %7434 = vst [vmem:[#allocation40_spill] sm:$0xff] %v6163_v6 }
 0xf02   : > { %2711 = vrot.lane.b32.xlu0 %v2703_v1, %s4309_s18  ;;  %2713 = vrot.lane.b32.xlu1 %v2704_v34, %s4309_s18  ;;  %v2734_v1 = vmul.f32 %v5915_v29, %v5741_v17 }
 0xf06   : > { %2715 = vrot.lane.b32.xlu0 %v2705_v46, %s4309_s18  ;;  %2717 = vrot.lane.b32.xlu1 %v2706_v63, %s4309_s18  ;;  %v2735_v46 = vmul.f32 %v5915_v29, %v5822_v10  ;;  %v2736_v63 = vmul.f32 %v5915_v29, %v5751_v15 }
 0xf0a   : > { %2741 = vrot.lane.b32.xlu0 %v2733_v27, %s4309_s18  ;;  %2743 = vrot.lane.b32.xlu1 %v2734_v1, %s4309_s18  ;;  %v2762_v27 = vmul.f32 %v5945_v19, %v5835_v31  ;;  %v2763_v1 = vmul.f32 %v5945_v19, %v5763_v42 }
 0xf0c   : > { %v6173_v34 = vpop.permute.xlu0 %2334  ;;  %v6175_v38 = vpop.permute.xlu1 %2336 }
 0xf0d   : > { %7436 = vst [vmem:[#allocation43_spill] sm:$0xff] %v6173_v34 }
 0xf0e   : > { %2745 = vrot.lane.b32.xlu0 %v2735_v46, %s4309_s18  ;;  %2747 = vrot.lane.b32.xlu1 %v2736_v63, %s4309_s18  ;;  %v2764_v46 = vmul.f32 %v5945_v19, %v5846_v60  ;;  %v2765_v63 = vmul.f32 %v5945_v19, %v5775_v24 }
 0xf10   : > { %v6183_v6 = vpop.permute.xlu0 %2338  ;;  %v6185_v49 = vpop.permute.xlu1 %2340 }
 0xf11   : > { %7437 = vst [vmem:[#allocation45_spill] sm:$0xff] %v6183_v6  ;;  %7438 = vst [vmem:[#allocation44_spill] sm:$0xff] %v6185_v49 }
 0xf12   : > { %2770 = vrot.lane.b32.xlu0 %v2762_v27, %s4309_s18  ;;  %2772 = vrot.lane.b32.xlu1 %v2763_v1, %s4309_s18  ;;  %v2791_v27 = vmul.f32 %v5917_v61, %v5859_v36  ;;  %v2792_v1 = vmul.f32 %v5917_v61, %v5786_v22 }
 0xf14   : > { %v6193_v34 = vpop.permute.xlu0 %2363  ;;  %v6195_v29 = vpop.permute.xlu1 %2365 }
 0xf15   : > { %7439 = vst [vmem:[#allocation18_spill] sm:$0xff] %v6193_v34 }
 0xf16   : > { %2774 = vrot.lane.b32.xlu0 %v2764_v46, %s4309_s18  ;;  %2776 = vrot.lane.b32.xlu1 %v2765_v63, %s4309_s18  ;;  %v2793_v46 = vmul.f32 %v5917_v61, %v5872_v53  ;;  %v2794_v63 = vmul.f32 %v5917_v61, %v5804_v21 }
 0xf18   : > { %v6203_v49 = vpop.permute.xlu0 %2367  ;;  %v6205_v6 = vpop.permute.xlu1 %2369 }
 0xf19   : > { %7440 = vst [vmem:[#allocation47_spill] sm:$0xff] %v6203_v49  ;;  %7441 = vst [vmem:[#allocation49_spill] sm:$0xff] %v6205_v6 }
 0xf1a   : > { %2799 = vrot.lane.b32.xlu0 %v2791_v27, %s4309_s18  ;;  %2801 = vrot.lane.b32.xlu1 %v2792_v1, %s4309_s18  ;;  %v2820_v27 = vmul.f32 %v5919_v28, %v5704_v41  ;;  %v2821_v1 = vmul.f32 %v5919_v28, %v5716_v13 }
 0xf1c   : > { %v6213_v34 = vpop.permute.xlu0 %2392  ;;  %v6215_v19 = vpop.permute.xlu1 %2394 }
 0xf1d   : > { %7442 = vst [vmem:[#allocation48_spill] sm:$0xff] %v6213_v34 }
 0xf1e   : > { %2803 = vrot.lane.b32.xlu0 %v2793_v46, %s4309_s18  ;;  %2805 = vrot.lane.b32.xlu1 %v2794_v63, %s4309_s18  ;;  %v2822_v63 = vmul.f32 %v5919_v28, %v5794_v18  ;;  %s7223_s18 = smov 125  }
 0xf20   : > { %v6223_v6 = vpop.permute.xlu0 %2396  ;;  %v6225_v49 = vpop.permute.xlu1 %2398 }
 0xf21   : > { %7443 = vst [vmem:[#allocation19_spill] sm:$0xff] %v6223_v6  ;;  %7444 = vst [vmem:[#allocation51_spill] sm:$0xff] %v6225_v49  ;;  %v2823_v49 = vmul.f32 %v5919_v28, %v5730_v54 }
 0xf22   : > { %2828 = vrot.lane.b32.xlu0 %v2820_v27, %s4365_s30  ;;  %2830 = vrot.lane.b32.xlu1 %v2821_v1, %s4365_s30  ;;  %v2850_v27 = vmul.f32 %v5957_v43, %v5808_v62  ;;  %v2851_v1 = vmul.f32 %v5957_v43, %v5741_v17 }
 0xf24   : > { %v6233_v61 = vpop.permute.xlu0 %2421  ;;  %v6235_v46 = vpop.permute.xlu1 %2423 }
 0xf25   : > { %7445 = vst [vmem:[#allocation53_spill] sm:$0xff] %v6233_v61 }
 0xf26   : > { %2832 = vrot.lane.b32.xlu0 %v2822_v63, %s4365_s30  ;;  %2834 = vrot.lane.b32.xlu1 %v2823_v49, %s4365_s30  ;;  %v2852_v49 = vmul.f32 %v5957_v43, %v5822_v10  ;;  %v2853_v63 = vmul.f32 %v5957_v43, %v5751_v15 }
 0xf28   : > { %v6243_v6 = vpop.permute.xlu0 %2425  ;;  %v6245_v34 = vpop.permute.xlu1 %2427 }
 0xf29   : > { %7446 = vst [vmem:[#allocation52_spill] sm:$0xff] %v6243_v6  ;;  %7447 = vst [vmem:[#allocation20_spill] sm:$0xff] %v6245_v34 }
 0xf2a   : > { %2858 = vrot.lane.b32.xlu0 %v2850_v27, %s4365_s30  ;;  %2860 = vrot.lane.b32.xlu1 %v2851_v1, %s4365_s30  ;;  %v2879_v27 = vmul.f32 %v5921_v48, %v5835_v31  ;;  %v2880_v1 = vmul.f32 %v5921_v48, %v5763_v42 }
 0xf2c   : > { %v6253_v61 = vpop.permute.xlu0 %2450  ;;  %v6255_v28 = vpop.permute.xlu1 %2452 }
 0xf2d   : > { %7448 = vst [vmem:[#allocation54_spill] sm:$0xff] %v6253_v61 }
 0xf2e   : > { %2862 = vrot.lane.b32.xlu0 %v2852_v49, %s4365_s30  ;;  %2864 = vrot.lane.b32.xlu1 %v2853_v63, %s4365_s30  ;;  %v2881_v49 = vmul.f32 %v5921_v48, %v5846_v60  ;;  %v2882_v63 = vmul.f32 %v5921_v48, %v5775_v24 }
 0xf30   : > { %v6263_v34 = vpop.permute.xlu0 %2454  ;;  %v6265_v6 = vpop.permute.xlu1 %2456 }
 0xf31   : > { %7449 = vst [vmem:[#allocation56_spill] sm:$0xff] %v6263_v34  ;;  %7450 = vst [vmem:[#allocation55_spill] sm:$0xff] %v6265_v6 }
 0xf32   : > { %2887 = vrot.lane.b32.xlu0 %v2879_v27, %s4365_s30  ;;  %2889 = vrot.lane.b32.xlu1 %v2880_v1, %s4365_s30  ;;  %v2908_v27 = vmul.f32 %v5971_v0, %v5859_v36  ;;  %v2909_v1 = vmul.f32 %v5971_v0, %v5786_v22 }
 0xf34   : > { %v6273_v61 = vpop.permute.xlu0 %2479  ;;  %v6275_v43 = vpop.permute.xlu1 %2481 }
 0xf35   : > { %7451 = vst [vmem:[#allocation21_spill] sm:$0xff] %v6273_v61 }
 0xf36   : > { %2891 = vrot.lane.b32.xlu0 %v2881_v49, %s4365_s30  ;;  %2893 = vrot.lane.b32.xlu1 %v2882_v63, %s4365_s30  ;;  %v2910_v49 = vmul.f32 %v5971_v0, %v5872_v53  ;;  %v2911_v63 = vmul.f32 %v5971_v0, %v5804_v21 }
 0xf38   : > { %v6283_v6 = vpop.permute.xlu0 %2483  ;;  %v6285_v34 = vpop.permute.xlu1 %2485 }
 0xf39   : > { %7452 = vst [vmem:[#allocation57_spill] sm:$0xff] %v6283_v6  ;;  %7453 = vst [vmem:[#allocation60_spill] sm:$0xff] %v6285_v34 }
 0xf3a   : > { %2916 = vrot.lane.b32.xlu0 %v2908_v27, %s4365_s30  ;;  %2918 = vrot.lane.b32.xlu1 %v2909_v1, %s4365_s30  ;;  %v2937_v27 = vmul.f32 %v5943_v30, %v5704_v41  ;;  %v2938_v1 = vmul.f32 %v5943_v30, %v5716_v13 }
 0xf3c   : > { %v6293_v61 = vpop.permute.xlu0 %2508  ;;  %v6295_v48 = vpop.permute.xlu1 %2510 }
 0xf3d   : > { %7454 = vst [vmem:[#allocation59_spill] sm:$0xff] %v6293_v61 }
 0xf3e   : > { %2920 = vrot.lane.b32.xlu0 %v2910_v49, %s4365_s30  ;;  %2922 = vrot.lane.b32.xlu1 %v2911_v63, %s4365_s30  ;;  %v2939_v49 = vmul.f32 %v5943_v30, %v5794_v18  ;;  %v2940_v63 = vmul.f32 %v5943_v30, %v5730_v54  ;;  %v3989_v54 = vld [vmem:[%s7061_s2 + $0x4] sm:$0xf]  ;;  %s4372_s30 = smov 4  }
 0xf40   : > { %v6303_v34 = vpop.permute.xlu0 %2512  ;;  %v6305_v6 = vpop.permute.xlu1 %2514 }
 0xf42   : > { %2945 = vrot.lane.b32.xlu0 %v2937_v27, %s4307_s11  ;;  %2947 = vrot.lane.b32.xlu1 %v2938_v1, %s4307_s11  ;;  %v2967_v27 = vmul.f32 %v5955_v37, %v5808_v62  ;;  %v2968_v1 = vmul.f32 %v5955_v37, %v5741_v17 }
 0xf44   : > { %v6313_v61 = vpop.permute.xlu0 %2537  ;;  %v6315_v0 = vpop.permute.xlu1 %2539 }
 0xf46   : > { %2949 = vrot.lane.b32.xlu0 %v2939_v49, %s4307_s11  ;;  %2951 = vrot.lane.b32.xlu1 %v2940_v63, %s4307_s11  ;;  %v2969_v49 = vmul.f32 %v5955_v37, %v5822_v10  ;;  %v2970_v63 = vmul.f32 %v5955_v37, %v5751_v15  ;;  %v3990_v15 = vld [vmem:[%s7062_s3 + $0x4] sm:$0xf] }
 0xf48   : > { %v6323_v41 = vpop.permute.xlu0 %2541  ;;  %v6325_v13 = vpop.permute.xlu1 %2543 }
 0xf4a   : > { %2975 = vrot.lane.b32.xlu0 %v2967_v27, %s4307_s11  ;;  %2977 = vrot.lane.b32.xlu1 %v2968_v1, %s4307_s11  ;;  %v2996_v27 = vmul.f32 %v5969_v9, %v5835_v31 }
 0xf4c   : > { %v6336_v18 = vpop.permute.xlu0 %2566  ;;  %v6338_v30 = vpop.permute.xlu1 %2568 }
 0xf4e   : > { %2979 = vrot.lane.b32.xlu0 %v2969_v49, %s4307_s11  ;;  %3054 = vperm.xlu1 %4226, %v3989_v54   ;;  %v2997_v54 = vmul.f32 %v5969_v9, %v5763_v42  ;;  %v2998_v49 = vmul.f32 %v5969_v9, %v5846_v60 }
 0xf50   : > { %v6343_v62 = vpop.permute.xlu0 %2570  ;;  %v6345_v17 = vpop.permute.xlu1 %2572 }
 0xf51   : > { %7455 = vst [vmem:[#allocation22_spill] sm:$0xff] %v6343_v62  ;;  %7456 = vst [vmem:[#allocation61_spill] sm:$0xff] %v6345_v17 }
 0xf52   : > { %2981 = vrot.lane.b32.xlu0 %v2970_v63, %s4307_s11  ;;  %3004 = vrot.lane.b32.xlu1 %v2996_v27, %s4307_s11  ;;  %v2999_v63 = vmul.f32 %v5969_v9, %v5775_v24  ;;  %v3026_v27 = vmul.f32 %v5997_v3, %v5786_v22  ;;  %v3028_v9 = vmul.f32 %v5997_v3, %v5804_v21 }
 0xf54   : > { %v6353_v1 = vpop.permute.xlu0 %2595  ;;  %v6355_v10 = vpop.permute.xlu1 %2597 }
 0xf55   : > { %7457 = vst [vmem:[#allocation63_spill] sm:$0xff] %v6353_v1  ;;  %7458 = vst [vmem:[#allocation62_spill] sm:$0xff] %v6355_v10 }
 0xf56   : > { %3006 = vrot.lane.b32.xlu0 %v2997_v54, %s4307_s11  ;;  %3008 = vrot.lane.b32.xlu1 %v2998_v49, %s4307_s11  ;;  %v3025_v54 = vmul.f32 %v5997_v3, %v5859_v36 }
 0xf58   : > { %v6366_v31 = vpop.permute.xlu0 %2599  ;;  %v6368_v37 = vpop.permute.xlu1 %2601 }
 0xf59   : > { %7459 = vst [vmem:[#allocation23_spill] sm:$0xff] %v6366_v31  ;;  %7460 = vst [vmem:[#allocation64_spill] sm:$0xff] %v6368_v37 }
 0xf5a   : > { %3064 = vperm.xlu0 %4227, %v3990_v15   ;;  %3010 = vrot.lane.b32.xlu1 %v2999_v63, %s4307_s11  ;;  %v3027_v15 = vmul.f32 %v5997_v3, %v5872_v53 }
 0xf5c   : > { %v6373_v42 = vpop.permute.xlu0 %2624  ;;  %v6375_v60 = vpop.permute.xlu1 %2626 }
 0xf5d   : > { %7461 = vst [vmem:[#allocation66_spill] sm:$0xff] %v6373_v42  ;;  %7462 = vst [vmem:[#allocation65_spill] sm:$0xff] %v6375_v60 }
 0xf5e   : > { %3035 = vrot.lane.b32.xlu0 %v3026_v27, %s4307_s11  ;;  %3033 = vrot.lane.b32.xlu1 %v3025_v54, %s4307_s11 }
 0xf60   : > { %v6383_v49 = vpop.permute.xlu0 %2628  ;;  %v6385_v24 = vpop.permute.xlu1 %2630 }
 0xf61   : > { %7463 = vst [vmem:[#allocation24_spill] sm:$0xff] %v6383_v49  ;;  %7464 = vst [vmem:[#allocation67_spill] sm:$0xff] %v6385_v24 }
 0xf62   : > { %3039 = vrot.lane.b32.xlu0 %v3028_v9, %s4307_s11  ;;  %3037 = vrot.lane.b32.xlu1 %v3027_v15, %s4307_s11  ;;  %s4368_s11 = smov 1  }
 0xf64   : > { %v6393_v22 = vpop.permute.xlu0 %2653  ;;  %v6395_v36 = vpop.permute.xlu1 %2655 }
 0xf65   : > { %7465 = vst [vmem:[#allocation69_spill] sm:$0xff] %v6393_v22  ;;  %7466 = vst [vmem:[#allocation68_spill] sm:$0xff] %v6395_v36 }
 0xf68   : > { %v6397_v63 = vpop.permute.xlu0 %2657  ;;  %v6399_v27 = vpop.permute.xlu1 %2659 }
 0xf69   : > { %7467 = vst [vmem:[#allocation25_spill] sm:$0xff] %v6397_v63  ;;  %7468 = vst [vmem:[#allocation70_spill] sm:$0xff] %v6399_v27 }
 0xf6c   : > { %v6401_v54 = vpop.permute.xlu0 %2682  ;;  %v6403_v24 = vpop.permute.xlu1 %2684 }
 0xf6d   : > { %7469 = vst [vmem:[#allocation72_spill] sm:$0xff] %v6401_v54  ;;  %7470 = vst [vmem:[#allocation71_spill] sm:$0xff] %v6403_v24 }
 0xf70   : > { %v6405_v21 = vpop.permute.xlu0 %2686  ;;  %v6407_v49 = vpop.permute.xlu1 %2688 }
 0xf71   : > { %7471 = vst [vmem:[#allocation26_spill] sm:$0xff] %v6405_v21  ;;  %7472 = vst [vmem:[#allocation73_spill] sm:$0xff] %v6407_v49 }
 0xf74   : > { %v6409_v53 = vpop.permute.xlu0 %2711  ;;  %v6411_v3 = vpop.permute.xlu1 %2713 }
 0xf75   : > { %7473 = vst [vmem:[#allocation75_spill] sm:$0xff] %v6409_v53  ;;  %7474 = vst [vmem:[#allocation74_spill] sm:$0xff] %v6411_v3  ;;  %v1817_v3 = vld [vmem:[#allocation2] sm:$0xff] }
 0xf76   : > { %v1870_v37 = vrot.slane %v1817_v3, %v7416_v47  ;;  %v1833_v42 = vrot.slane %v1817_v3, %v7412_v35  ;;  %v1907_v60 = vrot.slane %v1817_v3, %v7418_v57  ;;  %v1944_v17 = vrot.slane %v1817_v3, %v7421_v40 }
 0xf78   : > { %v6413_v9 = vpop.permute.xlu0 %2715  ;;  %v6415_v15 = vpop.permute.xlu1 %2717  ;;  %v1885_v35 = vrot.slane %v1870_v37, %v7381_v5  ;;  %v1848_v10 = vrot.slane %v1833_v42, %v7382_v55 }
 0xf79   : > { %7475 = vst [vmem:[#allocation27_spill] sm:$0xff] %v6413_v9  ;;  %7476 = vst [vmem:[#allocation76_spill] sm:$0xff] %v6415_v15 }
 0xf7a   : > { %v1854_v37 = vmul.f32 %v1848_v10, %v5686_v4 }
 0xf7c   : > { %v6417_v22 = vpop.permute.xlu0 %2741  ;;  %v6419_v63 = vpop.permute.xlu1 %2743 }
 0xf7d   : > { %7477 = vst [vmem:[#allocation78_spill] sm:$0xff] %v6417_v22  ;;  %7478 = vst [vmem:[#allocation77_spill] sm:$0xff] %v6419_v63  ;;  %v1866_v22 = vrot.slane %v1817_v3, %v7381_v5  ;;  %v1829_v63 = vrot.slane %v1817_v3, %v7382_v55 }
 0xf7f   : > { %v1844_v36 = vrot.slane %v1829_v63, %v7382_v55 }
 0xf80   : > { %v6421_v27 = vpop.permute.xlu0 %2745  ;;  %v6423_v54 = vpop.permute.xlu1 %2747 }
 0xf81   : > { %7479 = vst [vmem:[#allocation29_spill] sm:$0xff] %v6421_v27  ;;  %7480 = vst [vmem:[#allocation79_spill] sm:$0xff] %v6423_v54  ;;  %v1853_v63 = vmul.f32 %v1844_v36, %v5686_v4 }
 0xf84   : > { %v6425_v24 = vpop.permute.xlu0 %2770  ;;  %v6427_v21 = vpop.permute.xlu1 %2772 }
 0xf85   : > { %7481 = vst [vmem:[#allocation81_spill] sm:$0xff] %v6425_v24  ;;  %7482 = vst [vmem:[#allocation80_spill] sm:$0xff] %v6427_v21  ;;  %v1903_v24 = vrot.slane %v1817_v3, %v7383_v33  ;;  %v1818_v21 = vld [vmem:[#allocation2 + $0x8] sm:$0xf] }
 0xf86   : > { %v1874_v31 = vrot.slane %v1818_v21, %v7381_v5 }
 0xf88   : > { %v6429_v49 = vpop.permute.xlu0 %2774  ;;  %v6431_v53 = vpop.permute.xlu1 %2776  ;;  %v1889_v57 = vrot.slane %v1874_v31, %v7381_v5  ;;  %v1959_v31 = vrot.slane %v1944_v17, %v7423_v23  ;;  %v2030_v17 = vsel %vm859_vm10, %v5981_v45, %v5995_v26  ;;  %v2160_v45 = vsel %vm859_vm10, %v6049_v16, %v6047_v8 }
 0xf89   : > { %7483 = vst [vmem:[#allocation32_spill] sm:$0xff] %v6429_v49  ;;  %7484 = vst [vmem:[#allocation82_spill] sm:$0xff] %v6431_v53  ;;  %v1881_v49 = vrot.slane %v1866_v22, %v7381_v5  ;;  %v1940_v53 = vrot.slane %v1817_v3, %v7423_v23  ;;  %v1837_v22 = vrot.slane %v1818_v21, %v7382_v55 }
 0xf8a   : > { %v1891_v3 = vmul.f32 %v1885_v35, %v5925_v39 }
 0xf8b   : > { %v1955_v47 = vrot.slane %v1940_v53, %v7423_v23  ;;  %v1922_v53 = vrot.slane %v1907_v60, %v7383_v33 }
 0xf8c   : > { %v6433_v9 = vpop.permute.xlu0 %2799  ;;  %v6435_v15 = vpop.permute.xlu1 %2801 }
 0xf8d   : > { %7485 = vst [vmem:[#allocation85_spill] sm:$0xff] %v6433_v9  ;;  %7486 = vst [vmem:[#allocation83_spill] sm:$0xff] %v6435_v15  ;;  %v1964_v36 = vmul.f32 %v1955_v47, %v5983_v58  ;;  %v1928_v60 = vmul.f32 %v1922_v53, %v5931_v32  ;;  %v2096_v53 = vsel %vm859_vm10, %v6021_v59, %v6035_v2 }
 0xf90   : > { %v6439_v27 = vpop.permute.xlu0 %2803  ;;  %v6441_v54 = vpop.permute.xlu1 %2805 }
 0xf91   : > { %7487 = vst [vmem:[#allocation33_spill] sm:$0xff] %v6439_v27  ;;  %7488 = vst [vmem:[#allocation86_spill] sm:$0xff] %v6441_v54  ;;  %v1890_v27 = vmul.f32 %v1881_v49, %v5925_v39  ;;  %v1918_v54 = vrot.slane %v1903_v24, %v7383_v33  ;;  %v1948_v49 = vrot.slane %v1818_v21, %v7423_v23 }
 0xf93   : > { %v1893_v1 = vadd.f32 %v1890_v27, %v1853_v63  ;;  %v1963_v27 = vrot.slane %v1948_v49, %v7423_v23 }
 0xf94   : > { %v6447_v9 = vpop.permute.xlu0 %2828  ;;  %v6449_v15 = vpop.permute.xlu1 %2830 }
 0xf95   : > { %7489 = vst [vmem:[#allocation34_spill] sm:$0xff] %v6447_v9  ;;  %7490 = vst [vmem:[#allocation38_spill] sm:$0xff] %v6449_v15  ;;  %v1911_v9 = vrot.slane %v1818_v21, %v7383_v33  ;;  %v1927_v15 = vmul.f32 %v1918_v54, %v5931_v32  ;;  %v1852_v54 = vrot.slane %v1837_v22, %v7382_v55 }
 0xf96   : > { %v1892_v21 = vmul.f32 %v1889_v57, %v5925_v39  ;;  %v1894_v39 = vadd.f32 %v1891_v3, %v1854_v37  ;;  %v1966_v10 = vmul.f32 %v1963_v27, %v5983_v58 }
 0xf97   : > { %v1926_v40 = vrot.slane %v1911_v9, %v7383_v33  ;;  %v1855_v22 = vmul.f32 %v1852_v54, %v5686_v4 }
 0xf98   : > { %v6464_v62 = vpop.permute.xlu0 %2832  ;;  %v6466_v24 = vpop.permute.xlu1 %2834 }
 0xf99   : > { %7491 = vst [vmem:[#allocation42_spill] sm:$0xff] %v6466_v24  ;;  %v1930_v24 = vadd.f32 %v1927_v15, %v1893_v1  ;;  %v1929_v35 = vmul.f32 %v1926_v40, %v5931_v32  ;;  %v1895_v9 = vadd.f32 %v1892_v21, %v1855_v22  ;;  %v1965_v1 = vmul.f32 %v1959_v31, %v5983_v58 }
 0xf9a   : > { %v2095_v15 = vsel %vm859_vm10, %v6023_v12, %v6021_v59  ;;  %v1931_v40 = vadd.f32 %v1928_v60, %v1894_v39  ;;  %v2032_v58 = vsel %vm859_vm10, %v6009_v52, %v6007_v7  ;;  %v2225_v7 = vsel %vm859_vm10, %v6075_v44, %v6073_v25  ;;  %v7492_v59 = vld [vmem:[#allocation30_spill] sm:$0xff]  ;;  %v7495_v39 = vld [vmem:[#allocation28_spill] sm:$0xff] }
 0xf9b   : > { %v1967_v57 = vadd.f32 %v1964_v36, %v1930_v24  ;;  %v1932_v32 = vadd.f32 %v1929_v35, %v1895_v9  ;;  %v2031_v24 = vsel %vm859_vm10, %v5995_v26, %v6009_v52  ;;  %v2097_v26 = vsel %vm859_vm10, %v6035_v2, %v6033_v56  ;;  %v7493_v56 = vld [vmem:[#allocation36_spill] sm:$0xff]  ;;  %v7494_v35 = vld [vmem:[#allocation15_spill] sm:$0xff] }
 0xf9c   : > { %v6480_v47 = vpop.permute.xlu0 %2858  ;;  %v6482_v42 = vpop.permute.xlu1 %2860  ;;  %v1968_v12 = vadd.f32 %v1965_v1, %v1931_v40  ;;  %v2161_v31 = vsel %vm859_vm10, %v6047_v8, %v6061_v11  ;;  %v2162_v27 = vsel %vm859_vm10, %v6061_v11, %v7492_v59  ;;  %v2255_v2 = vsel %vm2254_vm4, %v7493_v56, %v6099_v20  ;;  %v7502_v59 = vld [vmem:[#allocation17_spill] sm:$0xff]  ;;  %v7503_v56 = vld [vmem:[#allocation40_spill] sm:$0xff] }
 0xf9d   : > { %v2036_v49 = vadd.f32 %v2030_v17, %v1967_v57  ;;  %v1969_v36 = vadd.f32 %v1966_v10, %v1932_v32  ;;  %v2226_v57 = vsel %vm859_vm10, %v6073_v25, %v7494_v35  ;;  %v2227_v9 = vsel %vm859_vm10, %v7494_v35, %v7495_v39  ;;  %v7497_v32 = vld [vmem:[#allocation37_spill] sm:$0xff] }
 0xf9e   : > { %v2037_v3 = vadd.f32 %v2031_v24, %v1968_v12  ;;  %v2284_v8 = vsel %vm2254_vm4, %v6127_v14, %v6125_v51 }
 0xf9f   : > { %v2101_v54 = vadd.f32 %v2095_v15, %v2036_v49  ;;  %v2038_v16 = vadd.f32 %v2032_v58, %v1969_v36  ;;  %v7496_v15 = vld [vmem:[#allocation31_spill] sm:$0xff]  ;;  %v7498_v49 = vld [vmem:[#allocation41_spill] sm:$0xff] }
 0xfa0   : > { %v6495_v4 = vpop.permute.xlu0 %2862  ;;  %v6497_v63 = vpop.permute.xlu1 %2864  ;;  %v2102_v44 = vadd.f32 %v2096_v53, %v2037_v3  ;;  %v2256_v40 = vsel %vm2254_vm4, %v6099_v20, %v7496_v15  ;;  %v2257_v25 = vsel %vm2254_vm4, %v7496_v15, %v7497_v32  ;;  %v2313_v24 = vsel %vm2254_vm4, %v7498_v49, %v6151_v50  ;;  %v7499_v36 = vld [vmem:[#allocation39_spill] sm:$0xff]  ;;  %v7500_v53 = vld [vmem:[#allocation16_spill] sm:$0xff] }
 0xfa1   : > { %v2166_v21 = vadd.f32 %v2160_v45, %v2101_v54  ;;  %v2103_v22 = vadd.f32 %v2097_v26, %v2038_v16  ;;  %v2285_v54 = vsel %vm2254_vm4, %v6125_v51, %v7499_v36  ;;  %v2286_v20 = vsel %vm2254_vm4, %v7499_v36, %v7500_v53  ;;  %v7501_v26 = vld [vmem:[#allocation43_spill] sm:$0xff] }
 0xfa2   : > { %v2167_v1 = vadd.f32 %v2161_v31, %v2102_v44  ;;  %v2315_v51 = vsel %vm2254_vm4, %v7502_v59, %v7503_v56  ;;  %v7511_v53 = vld [vmem:[#allocation19_spill] sm:$0xff] }
 0xfa3   : > { %v2231_v60 = vadd.f32 %v2225_v7, %v2166_v21  ;;  %v2168_v10 = vadd.f32 %v2162_v27, %v2103_v22  ;;  %v2342_v7 = vsel %vm2254_vm4, %v7501_v26, %v6175_v38  ;;  %v2314_v27 = vsel %vm2254_vm4, %v6151_v50, %v7502_v59  ;;  %v7507_v50 = vld [vmem:[#allocation48_spill] sm:$0xff]  ;;  %v7512_v26 = vld [vmem:[#allocation51_spill] sm:$0xff] }
 0xfa4   : > { %v6517_v52 = vpop.permute.xlu0 %2887  ;;  %v6519_v37 = vpop.permute.xlu1 %2889  ;;  %v2232_v58 = vadd.f32 %v2226_v57, %v2167_v1  ;;  %v7505_v57 = vld [vmem:[#allocation45_spill] sm:$0xff]  ;;  %v2400_v1 = vsel %vm1359_vm14, %v7507_v50, %v6215_v19 }
 0xfa5   : > { %v2261_v17 = vadd.f32 %v2255_v2, %v2231_v60  ;;  %v2233_v45 = vadd.f32 %v2227_v9, %v2168_v10  ;;  %v7504_v2 = vld [vmem:[#allocation18_spill] sm:$0xff]  ;;  %v2343_v39 = vsel %vm2254_vm4, %v6175_v38, %v7505_v57  ;;  %v7506_v9 = vld [vmem:[#allocation44_spill] sm:$0xff]  ;;  %v7509_v38 = vld [vmem:[#allocation49_spill] sm:$0xff] }
 0xfa6   : > { %v2262_v16 = vadd.f32 %v2256_v40, %v2232_v58  ;;  %v2371_v44 = vsel %vm1359_vm14, %v7504_v2, %v6195_v29  ;;  %v7510_v58 = vld [vmem:[#allocation53_spill] sm:$0xff] }
 0xfa7   : > { %v2290_v14 = vadd.f32 %v2284_v8, %v2261_v17  ;;  %v2263_v21 = vadd.f32 %v2257_v25, %v2233_v45  ;;  %v2344_v8 = vsel %vm2254_vm4, %v7505_v57, %v7506_v9  ;;  %v7508_v25 = vld [vmem:[#allocation47_spill] sm:$0xff]  ;;  %v2429_v45 = vsel %vm1359_vm14, %v7510_v58, %v6235_v46  ;;  %v7517_v9 = vld [vmem:[#allocation56_spill] sm:$0xff] }
 0xfa8   : > { %v6539_v11 = vpop.permute.xlu0 %2891  ;;  %v6550_v12 = vpop.permute.xlu1 %2893  ;;  %v2291_v22 = vadd.f32 %v2285_v54, %v2262_v16  ;;  %v2372_v49 = vsel %vm1359_vm14, %v6195_v29, %v7508_v25  ;;  %v7513_v29 = vld [vmem:[#allocation54_spill] sm:$0xff] }
 0xfa9   : > { %v2319_v31 = vadd.f32 %v2313_v24, %v2290_v14  ;;  %v2292_v60 = vadd.f32 %v2286_v20, %v2263_v21  ;;  %v2373_v24 = vsel %vm1359_vm14, %v7508_v25, %v7509_v38  ;;  %v2401_v20 = vsel %vm1359_vm14, %v6215_v19, %v7511_v53  ;;  %v7516_v19 = vld [vmem:[#allocation21_spill] sm:$0xff] }
 0xfaa   : > { %v2320_v10 = vadd.f32 %v2314_v27, %v2291_v22  ;;  %v2458_v16 = vsel %vm1359_vm14, %v7513_v29, %v6255_v28  ;;  %v7514_v27 = vld [vmem:[#allocation52_spill] sm:$0xff] }
 0xfab   : > { %v2348_v35 = vadd.f32 %v2342_v7, %v2319_v31  ;;  %v2321_v17 = vadd.f32 %v2315_v51, %v2292_v60  ;;  %v2402_v7 = vsel %vm1359_vm14, %v7511_v53, %v7512_v26  ;;  %v2430_v56 = vsel %vm1359_vm14, %v6235_v46, %v7514_v27  ;;  %v7515_v51 = vld [vmem:[#allocation20_spill] sm:$0xff]  ;;  %v7518_v46 = vld [vmem:[#allocation55_spill] sm:$0xff] }
 0xfac   : > { %v6561_v3 = vpop.permute.xlu0 %2916  ;;  %v6581_v40 = vpop.permute.xlu1 %2918  ;;  %v2349_v14 = vadd.f32 %v2343_v39, %v2320_v10  ;;  %v2431_v2 = vsel %vm1359_vm14, %v7514_v27, %v7515_v51  ;;  %v2460_v50 = vsel %vm1359_vm14, %v7517_v9, %v7518_v46  ;;  %v2518_v53 = vsel %vm1609_vm0, %v6303_v34, %v6305_v6  ;;  %v7522_v6 = vld [vmem:[#allocation62_spill] sm:$0xff]  ;;  %v7525_v51 = vld [vmem:[#allocation61_spill] sm:$0xff] }
 0xfad   : > { %v2377_v15 = vadd.f32 %v2371_v44, %v2348_v35  ;;  %v2350_v36 = vadd.f32 %v2344_v8, %v2321_v17  ;;  %v2487_v44 = vsel %vm1609_vm0, %v7516_v19, %v6275_v43  ;;  %v2459_v8 = vsel %vm1359_vm14, %v6255_v28, %v7517_v9  ;;  %v7524_v27 = vld [vmem:[#allocation22_spill] sm:$0xff]  ;;  %v7529_v9 = vld [vmem:[#allocation64_spill] sm:$0xff]  ;;  %v7531_v46 = vld [vmem:[#allocation69_spill] sm:$0xff] }
 0xfae   : > { %v2378_v21 = vadd.f32 %v2372_v49, %v2349_v14  ;;  %v7520_v49 = vld [vmem:[#allocation57_spill] sm:$0xff]  ;;  %v2545_v28 = vsel %vm1609_vm0, %v6313_v61, %v6315_v0  ;;  %v7527_v19 = vld [vmem:[#allocation66_spill] sm:$0xff] }
 0xfaf   : > { %v2406_v54 = vadd.f32 %v2400_v1, %v2377_v15  ;;  %v2379_v31 = vadd.f32 %v2373_v24, %v2350_v36  ;;  %v7519_v1 = vld [vmem:[#allocation59_spill] sm:$0xff]  ;;  %v2488_v38 = vsel %vm1609_vm0, %v6275_v43, %v7520_v49  ;;  %v7521_v24 = vld [vmem:[#allocation60_spill] sm:$0xff]  ;;  %v2574_v43 = vsel %vm1609_vm0, %v6336_v18, %v6338_v30 }
 0xfb0   : > { %v6583_v32 = vpop.permute.xlu0 %2920  ;;  %v2407_v22 = vadd.f32 %v2401_v20, %v2378_v21  ;;  %v6612_v57 = vpop.permute.xlu1 %2922  ;;  %v2516_v10 = vsel %vm1609_vm0, %v7519_v1, %v6295_v48  ;;  %v2489_v58 = vsel %vm1609_vm0, %v7520_v49, %v7521_v24  ;;  %v7532_v49 = vld [vmem:[#allocation24_spill] sm:$0xff]  ;;  %v7533_v24 = vld [vmem:[#allocation67_spill] sm:$0xff] }
 0xfb1   : > { %v2435_v59 = vadd.f32 %v2429_v45, %v2406_v54  ;;  %v2408_v60 = vadd.f32 %v2402_v7, %v2379_v31  ;;  %v2517_v54 = vsel %vm1609_vm0, %v6295_v48, %v6303_v34  ;;  %v2547_v48 = vsel %vm1609_vm0, %v6323_v41, %v6325_v13  ;;  %v7523_v34 = vld [vmem:[#allocation63_spill] sm:$0xff] }
 0xfb2   : > { %v2436_v17 = vadd.f32 %v2430_v56, %v2407_v22  ;;  %v2603_v21 = vsel %vm474_vm2, %v7523_v34, %v7522_v6  ;;  %v2575_v56 = vsel %vm1609_vm0, %v6338_v30, %v7524_v27  ;;  %v7530_v30 = vld [vmem:[#allocation68_spill] sm:$0xff] }
 0xfb3   : > { %v2464_v35 = vadd.f32 %v2458_v16, %v2435_v59  ;;  %v2437_v15 = vadd.f32 %v2431_v2, %v2408_v60  ;;  %v2546_v16 = vsel %vm1609_vm0, %v6315_v0, %v6323_v41  ;;  %v2576_v2 = vsel %vm1609_vm0, %v7524_v27, %v7525_v51  ;;  %v7526_v0 = vld [vmem:[#allocation65_spill] sm:$0xff]  ;;  %v7528_v60 = vld [vmem:[#allocation23_spill] sm:$0xff] }
 0xfb4   : > { %v6614_v39 = vpop.permute.xlu0 %2945  ;;  %v2465_v45 = vadd.f32 %v2459_v8, %v2436_v17  ;;  %v6643_v29 = vpop.permute.xlu1 %2947  ;;  %v2605_v8 = vsel %vm474_vm2, %v7528_v60, %v7529_v9  ;;  %v7541_v27 = vld [vmem:[#allocation73_spill] sm:$0xff]  ;;  %v7545_v9 = vld [vmem:[#allocation76_spill] sm:$0xff] }
 0xfb5   : > { %v2493_v25 = vadd.f32 %v2487_v44, %v2464_v35  ;;  %v2466_v14 = vadd.f32 %v2460_v50, %v2437_v15  ;;  %v2632_v44 = vsel %vm474_vm2, %v7527_v19, %v7526_v0  ;;  %v2604_v35 = vsel %vm474_vm2, %v7522_v6, %v7528_v60  ;;  %v7542_v51 = vld [vmem:[#allocation77_spill] sm:$0xff]  ;;  %v7544_v60 = vld [vmem:[#allocation27_spill] sm:$0xff] }
 0xfb6   : > { %v2494_v20 = vadd.f32 %v2488_v38, %v2465_v45  ;;  %v2661_v50 = vsel %vm474_vm2, %v7531_v46, %v7530_v30  ;;  %v2633_v38 = vsel %vm474_vm2, %v7526_v0, %v7532_v49  ;;  %v7535_v45 = vld [vmem:[#allocation72_spill] sm:$0xff]  ;;  %v7547_v46 = vld [vmem:[#allocation81_spill] sm:$0xff] }
 0xfb7   : > { %v2522_v36 = vadd.f32 %v2516_v10, %v2493_v25  ;;  %v2495_v26 = vadd.f32 %v2489_v58, %v2466_v14  ;;  %v2634_v58 = vsel %vm474_vm2, %v7532_v49, %v7533_v24  ;;  %v7548_v49 = vld [vmem:[#allocation29_spill] sm:$0xff]  ;;  %v7549_v24 = vld [vmem:[#allocation79_spill] sm:$0xff] }
 0xfb8   : > { %v6645_v61 = vpop.permute.xlu0 %2949  ;;  %v2523_v18 = vadd.f32 %v2517_v54, %v2494_v20  ;;  %v6674_v15 = vpop.permute.xlu1 %2951 }
 0xfb9   : > { %v2551_v7 = vadd.f32 %v2545_v28, %v2522_v36  ;;  %v2524_v31 = vadd.f32 %v2518_v53, %v2495_v26  ;;  %v7534_v28 = vld [vmem:[#allocation71_spill] sm:$0xff]  ;;  %v7537_v26 = vld [vmem:[#allocation70_spill] sm:$0xff] }
 0xfba   : > { %v2552_v41 = vadd.f32 %v2546_v16, %v2523_v18  ;;  %v2690_v14 = vsel %vm474_vm2, %v7535_v45, %v7534_v28  ;;  %v7538_v16 = vld [vmem:[#allocation74_spill] sm:$0xff]  ;;  %v7551_v45 = vld [vmem:[#allocation85_spill] sm:$0xff] }
 0xfbb   : > { %v2580_v59 = vadd.f32 %v2574_v43, %v2551_v7  ;;  %v2553_v13 = vadd.f32 %v2547_v48, %v2524_v31  ;;  %v7536_v43 = vld [vmem:[#allocation25_spill] sm:$0xff]  ;;  %v7539_v48 = vld [vmem:[#allocation75_spill] sm:$0xff]  ;;  %v7540_v31 = vld [vmem:[#allocation26_spill] sm:$0xff] }
 0xfbc   : > { %v2581_v1 = vadd.f32 %v2575_v56, %v2552_v41  ;;  %v6676_v25 = vpop.permute.xlu0 %2975  ;;  %v2662_v20 = vsel %vm474_vm2, %v7530_v30, %v7536_v43  ;;  %v2663_v7 = vsel %vm474_vm2, %v7536_v43, %v7537_v26  ;;  %v2720_v6 = vsel %vm2719_vm5, %v7539_v48, %v7538_v16  ;;  %v7546_v30 = vld [vmem:[#allocation80_spill] sm:$0xff]  ;;  %v7554_v48 = vld [vmem:[#allocation38_spill] sm:$0xff] }
 0xfbd   : > { %v2609_v22 = vadd.f32 %v2603_v21, %v2580_v59  ;;  %v2582_v10 = vadd.f32 %v2576_v2, %v2553_v13  ;;  %v2691_v59 = vsel %vm474_vm2, %v7534_v28, %v7540_v31  ;;  %v2692_v56 = vsel %vm474_vm2, %v7540_v31, %v7541_v27  ;;  %v7543_v2 = vld [vmem:[#allocation78_spill] sm:$0xff]  ;;  %v6705_v13 = vpop.permute.xlu1 %2977  ;;  %v7550_v28 = vld [vmem:[#allocation83_spill] sm:$0xff]  ;;  %v7556_v27 = vld [vmem:[#allocation33_spill] sm:$0xff] }
 0xfbe   : > { %v2610_v36 = vadd.f32 %v2604_v35, %v2581_v1  ;;  %v2749_v0 = vsel %vm2719_vm5, %v7543_v2, %v7542_v51  ;;  %v2721_v35 = vsel %vm2719_vm5, %v7538_v16, %v7544_v60  ;;  %vm2836_vm2 = vcmask 375808  }
 0xfbf   : > { %v2638_v17 = vadd.f32 %v2632_v44, %v2609_v22  ;;  %v2611_v54 = vadd.f32 %v2605_v8, %v2582_v10  ;;  %v2722_v8 = vsel %vm2719_vm5, %v7544_v60, %v7545_v9  ;;  %v7558_v9 = vld [vmem:[#allocation42_spill] sm:$0xff] }
 0xfc0   : > { %v2639_v34 = vadd.f32 %v2633_v38, %v2610_v36  ;;  %v6707_v22 = vpop.permute.xlu0 %2979  ;;  %v2750_v38 = vsel %vm2719_vm5, %v7542_v51, %v7548_v49  ;;  %v7557_v51 = vld [vmem:[#allocation86_spill] sm:$0xff] }
 0xfc1   : > { %v2667_v53 = vadd.f32 %v2661_v50, %v2638_v17  ;;  %v2640_v21 = vadd.f32 %v2634_v58, %v2611_v54  ;;  %v2778_v50 = vsel %vm2719_vm5, %v7547_v46, %v7546_v30  ;;  %v2751_v58 = vsel %vm2719_vm5, %v7548_v49, %v7549_v24 }
 0xfc2   : > { %v2668_v19 = vadd.f32 %v2662_v20, %v2639_v34  ;;  %v7552_v20 = vld [vmem:[#allocation32_spill] sm:$0xff]  ;;  %v2809_v2 = vsel %vm2719_vm5, %v7556_v27, %v7557_v51 }
 0xfc3   : > { %v2696_v18 = vadd.f32 %v2690_v14, %v2667_v53  ;;  %v2669_v44 = vadd.f32 %v2663_v7, %v2640_v21  ;;  %v2807_v14 = vsel %vm2719_vm5, %v7551_v45, %v7550_v28  ;;  %v2779_v26 = vsel %vm2719_vm5, %v7546_v30, %v7552_v20  ;;  %v7553_v7 = vld [vmem:[#allocation82_spill] sm:$0xff] }
 0xfc4   : > { %v2697_v1 = vadd.f32 %v2691_v59, %v2668_v19  ;;  %v2780_v16 = vsel %vm2719_vm5, %v7552_v20, %v7553_v7  ;;  %v2982_v59 = vpop.permute.xlu0 %2981  ;;  %v2895_v30 = vsel %vm2836_vm2, %v6517_v52, %v6519_v37  ;;  %v2925_v45 = vsel %vm2836_vm2, %v6581_v40, %v6583_v32 }
 0xfc5   : > { %v2726_v41 = vadd.f32 %v2720_v6, %v2696_v18  ;;  %v2698_v10 = vadd.f32 %v2692_v56, %v2669_v44  ;;  %v7555_v6 = vld [vmem:[#allocation34_spill] sm:$0xff]  ;;  %v2808_v56 = vsel %vm2719_vm5, %v7550_v28, %v7556_v27  ;;  %v2985_v7 = vsel %vm2953_vm6, %v6707_v22, %v2982_v59 }
 0xfc6   : > { %v2727_v36 = vadd.f32 %v2721_v35, %v2697_v1  ;;  %v2837_v34 = vsel %vm2836_vm2, %v7555_v6, %v7554_v48  ;;  %v2838_v35 = vsel %vm2836_vm2, %v7554_v48, %v6464_v62 }
 0xfc7   : > { %v2755_v17 = vadd.f32 %v2749_v0, %v2726_v41  ;;  %v2728_v54 = vadd.f32 %v2722_v8, %v2698_v10  ;;  %v2866_v0 = vsel %vm2836_vm2, %v6480_v47, %v6482_v42  ;;  %v2839_v8 = vsel %vm2836_vm2, %v6464_v62, %v7558_v9 }
 0xfc8   : > { %v2756_v21 = vadd.f32 %v2750_v38, %v2727_v36  ;;  %v2867_v47 = vsel %vm2836_vm2, %v6482_v42, %v6495_v4  ;;  %v2868_v10 = vsel %vm2836_vm2, %v6495_v4, %v6497_v63  ;;  %v2924_v62 = vsel %vm2836_vm2, %v6561_v3, %v6581_v40  ;;  %v3007_v52 = vpop.permute.xlu0 %3006 }
 0xfc9   : > { %v2784_v53 = vadd.f32 %v2778_v50, %v2755_v17  ;;  %v2757_v18 = vadd.f32 %v2751_v58, %v2728_v54  ;;  %v2896_v58 = vsel %vm2836_vm2, %v6519_v37, %v6539_v11  ;;  %v2897_v42 = vsel %vm2836_vm2, %v6539_v11, %v6550_v12 }
 0xfca   : > { %v2785_v19 = vadd.f32 %v2779_v26, %v2756_v21  ;;  %v2954_v4 = vsel %vm2953_vm6, %v6614_v39, %v6643_v29  ;;  %v2983_v37 = vsel %vm2953_vm6, %v6676_v25, %v6705_v13  ;;  %v2956_v40 = vsel %vm2953_vm6, %v6645_v61, %v6674_v15 }
 0xfcb   : > { %v2813_v31 = vadd.f32 %v2807_v14, %v2784_v53  ;;  %v2786_v44 = vadd.f32 %v2780_v16, %v2757_v18  ;;  %v2926_v14 = vsel %vm2836_vm2, %v6583_v32, %v6612_v57  ;;  %v2955_v53 = vsel %vm2953_vm6, %v6643_v29, %v6645_v61 }
 0xfcc   : > { %v2814_v46 = vadd.f32 %v2808_v56, %v2785_v19  ;;  %v2984_v25 = vsel %vm2953_vm6, %v6705_v13, %v6707_v22  ;;  %v3080_v19 = vld [vmem:[%s7063_s4] sm:$0x7] }
 0xfcd   : > { %v6727_v43 = vpop.permute.xlu1 %3054  ;;  %v2843_v41 = vadd.f32 %v2837_v34, %v2813_v31  ;;  %v2815_v50 = vadd.f32 %v2809_v2, %v2786_v44 }
 0xfce   : > { %v2844_v17 = vadd.f32 %v2838_v35, %v2814_v46 }
 0xfcf   : > { %v2872_v1 = vadd.f32 %v2866_v0, %v2843_v41  ;;  %v2845_v49 = vadd.f32 %v2839_v8, %v2815_v50 }
 0xfd0   : > { %v2873_v63 = vadd.f32 %v2867_v47, %v2844_v17  ;;  %v3093_v47 = vrot.slane %v3080_v19, %v7383_v33 }
 0xfd1   : > { %v3005_v60 = vpop.permute.xlu1 %3004  ;;  %v2901_v38 = vadd.f32 %v2895_v30, %v2872_v1  ;;  %v2874_v28 = vadd.f32 %v2868_v10, %v2845_v49  ;;  %v3085_v30 = vrot.slane %v3080_v19, %v7382_v55  ;;  %v3089_v1 = vrot.slane %v3080_v19, %v7381_v5 }
 0xfd2   : > { %v2902_v11 = vadd.f32 %v2896_v58, %v2873_v63  ;;  %v3012_v20 = vsel %vm2953_vm6, %v3005_v60, %v3007_v52 }
 0xfd3   : > { %v2930_v3 = vadd.f32 %v2924_v62, %v2901_v38  ;;  %v2903_v12 = vadd.f32 %v2897_v42, %v2874_v28  ;;  %v7559_v28 = vld [vmem:[#allocation35_spill] sm:$0xff] }
 0xfd4   : > { %v2931_v32 = vadd.f32 %v2925_v45, %v2902_v11 }
 0xfd5   : > { %v3009_v24 = vpop.permute.xlu1 %3008  ;;  %v2960_v36 = vadd.f32 %v2954_v4, %v2930_v3  ;;  %v2932_v57 = vadd.f32 %v2926_v14, %v2903_v12  ;;  %v3112_v14 = vld [vmem:[%s7064_s5 + $0x18] sm:$0xff] }
 0xfd6   : > { %v2961_v16 = vadd.f32 %v2955_v53, %v2931_v32  ;;  %v3013_v21 = vsel %vm2953_vm6, %v3007_v52, %v3009_v24  ;;  %v3110_v53 = vld [vmem:[%s7064_s5 + $0x8] sm:$0xff] }
 0xfd7   : > { %v2989_v26 = vadd.f32 %v2983_v37, %v2960_v36  ;;  %v2962_v48 = vadd.f32 %v2956_v40, %v2932_v57  ;;  %v3109_v37 = vld [vmem:[%s7064_s5] sm:$0xff]  ;;  %v3111_v40 = vld [vmem:[%s7064_s5 + $0x10] sm:$0xff] }
 0xfd8   : > { %v2990_v18 = vadd.f32 %v2984_v25, %v2961_v16 }
 0xfd9   : > { %v3065_v54 = vpop.permute.xlu0 %3064  ;;  %v3011_v39 = vpop.permute.xlu1 %3010  ;;  %v3018_v6 = vadd.f32 %v3012_v20, %v2989_v26  ;;  %v2991_v31 = vadd.f32 %v2985_v7, %v2962_v48 }
 0xfda   : > { %v3014_v61 = vsel %vm2953_vm6, %v3009_v24, %v3011_v39  ;;  %v3019_v56 = vadd.f32 %v3013_v21, %v2990_v18 }
 0xfdb   : > { %v3020_v51 = vadd.f32 %v3014_v61, %v2991_v31 }
 0xfdd   : > { %v3036_v29 = vpop.permute.xlu0 %3035  ;;  %v3034_v34 = vpop.permute.xlu1 %3033 }
 0xfde   : > { %v3041_v15 = vsel %vm2953_vm6, %v3034_v34, %v3036_v29 }
 0xfdf   : > { %v3047_v27 = vadd.f32 %v3041_v15, %v3018_v6 }
 0xfe1   : > { %v3057_v13 = vmul.f32 %v6727_v43, %v3047_v27  ;;  %v3040_v2 = vpop.permute.xlu0 %3039  ;;  %v3038_v22 = vpop.permute.xlu1 %3037 }
 0xfe2   : > { %v3042_v59 = vsel %vm2953_vm6, %v3036_v29, %v3038_v22  ;;  %v3043_v0 = vsel %vm2953_vm6, %v3038_v22, %v3040_v2 }
 0xfe3   : > { %v3067_v44 = vadd.f32 %v3065_v54, %v3057_v13  ;;  %v3048_v41 = vadd.f32 %v3042_v59, %v3019_v56  ;;  %v3049_v60 = vadd.f32 %v3043_v0, %v3020_v51  ;;  %v3205_v13 = vld [vmem:[%s7065_s6] sm:$0xff] }
 0xfe4   : > { %v3213_v59 = vld [vmem:[%s7066_s7] sm:$0xff] }
 0xfe5   : > { %v3070_v35 = vmax.f32 %v3067_v44, 0.0  ;;  %v3058_v9 = vmul.f32 %v6727_v43, %v3048_v41  ;;  %v3059_v8 = vmul.f32 %v6727_v43, %v3049_v60 }
 0xfe7   : > { %v3068_v46 = vadd.f32 %v3065_v54, %v3058_v9  ;;  %v3069_v50 = vadd.f32 %v3065_v54, %v3059_v8  ;;  %v3097_v17 = vmul.f32 %v3085_v30, %v3070_v35 }
 0xfe9   : > { %v3071_v10 = vmax.f32 %v3068_v46, 0.0  ;;  %v3072_v62 = vmax.f32 %v3069_v50, 0.0  ;;  %v3100_v24 = vsel %vm1750_vm1, %v3097_v17, 0.0  ;;  %v3206_v46 = vld [vmem:[%s7065_s6 + $0x8] sm:$0xff] }
 0xfea   : > { %v3214_v17 = vld [vmem:[%s7066_s7 + $0x8] sm:$0xff] }
 0xfeb   : > { %v3075_v49 = vcombine.low %v3070_v35, %v3071_v10  ;;  %3079 = vst [vmem:[#allocation3 + $0x14] sm:$0xf] %v3072_v62  ;;  %v3098_v38 = vmul.f32 %v3089_v1, %v3071_v10  ;;  %v3099_v52 = vmul.f32 %v3093_v47, %v3072_v62  ;;  %v7560_v47 = vld [vmem:[#allocation10_spill] sm:$0xff] }
 0xfed   : > { %3078 = vst [vmem:[#allocation3 + $0xc] sm:$0xff] %v3075_v49  ;;  %v3101_v43 = vsel %vm1750_vm1, %v3098_v38, 0.0  ;;  %v3103_v42 = vsel %vm1750_vm1, %v3099_v52, 0.0 }
 0xfee   : > { %v3102_v58 = vadd.f32 %v3101_v43, %v3100_v24  ;;  %v7561_v24 = vld [vmem:[#allocation14_spill] sm:$0xff] }
 0xff0   : > { %v3104_v4 = vadd.f32 %v3103_v42, %v3102_v58  ;;  %v7562_v58 = vld [vmem:[#allocation8_spill] sm:$0xff] }
 0xff2   : > { %3105 = vadd.xlane.f32.xlu1 %v3104_v4 }
0x107f   : > { %v3106_v63 = vpop.xlane.xlu1 %3105 }
0x1080   : > { %v3107_v3 = vadd.f32 %v3106_v63, %v7559_v28 }
0x1082   : > { %v3108_v45 = vmul.f32 0.00390625, %v3107_v3 }
0x1084   : > { %v3124_v11 = vrot.slane %v3108_v45, %v7381_v5  ;;  %v3116_v12 = vrot.slane %v3108_v45, %v7382_v55  ;;  %v3152_v36 = vrot.slane %v3108_v45, %v7383_v33  ;;  %v3180_v26 = vrot.slane %v3108_v45, %v7423_v23  ;;  %v7563_v45 = vld [vmem:[#allocation12_spill] sm:$0xff] }
0x1086   : > { %v3128_v54 = vmul.f32 %v3124_v11, %v3112_v14  ;;  %v3125_v39 = vmul.f32 %v3124_v11, %v3109_v37  ;;  %v6830_v20 = vmul.f32 %v3116_v12, %v3112_v14  ;;  %v3117_v32 = vmul.f32 %v3116_v12, %v3109_v37 }
0x1087   : > { %v3118_v57 = vmul.f32 %v3116_v12, %v3110_v53  ;;  %v3153_v25 = vmul.f32 %v3152_v36, %v3109_v37  ;;  %v6833_v7 = vmul.f32 %v3116_v12, %v3111_v40  ;;  %v3181_v16 = vmul.f32 %v3180_v26, %v3109_v37 }
0x1088   : > { %3139 = vrot.lane.b32.xlu1 %v3128_v54, %s4334_s29  ;;  %3133 = vrot.lane.b32.xlu0 %v3125_v39, %s4334_s29  ;;  %v3126_v48 = vmul.f32 %v3124_v11, %v3110_v53  ;;  %v3154_v6 = vmul.f32 %v3152_v36, %v3110_v53  ;;  %v3182_v29 = vmul.f32 %v3180_v26, %v3110_v53  ;;  %v3215_v53 = vld [vmem:[%s7066_s7 + $0x10] sm:$0xff] }
0x1089   : > { %v3127_v34 = vmul.f32 %v3124_v11, %v3111_v40  ;;  %v3155_v21 = vmul.f32 %v3152_v36, %v3111_v40  ;;  %v3183_v61 = vmul.f32 %v3180_v26, %v3111_v40  ;;  %v3156_v15 = vmul.f32 %v3152_v36, %v3112_v14  ;;  %v3207_v11 = vld [vmem:[%s7065_s6 + $0x10] sm:$0xff] }
0x108a   : > { %v3184_v18 = vmul.f32 %v3180_v26, %v3112_v14 }
0x108c   : > { %3161 = vrot.lane.b32.xlu0 %v3153_v25, %s4335_s20 }
0x1090   : > { %3189 = vrot.lane.b32.xlu0 %v3181_v16, %s7223_s18 }
0x1094   : > { %3135 = vrot.lane.b32.xlu0 %v3126_v48, %s4334_s29 }
0x1098   : > { %3163 = vrot.lane.b32.xlu0 %v3154_v6, %s4335_s20 }
0x109c   : > { %3191 = vrot.lane.b32.xlu0 %v3182_v29, %s7223_s18 }
0x10a0   : > { %3137 = vrot.lane.b32.xlu0 %v3127_v34, %s4334_s29 }
0x10a4   : > { %3165 = vrot.lane.b32.xlu0 %v3155_v21, %s4335_s20 }
0x10a8   : > { %3193 = vrot.lane.b32.xlu0 %v3183_v61, %s7223_s18 }
0x10ac   : > { %3167 = vrot.lane.b32.xlu0 %v3156_v15, %s4335_s20 }
0x10b0   : > { %3195 = vrot.lane.b32.xlu0 %v3184_v18, %s7223_s18  ;;  %s4384_s18 = smov 16  }
0x10fa   : > { %v3134_v31 = vpop.permute.xlu0 %3133 }
0x10fb   : > { %v3145_v56 = vadd.f32 %v3134_v31, %v3117_v32 }
0x10fe   : > { %v3162_v27 = vpop.permute.xlu0 %3161 }
0x10ff   : > { %v3173_v51 = vadd.f32 %v3162_v27, %v3145_v56 }
0x1102   : > { %v3190_v2 = vpop.permute.xlu0 %3189 }
0x1103   : > { %v3201_v22 = vadd.f32 %v3190_v2, %v3173_v51  ;;  %v3216_v51 = vld [vmem:[%s7066_s7 + $0x18] sm:$0xff] }
0x1105   : > { %v3209_v0 = vmul.f32 %v3205_v13, %v3201_v22 }
0x1106   : > { %v3136_v19 = vpop.permute.xlu0 %3135 }
0x1107   : > { %v3217_v44 = vadd.f32 %v3213_v59, %v3209_v0  ;;  %v3146_v35 = vadd.f32 %v3136_v19, %v3118_v57 }
0x1109   : > { %v6851_v41 = vmax.f32 %v3217_v44, 0.0 }
0x110a   : > { %v3164_v60 = vpop.permute.xlu0 %3163 }
0x110b   : > { %v3262_v9 = vrot.slane %v6851_v41, %v7423_v23  ;;  %v3234_v8 = vrot.slane %v6851_v41, %v7381_v5  ;;  %v3174_v30 = vadd.f32 %v3164_v60, %v3146_v35  ;;  %v3290_v10 = vrot.slane %v6851_v41, %v7560_v47 }
0x110c   : > { %v3248_v62 = vrot.slane %v6851_v41, %v7383_v33  ;;  %v3318_v43 = vrot.slane %v6851_v41, %v7561_v24  ;;  %v3276_v42 = vrot.slane %v6851_v41, %v7562_v58  ;;  %v3304_v14 = vrot.slane %v6851_v41, %v7563_v45 }
0x110d   : > { %3264 = vrot.lane.b32.xlu1 %v3262_v9, %s4367_s28  ;;  %3236 = vrot.lane.b32.xlu0 %v3234_v8, %s4368_s11  ;;  %s4370_s28 = smov 2   ;;  %s4371_s11 = smov 7  }
0x110e   : > { %v3192_v50 = vpop.permute.xlu0 %3191 }
0x110f   : > { %v3202_v1 = vadd.f32 %v3192_v50, %v3174_v30 }
0x1111   : > { %v3210_v49 = vmul.f32 %v3206_v46, %v3202_v1  ;;  %3292 = vrot.lane.b32.xlu1 %v3290_v10, %s4369_s25  ;;  %3250 = vrot.lane.b32.xlu0 %v3248_v62, %s4370_s28  ;;  %s4379_s25 = smov 15   ;;  %s4380_s28 = smov 12  }
0x1112   : > { %v3138_v38 = vpop.permute.xlu0 %3137 }
0x1113   : > { %v3218_v52 = vadd.f32 %v3214_v17, %v3210_v49  ;;  %v3147_v28 = vadd.f32 %v3138_v38, %v6833_v7  ;;  %v3140_v7 = vpop.permute.xlu1 %3139 }
0x1114   : > { %v3148_v16 = vadd.f32 %v3140_v7, %v6830_v20  ;;  %v3208_v20 = vld [vmem:[%s7065_s6 + $0x18] sm:$0xff] }
0x1115   : > { %v3222_v4 = vmax.f32 %v3218_v52, 0.0  ;;  %3320 = vrot.lane.b32.xlu1 %v3318_v43, %s4371_s11  ;;  %3278 = vrot.lane.b32.xlu0 %v3276_v42, %s4372_s30  ;;  %s4375_s30 = smov 11   ;;  %s4385_s11 = smov 18  }
0x1116   : > { %v3166_v63 = vpop.permute.xlu0 %3165 }
0x1117   : > { %v3346_v3 = vrot.slane %v3222_v4, %v7381_v5  ;;  %v3175_v37 = vadd.f32 %v3166_v63, %v3147_v28  ;;  %v3374_v54 = vrot.slane %v3222_v4, %v7423_v23  ;;  %v3332_v39 = vrot.slane %v3222_v4, %v7382_v55 }
0x1118   : > { %v3402_v26 = vrot.slane %v3222_v4, %v7560_v47  ;;  %v3360_v25 = vrot.slane %v3222_v4, %v7383_v33  ;;  %v3430_v6 = vrot.slane %v3222_v4, %v7561_v24  ;;  %v3388_v29 = vrot.slane %v3222_v4, %v7562_v58 }
0x1119   : > { %3348 = vrot.lane.b32.xlu1 %v3346_v3, %s4373_s27  ;;  %3306 = vrot.lane.b32.xlu0 %v3304_v14, %s4374_s26  ;;  %s4376_s27 = smov 8   ;;  %s4377_s26 = smov 13   ;;  %v3416_v18 = vrot.slane %v3222_v4, %v7563_v45 }
0x111a   : > { %v3194_v12 = vpop.permute.xlu0 %3193 }
0x111b   : > { %v3203_v36 = vadd.f32 %v3194_v12, %v3175_v37 }
0x111d   : > { %v3211_v40 = vmul.f32 %v3207_v11, %v3203_v36  ;;  %3376 = vrot.lane.b32.xlu1 %v3374_v54, %s4375_s30  ;;  %3334 = vrot.lane.b32.xlu0 %v3332_v39, %s4376_s27  ;;  %s4381_s27 = smov 17   ;;  %s4386_s30 = smov 23  }
0x111e   : > { %v3168_v32 = vpop.permute.xlu0 %3167 }
0x111f   : > { %v3219_v57 = vadd.f32 %v3215_v53, %v3211_v40  ;;  %v3176_v21 = vadd.f32 %v3168_v32, %v3148_v16 }
0x1121   : > { %3404 = vrot.lane.b32.xlu1 %v3402_v26, %s4377_s26  ;;  %3362 = vrot.lane.b32.xlu0 %v3360_v25, %s4378_s12  ;;  %v3223_v48 = vmax.f32 %v3219_v57, 0.0  ;;  %s4382_s26 = smov 14   ;;  %s4391_s12 = smov 24  }
0x1122   : > { %v3196_v34 = vpop.permute.xlu0 %3195 }
0x1123   : > { %v3204_v61 = vadd.f32 %v3196_v34, %v3176_v21  ;;  %v3458_v15 = vrot.slane %v3223_v48, %v7381_v5  ;;  %v3486_v27 = vrot.slane %v3223_v48, %v7423_v23  ;;  %v3444_v56 = vrot.slane %v3223_v48, %v7382_v55 }
0x1124   : > { %v3514_v2 = vrot.slane %v3223_v48, %v7560_v47  ;;  %v3472_v22 = vrot.slane %v3223_v48, %v7383_v33  ;;  %v3542_v0 = vrot.slane %v3223_v48, %v7561_v24  ;;  %v3500_v19 = vrot.slane %v3223_v48, %v7562_v58 }
0x1125   : > { %3432 = vrot.lane.b32.xlu1 %v3430_v6, %s4379_s25  ;;  %3390 = vrot.lane.b32.xlu0 %v3388_v29, %s4380_s28  ;;  %v3212_v31 = vmul.f32 %v3208_v20, %v3204_v61  ;;  %s4383_s28 = smov 19   ;;  %v3528_v60 = vrot.slane %v3223_v48, %v7563_v45  ;;  %s4392_s25 = smov 29  }
0x1127   : > { %v3220_v13 = vadd.f32 %v3216_v51, %v3212_v31 }
0x1129   : > { %3460 = vrot.lane.b32.xlu1 %v3458_v15, %s4381_s27  ;;  %3418 = vrot.lane.b32.xlu0 %v3416_v18, %s4382_s26  ;;  %v3224_v59 = vmax.f32 %v3220_v13, 0.0  ;;  %s4387_s27 = smov 20   ;;  %s4389_s26 = smov 22  }
0x112b   : > { %v3570_v44 = vrot.slane %v3224_v59, %v7381_v5  ;;  %v3598_v35 = vrot.slane %v3224_v59, %v7423_v23  ;;  %v3556_v9 = vrot.slane %v3224_v59, %v7382_v55  ;;  %v3626_v8 = vrot.slane %v3224_v59, %v7560_v47  ;;  %v6922_v47 = vld [vmem:[%s7067_s8 + $0x4] sm:$0xf] }
0x112c   : > { %v3584_v30 = vrot.slane %v3224_v59, %v7383_v33  ;;  %v3612_v5 = vrot.slane %v3224_v59, %v7562_v58  ;;  %v3640_v23 = vrot.slane %v3224_v59, %v7563_v45  ;;  %v3654_v46 = vrot.slane %v3224_v59, %v7561_v24  ;;  %v6915_v33 = vld [vmem:[%s7067_s8] sm:$0xf] }
0x112d   : > { %3488 = vrot.lane.b32.xlu1 %v3486_v27, %s4383_s28  ;;  %3446 = vrot.lane.b32.xlu0 %v3444_v56, %s4384_s18  ;;  %s4388_s18 = smov 25   ;;  %s4393_s28 = smov 26  }
0x1131   : > { %3516 = vrot.lane.b32.xlu1 %v3514_v2, %s4363_s21  ;;  %3474 = vrot.lane.b32.xlu0 %v3472_v22, %s4385_s11  ;;  %s4390_s21 = smov 27   ;;  %s4394_s11 = smov 28  }
0x1135   : > { %3544 = vrot.lane.b32.xlu1 %v3542_v0, %s4386_s30  ;;  %3502 = vrot.lane.b32.xlu0 %v3500_v19, %s4387_s27  ;;  %s4395_s30 = smov 30   ;;  %s4396_s27 = smov 31  }
0x1139   : > { %3572 = vrot.lane.b32.xlu1 %v3570_v44, %s4388_s18  ;;  %3530 = vrot.lane.b32.xlu0 %v3528_v60, %s4389_s26  ;;  %s4402_s18 = smov 118   ;;  %s4403_s26 = smov 117  }
0x113d   : > { %3600 = vrot.lane.b32.xlu1 %v3598_v35, %s4390_s21  ;;  %3558 = vrot.lane.b32.xlu0 %v3556_v9, %s4391_s12  ;;  %s4404_s21 = smov 116   ;;  %s4405_s12 = smov 115  }
0x1141   : > { %3628 = vrot.lane.b32.xlu1 %v3626_v8, %s4392_s25  ;;  %3586 = vrot.lane.b32.xlu0 %v3584_v30, %s4393_s28  ;;  %s7564_s25 = smov 125   ;;  %s7565_s28 = smov 124  }
0x1145   : > { %3614 = vrot.lane.b32.xlu0 %v3612_v5, %s4394_s11  ;;  %s4399_s11 = smov 121  }
0x1149   : > { %3642 = vrot.lane.b32.xlu0 %v3640_v23, %s4395_s30  ;;  %s4400_s30 = smov 120  }
0x114d   : > { %3656 = vrot.lane.b32.xlu0 %v3654_v46, %s4396_s27  ;;  %s4401_s27 = smov 119  }
0x117f   : > { %v3237_v50 = vpop.permute.xlu0 %3236  ;;  %v3265_v49 = vpop.permute.xlu1 %3264 }
0x1180   : > { %v3239_v1 = vmul.f32 %v3237_v50, %v6915_v33  ;;  %v3670_v62 = vmul.f32 %v6922_v47, %v3237_v50  ;;  %v3267_v38 = vmul.f32 %v3265_v49, %v6915_v33  ;;  %v3682_v43 = vmul.f32 %v6922_v47, %v3265_v49 }
0x1182   : > { %3241 = vrot.lane.b32.xlu1 %v3239_v1, %s4334_s29 }
0x1183   : > { %v3251_v10 = vpop.permute.xlu0 %3250  ;;  %v3293_v42 = vpop.permute.xlu1 %3292 }
0x1184   : > { %v3253_v17 = vmul.f32 %v3251_v10, %v6915_v33  ;;  %v3676_v52 = vmul.f32 %v6922_v47, %v3251_v10  ;;  %v3295_v4 = vmul.f32 %v3293_v42, %v6915_v33  ;;  %v3694_v3 = vmul.f32 %v6922_v47, %v3293_v42 }
0x1186   : > { %3672 = vrot.lane.b32.xlu1 %v3670_v62, %s4334_s29  ;;  %3255 = vrot.lane.b32.xlu0 %v3253_v17, %s4335_s20  ;;  %s4397_s29 = smov 123  }
0x1187   : > { %v3279_v24 = vpop.permute.xlu0 %3278  ;;  %v3321_v14 = vpop.permute.xlu1 %3320 }
0x1188   : > { %v3281_v58 = vmul.f32 %v3279_v24, %v6915_v33  ;;  %v3688_v63 = vmul.f32 %v6922_v47, %v3279_v24  ;;  %v3323_v37 = vmul.f32 %v3321_v14, %v6915_v33  ;;  %v3706_v36 = vmul.f32 %v6922_v47, %v3321_v14 }
0x118a   : > { %3269 = vrot.lane.b32.xlu0 %v3267_v38, %s7564_s25  ;;  %3678 = vrot.lane.b32.xlu1 %v3676_v52, %s4335_s20  ;;  %s4398_s20 = smov 122  }
0x118b   : > { %v3307_v28 = vpop.permute.xlu0 %3306  ;;  %v3349_v39 = vpop.permute.xlu1 %3348 }
0x118c   : > { %v3309_v45 = vmul.f32 %v3307_v28, %v6915_v33  ;;  %v3700_v11 = vmul.f32 %v6922_v47, %v3307_v28  ;;  %v3351_v53 = vmul.f32 %v3349_v39, %v6915_v33  ;;  %v3718_v57 = vmul.f32 %v6922_v47, %v3349_v39 }
0x118e   : > { %3684 = vrot.lane.b32.xlu1 %v3682_v43, %s7564_s25  ;;  %3283 = vrot.lane.b32.xlu0 %v3281_v58, %s7565_s28  ;;  %s4406_s25 = smov 114  }
0x118f   : > { %v3335_v12 = vpop.permute.xlu0 %3334  ;;  %v3377_v25 = vpop.permute.xlu1 %3376 }
0x1190   : > { %v3337_v54 = vmul.f32 %v3335_v12, %v6915_v33  ;;  %v3712_v40 = vmul.f32 %v6922_v47, %v3335_v12  ;;  %v3379_v7 = vmul.f32 %v3377_v25, %v6915_v33  ;;  %v3730_v6 = vmul.f32 %v6922_v47, %v3377_v25 }
0x1192   : > { %3297 = vrot.lane.b32.xlu0 %v3295_v4, %s4397_s29  ;;  %3690 = vrot.lane.b32.xlu1 %v3688_v63, %s7565_s28  ;;  %s4407_s28 = smov 113  }
0x1193   : > { %v3363_v32 = vpop.permute.xlu0 %3362  ;;  %v3405_v34 = vpop.permute.xlu1 %3404 }
0x1194   : > { %v3365_v26 = vmul.f32 %v3363_v32, %v6915_v33  ;;  %v3724_v16 = vmul.f32 %v6922_v47, %v3363_v32  ;;  %v3407_v21 = vmul.f32 %v3405_v34, %v6915_v33  ;;  %v3742_v18 = vmul.f32 %v6922_v47, %v3405_v34 }
0x1196   : > { %3696 = vrot.lane.b32.xlu1 %v3694_v3, %s4397_s29  ;;  %3311 = vrot.lane.b32.xlu0 %v3309_v45, %s4398_s20  ;;  %s4408_s29 = smov 112  }
0x1197   : > { %v3391_v48 = vpop.permute.xlu0 %3390  ;;  %v3433_v31 = vpop.permute.xlu1 %3432 }
0x1198   : > { %v3393_v29 = vmul.f32 %v3391_v48, %v6915_v33  ;;  %v3736_v61 = vmul.f32 %v6922_v47, %v3391_v48  ;;  %v3435_v27 = vmul.f32 %v3433_v31, %v6915_v33  ;;  %v3754_v13 = vmul.f32 %v6922_v47, %v3433_v31 }
0x119a   : > { %3325 = vrot.lane.b32.xlu0 %v3323_v37, %s4399_s11  ;;  %3702 = vrot.lane.b32.xlu1 %v3700_v11, %s4398_s20  ;;  %s4409_s20 = smov 111  }
0x119b   : > { %v3419_v15 = vpop.permute.xlu0 %3418  ;;  %v3461_v22 = vpop.permute.xlu1 %3460 }
0x119c   : > { %v3421_v20 = vmul.f32 %v3419_v15, %v6915_v33  ;;  %v3748_v56 = vmul.f32 %v6922_v47, %v3419_v15  ;;  %v3463_v59 = vmul.f32 %v3461_v22, %v6915_v33  ;;  %v3766_v44 = vmul.f32 %v6922_v47, %v3461_v22 }
0x119e   : > { %3708 = vrot.lane.b32.xlu1 %v3706_v36, %s4399_s11  ;;  %3339 = vrot.lane.b32.xlu0 %v3337_v54, %s4400_s30  ;;  %s4410_s11 = smov 110  }
0x119f   : > { %v3447_v51 = vpop.permute.xlu0 %3446  ;;  %v3489_v35 = vpop.permute.xlu1 %3488 }
0x11a0   : > { %v3449_v2 = vmul.f32 %v3447_v51, %v6915_v33  ;;  %v3760_v0 = vmul.f32 %v6922_v47, %v3447_v51  ;;  %v3491_v9 = vmul.f32 %v3489_v35, %v6915_v33  ;;  %v3778_v5 = vmul.f32 %v6922_v47, %v3489_v35 }
0x11a2   : > { %3353 = vrot.lane.b32.xlu0 %v3351_v53, %s4401_s27  ;;  %3714 = vrot.lane.b32.xlu1 %v3712_v40, %s4400_s30  ;;  %s4411_s30 = smov 109   ;;  %v3229_v40 = vrot.slane %v6851_v41, %v7382_v55 }
0x11a3   : > { %v3475_v19 = vpop.permute.xlu0 %3474  ;;  %v3517_v46 = vpop.permute.xlu1 %3516 }
0x11a4   : > { %v3477_v60 = vmul.f32 %v3475_v19, %v6915_v33  ;;  %v3772_v8 = vmul.f32 %v6922_v47, %v3475_v19  ;;  %v3519_v50 = vmul.f32 %v3517_v46, %v6915_v33  ;;  %v3790_v62 = vmul.f32 %v6922_v47, %v3517_v46 }
0x11a6   : > { %3720 = vrot.lane.b32.xlu1 %v3718_v57, %s4401_s27  ;;  %3367 = vrot.lane.b32.xlu0 %v3365_v26, %s4402_s18  ;;  %s7566_s27 = smov 108   ;;  %v3230_v26 = vmul.f32 %v3229_v40, %v6915_v33 }
0x11a7   : > { %v3503_v30 = vpop.permute.xlu0 %3502  ;;  %v3545_v49 = vpop.permute.xlu1 %3544 }
0x11a8   : > { %v3505_v23 = vmul.f32 %v3503_v30, %v6915_v33  ;;  %v3784_v1 = vmul.f32 %v6922_v47, %v3503_v30  ;;  %v3547_v38 = vmul.f32 %v3545_v49, %v6915_v33  ;;  %v3802_v43 = vmul.f32 %v6922_v47, %v3545_v49 }
0x11aa   : > { %3381 = vrot.lane.b32.xlu0 %v3379_v7, %s4403_s26  ;;  %3726 = vrot.lane.b32.xlu1 %v3724_v16, %s4402_s18  ;;  %s7567_s18 = smov 107  }
0x11ab   : > { %v3531_v10 = vpop.permute.xlu0 %3530  ;;  %v3573_v42 = vpop.permute.xlu1 %3572 }
0x11ac   : > { %v3533_v17 = vmul.f32 %v3531_v10, %v6915_v33  ;;  %v3796_v52 = vmul.f32 %v6922_v47, %v3531_v10  ;;  %v3575_v4 = vmul.f32 %v3573_v42, %v6915_v33  ;;  %v3814_v3 = vmul.f32 %v6922_v47, %v3573_v42 }
0x11ae   : > { %3732 = vrot.lane.b32.xlu1 %v3730_v6, %s4403_s26  ;;  %3395 = vrot.lane.b32.xlu0 %v3393_v29, %s4404_s21  ;;  %s7568_s26 = smov 106  }
0x11af   : > { %v3559_v24 = vpop.permute.xlu0 %3558  ;;  %v3601_v14 = vpop.permute.xlu1 %3600 }
0x11b0   : > { %v3561_v58 = vmul.f32 %v3559_v24, %v6915_v33  ;;  %v3808_v63 = vmul.f32 %v6922_v47, %v3559_v24  ;;  %v3603_v37 = vmul.f32 %v3601_v14, %v6915_v33  ;;  %v3826_v36 = vmul.f32 %v6922_v47, %v3601_v14 }
0x11b2   : > { %3409 = vrot.lane.b32.xlu0 %v3407_v21, %s4405_s12  ;;  %3738 = vrot.lane.b32.xlu1 %v3736_v61, %s4404_s21  ;;  %s4412_s21 = smov 105  }
0x11b3   : > { %v3587_v28 = vpop.permute.xlu0 %3586  ;;  %v3629_v39 = vpop.permute.xlu1 %3628 }
0x11b4   : > { %v3589_v45 = vmul.f32 %v3587_v28, %v6915_v33  ;;  %v3820_v11 = vmul.f32 %v6922_v47, %v3587_v28  ;;  %v3631_v32 = vmul.f32 %v3629_v39, %v6915_v33  ;;  %v3838_v25 = vmul.f32 %v6922_v47, %v3629_v39 }
0x11b6   : > { %3744 = vrot.lane.b32.xlu1 %v3742_v18, %s4405_s12  ;;  %3423 = vrot.lane.b32.xlu0 %v3421_v20, %s4406_s25  ;;  %s7569_s12 = smov 104  }
0x11b7   : > { %v3615_v12 = vpop.permute.xlu0 %3614 }
0x11b8   : > { %v3617_v54 = vmul.f32 %v3615_v12, %v6915_v33  ;;  %v3832_v57 = vmul.f32 %v6922_v47, %v3615_v12 }
0x11ba   : > { %3437 = vrot.lane.b32.xlu0 %v3435_v27, %s4407_s28  ;;  %3750 = vrot.lane.b32.xlu1 %v3748_v56, %s4406_s25  ;;  %s4413_s25 = smov 103  }
0x11bb   : > { %v3643_v53 = vpop.permute.xlu0 %3642 }
0x11bc   : > { %v3645_v7 = vmul.f32 %v3643_v53, %v6915_v33  ;;  %v3844_v55 = vmul.f32 %v6922_v47, %v3643_v53 }
0x11be   : > { %3756 = vrot.lane.b32.xlu1 %v3754_v13, %s4407_s28  ;;  %3451 = vrot.lane.b32.xlu0 %v3449_v2, %s4408_s29  ;;  %s4414_s28 = smov 102  }
0x11bf   : > { %v3657_v16 = vpop.permute.xlu0 %3656 }
0x11c0   : > { %v3659_v41 = vmul.f32 %v3657_v16, %v6915_v33  ;;  %v3850_v21 = vmul.f32 %v6922_v47, %v3657_v16 }
0x11c2   : > { %3465 = vrot.lane.b32.xlu0 %v3463_v59, %s4409_s20  ;;  %3762 = vrot.lane.b32.xlu1 %v3760_v0, %s4408_s29  ;;  %s4415_s29 = smov 101  }
0x11c6   : > { %3768 = vrot.lane.b32.xlu1 %v3766_v44, %s4409_s20  ;;  %3479 = vrot.lane.b32.xlu0 %v3477_v60, %s4410_s11  ;;  %s7570_s20 = smov 100  }
0x11ca   : > { %3493 = vrot.lane.b32.xlu0 %v3491_v9, %s4411_s30  ;;  %3774 = vrot.lane.b32.xlu1 %v3772_v8, %s4410_s11  ;;  %s4416_s11 = smov 99  }
0x11ce   : > { %3780 = vrot.lane.b32.xlu1 %v3778_v5, %s4411_s30  ;;  %3507 = vrot.lane.b32.xlu0 %v3505_v23, %s7566_s27  ;;  %s4417_s30 = smov 98  }
0x11d2   : > { %3521 = vrot.lane.b32.xlu0 %v3519_v50, %s7567_s18  ;;  %3786 = vrot.lane.b32.xlu1 %v3784_v1, %s7566_s27  ;;  %s4418_s27 = smov 97  }
0x11d6   : > { %3792 = vrot.lane.b32.xlu1 %v3790_v62, %s7567_s18  ;;  %3535 = vrot.lane.b32.xlu0 %v3533_v17, %s7568_s26  ;;  %v3669_v17 = vmul.f32 %v6922_v47, %v3229_v40 }
0x11da   : > { %3549 = vrot.lane.b32.xlu0 %v3547_v38, %s4412_s21  ;;  %3798 = vrot.lane.b32.xlu1 %v3796_v52, %s7568_s26 }
0x11de   : > { %3804 = vrot.lane.b32.xlu1 %v3802_v43, %s4412_s21  ;;  %3563 = vrot.lane.b32.xlu0 %v3561_v58, %s7569_s12  ;;  %s4419_s21 = smov [#allocation4]  }
0x11e2   : > { %3577 = vrot.lane.b32.xlu0 %v3575_v4, %s4413_s25  ;;  %3810 = vrot.lane.b32.xlu1 %v3808_v63, %s7569_s12  ;;  %s4243_s12 = sshll.u32 %s4419_s21, 4  ;;  %s4244_s12 = int_to_ptr.vmem [resolvable:$false] %s4243_s12 }
0x11e6   : > { %3816 = vrot.lane.b32.xlu1 %v3814_v3, %s4413_s25  ;;  %3591 = vrot.lane.b32.xlu0 %v3589_v45, %s4414_s28  ;;  %s350_s25 = sand.u32 1, %s4293_s14  }
0x11e7   : > { %s3909_s26 = scalar_lea.sflag [#allocation5], %s350_s25 }
0x11ea   : > { %3605 = vrot.lane.b32.xlu0 %v3603_v37, %s4415_s29  ;;  %3822 = vrot.lane.b32.xlu1 %v3820_v11, %s4414_s28  ;;  %s3997_s28 = smul.u32 12, %s350_s25 }
0x11ee   : > { %3828 = vrot.lane.b32.xlu1 %v3826_v36, %s4415_s29  ;;  %3619 = vrot.lane.b32.xlu0 %v3617_v54, %s7570_s20  ;;  %s3998_s29 = smul.u32 192, %s4496_s17 }
0x11f0   : > { %s7017_s18 = scalar_lea.hbm %s7069_s10, %s3998_s29 }
0x11f2   : > { %3633 = vrot.lane.b32.xlu0 %v3631_v32, %s4416_s11  ;;  %3834 = vrot.lane.b32.xlu1 %v3832_v57, %s7570_s20  ;;  %s352_s20 = scalar_lea.vmem [#allocation4], %s3997_s28  ;;  %s4245_s28 = scalar_lea.vmem %s4244_s12, 384 }
0x11f4   : > { %v3242_v48 = vpop.permute.xlu1 %3241 }
0x11f5   : > { %v3244_v6 = vadd.f32 %v3242_v48, %v3230_v26 }
0x11f6   : > { %3840 = vrot.lane.b32.xlu1 %v3838_v25, %s4416_s11  ;;  %3647 = vrot.lane.b32.xlu0 %v3645_v7, %s4417_s30  ;;  %s3923_s11 = sshll.u32 %s352_s20, 4  ;;  %s7019_s11 = int_to_ptr.vmem [resolvable:$true] %s3923_s11 }
0x11f7   : > { %s4239_s17 = scalar_lea.vmem %s7019_s11, 192  ;;  %p4246_p0 = scmp.lt.s32.totalorder %s7019_s11, %s4244_s12 }
0x11f8   : > { %v3673_v29 = vpop.permute.xlu1 %3672  ;;  %v3256_v34 = vpop.permute.xlu0 %3255  ;;  %p4240_p11 = scmp.ne.s32.totalorder %s7019_s11, %s4239_s17  ;;  %p4247_p1 = scmp.lt.s32.totalorder %s4245_s28, %s4239_s17 }
0x11f9   : > { %v3675_v52 = vadd.f32 %v3673_v29, %v3669_v17  ;;  %v3258_v24 = vadd.f32 %v3256_v34, %v3244_v6 }
0x11fa   : > { %3846 = vrot.lane.b32.xlu1 %v3844_v55, %s4417_s30  ;;  %3661 = vrot.lane.b32.xlu0 %v3659_v41, %s4418_s27  ;;  %p4241_p12 = pnand %p4240_p11, %p4513_p5  ;;  %p4248_p2 = por %p4247_p1, %p4246_p0 }
0x11fc   : > { %v3679_v61 = vpop.permute.xlu1 %3678  ;;  %v3270_v15 = vpop.permute.xlu0 %3269  ;;  %p4242_p13 = pneg %p4241_p12 }
0x11fd   : > { %v3681_v43 = vadd.f32 %v3679_v61, %v3675_v52  ;;  %v3272_v58 = vadd.f32 %v3270_v15, %v3258_v24 }
0x11fe   : > { %3852 = vrot.lane.b32.xlu1 %v3850_v21, %s4418_s27  ;;  %p4249_p3 = pnand %p4248_p2, %p4242_p13 }
0x1200   : > { %v3685_v18 = vpop.permute.xlu1 %3684  ;;  %v3284_v20 = vpop.permute.xlu0 %3283 }
0x1201   : > { %v3687_v63 = vadd.f32 %v3685_v18, %v3681_v43  ;;  %v3286_v28 = vadd.f32 %v3284_v20, %v3272_v58 }
0x1204   : > { %v3691_v31 = vpop.permute.xlu1 %3690  ;;  %v3298_v27 = vpop.permute.xlu0 %3297 }
0x1205   : > { %v3693_v3 = vadd.f32 %v3691_v31, %v3687_v63  ;;  %v3300_v45 = vadd.f32 %v3298_v27, %v3286_v28 }
0x1208   : > { %v3697_v56 = vpop.permute.xlu1 %3696  ;;  %v3312_v51 = vpop.permute.xlu0 %3311 }
0x1209   : > { %v3699_v11 = vadd.f32 %v3697_v56, %v3693_v3  ;;  %v3314_v12 = vadd.f32 %v3312_v51, %v3300_v45 }
0x120c   : > { %v3703_v13 = vpop.permute.xlu1 %3702  ;;  %v3326_v2 = vpop.permute.xlu0 %3325 }
0x120d   : > { %v3705_v36 = vadd.f32 %v3703_v13, %v3699_v11  ;;  %v3328_v54 = vadd.f32 %v3326_v2, %v3314_v12 }
0x1210   : > { %v3709_v22 = vpop.permute.xlu1 %3708  ;;  %v3340_v33 = vpop.permute.xlu0 %3339 }
0x1211   : > { %v3711_v53 = vadd.f32 %v3709_v22, %v3705_v36  ;;  %v3342_v40 = vadd.f32 %v3340_v33, %v3328_v54 }
0x1214   : > { %v3715_v59 = vpop.permute.xlu1 %3714  ;;  %v3354_v0 = vpop.permute.xlu0 %3353 }
0x1215   : > { %v3717_v32 = vadd.f32 %v3715_v59, %v3711_v53  ;;  %v3356_v57 = vadd.f32 %v3354_v0, %v3342_v40 }
0x1218   : > { %v3721_v19 = vpop.permute.xlu1 %3720  ;;  %v3368_v44 = vpop.permute.xlu0 %3367 }
0x1219   : > { %v3723_v7 = vadd.f32 %v3721_v19, %v3717_v32  ;;  %v3370_v16 = vadd.f32 %v3368_v44, %v3356_v57 }
0x121c   : > { %v3727_v60 = vpop.permute.xlu1 %3726  ;;  %v3382_v35 = vpop.permute.xlu0 %3381 }
0x121d   : > { %v3729_v48 = vadd.f32 %v3727_v60, %v3723_v7  ;;  %v3384_v6 = vadd.f32 %v3382_v35, %v3370_v16  ;;  %v3665_v7 = vld [vmem:[%s7068_s9] sm:$0xf]  ;;  %v3992_v16 = vld [vmem:[%s7068_s9 + $0x4] sm:$0xf] }
0x1220   : > { %v3733_v9 = vpop.permute.xlu1 %3732  ;;  %v3396_v8 = vpop.permute.xlu0 %3395 }
0x1221   : > { %v3735_v29 = vadd.f32 %v3733_v9, %v3729_v48  ;;  %v3398_v34 = vadd.f32 %v3396_v8, %v3384_v6 }
0x1224   : > { %v3739_v30 = vpop.permute.xlu1 %3738  ;;  %v3410_v5 = vpop.permute.xlu0 %3409 }
0x1225   : > { %v3741_v21 = vadd.f32 %v3739_v30, %v3735_v29  ;;  %v3412_v61 = vadd.f32 %v3410_v5, %v3398_v34 }
0x1228   : > { %v3745_v23 = vpop.permute.xlu1 %3744  ;;  %v3424_v46 = vpop.permute.xlu0 %3423 }
0x1229   : > { %v3747_v20 = vadd.f32 %v3745_v23, %v3741_v21  ;;  %v3426_v31 = vadd.f32 %v3424_v46, %v3412_v61 }
0x122c   : > { %v3751_v50 = vpop.permute.xlu1 %3750  ;;  %v3438_v1 = vpop.permute.xlu0 %3437 }
0x122d   : > { %v3753_v27 = vadd.f32 %v3751_v50, %v3747_v20  ;;  %v3440_v56 = vadd.f32 %v3438_v1, %v3426_v31 }
0x1230   : > { %v3757_v10 = vpop.permute.xlu1 %3756  ;;  %v3452_v62 = vpop.permute.xlu0 %3451 }
0x1231   : > { %v3759_v2 = vadd.f32 %v3757_v10, %v3753_v27  ;;  %v3454_v22 = vadd.f32 %v3452_v62, %v3440_v56 }
0x1234   : > { %v3763_v49 = vpop.permute.xlu1 %3762  ;;  %v3466_v38 = vpop.permute.xlu0 %3465 }
0x1235   : > { %v3765_v33 = vadd.f32 %v3763_v49, %v3759_v2  ;;  %v3468_v59 = vadd.f32 %v3466_v38, %v3454_v22 }
0x1238   : > { %v3769_v42 = vpop.permute.xlu1 %3768  ;;  %v3480_v4 = vpop.permute.xlu0 %3479 }
0x1239   : > { %v3771_v44 = vadd.f32 %v3769_v42, %v3765_v33  ;;  %v3482_v60 = vadd.f32 %v3480_v4, %v3468_v59  ;;  %v3886_v33 = vld [vmem:[#allocation3 + $0xc] sm:$0xff]  ;;  %v3872_v59 = vld [vmem:[#allocation3] sm:$0xff] }
0x123c   : > { %v3775_v14 = vpop.permute.xlu1 %3774  ;;  %v3494_v37 = vpop.permute.xlu0 %3493 }
0x123d   : > { %v3777_v35 = vadd.f32 %v3775_v14, %v3771_v44  ;;  %v3496_v9 = vadd.f32 %v3494_v37, %v3482_v60  ;;  %v3880_v60 = vcombine.high %v3872_v59, %v3872_v59 }
0x1240   : > { %v3781_v39 = vpop.permute.xlu1 %3780  ;;  %v3508_v47 = vpop.permute.xlu0 %3507 }
0x1241   : > { %v3783_v5 = vadd.f32 %v3781_v39, %v3777_v35  ;;  %v3510_v17 = vadd.f32 %v3508_v47, %v3496_v9 }
0x1244   : > { %v3787_v26 = vpop.permute.xlu1 %3786  ;;  %v3522_v25 = vpop.permute.xlu0 %3521 }
0x1245   : > { %v3789_v23 = vadd.f32 %v3787_v26, %v3783_v5  ;;  %v3524_v46 = vadd.f32 %v3522_v25, %v3510_v17  ;;  %v3873_v5 = vld [vmem:[#allocation3 + $0x8] sm:$0xf] }
0x1248   : > { %v3793_v55 = vpop.permute.xlu1 %3792  ;;  %v3536_v41 = vpop.permute.xlu0 %3535 }
0x1249   : > { %v3795_v52 = vadd.f32 %v3793_v55, %v3789_v23  ;;  %v3538_v24 = vadd.f32 %v3536_v41, %v3524_v46 }
0x124c   : > { %v3799_v15 = vpop.permute.xlu1 %3798  ;;  %v3550_v18 = vpop.permute.xlu0 %3549 }
0x124d   : > { %v3801_v10 = vadd.f32 %v3799_v15, %v3795_v52  ;;  %v3552_v62 = vadd.f32 %v3550_v18, %v3538_v24 }
0x1250   : > { %v3805_v51 = vpop.permute.xlu1 %3804  ;;  %v3564_v13 = vpop.permute.xlu0 %3563 }
0x1251   : > { %v3807_v43 = vadd.f32 %v3805_v51, %v3801_v10  ;;  %v3566_v58 = vadd.f32 %v3564_v13, %v3552_v62 }
0x1254   : > { %v3811_v0 = vpop.permute.xlu1 %3810  ;;  %v3578_v19 = vpop.permute.xlu0 %3577 }
0x1255   : > { %v3813_v42 = vadd.f32 %v3811_v0, %v3807_v43  ;;  %v3580_v4 = vadd.f32 %v3578_v19, %v3566_v58  ;;  %v3894_v0 = vcombine.high %v3886_v33, %v3886_v33  ;;  %v3887_v19 = vld [vmem:[#allocation3 + $0x14] sm:$0xf] }
0x1258   : > { %v3817_v8 = vpop.permute.xlu1 %3816  ;;  %v3592_v30 = vpop.permute.xlu0 %3591 }
0x1259   : > { %v3819_v3 = vadd.f32 %v3817_v8, %v3813_v42  ;;  %v3594_v45 = vadd.f32 %v3592_v30, %v3580_v4 }
0x125c   : > { %v3823_v50 = vpop.permute.xlu1 %3822  ;;  %v3606_v1 = vpop.permute.xlu0 %3605 }
0x125d   : > { %v3825_v14 = vadd.f32 %v3823_v50, %v3819_v3  ;;  %v3608_v37 = vadd.f32 %v3606_v1, %v3594_v45 }
0x1260   : > { %v3829_v49 = vpop.permute.xlu1 %3828  ;;  %v3620_v38 = vpop.permute.xlu0 %3619 }
0x1261   : > { %v3831_v36 = vadd.f32 %v3829_v49, %v3825_v14  ;;  %v3622_v54 = vadd.f32 %v3620_v38, %v3608_v37 }
0x1264   : > { %v3835_v63 = vpop.permute.xlu1 %3834  ;;  %v3634_v28 = vpop.permute.xlu0 %3633 }
0x1265   : > { %v3837_v39 = vadd.f32 %v3835_v63, %v3831_v36  ;;  %v3636_v47 = vadd.f32 %v3634_v28, %v3622_v54 }
0x1268   : > { %v3841_v11 = vpop.permute.xlu1 %3840  ;;  %v3648_v12 = vpop.permute.xlu0 %3647 }
0x1269   : > { %v3843_v32 = vadd.f32 %v3841_v11, %v3837_v39  ;;  %v3650_v57 = vadd.f32 %v3648_v12, %v3636_v47 }
0x126c   : > { %v3847_v53 = vpop.permute.xlu1 %3846  ;;  %v3662_v40 = vpop.permute.xlu0 %3661 }
0x126d   : > { %v3849_v26 = vadd.f32 %v3847_v53, %v3843_v32  ;;  %v3664_v25 = vadd.f32 %v3662_v40, %v3650_v57 }
0x126f   : > { %v3666_v55 = vadd.f32 %v3665_v7, %v3664_v25 }
0x1270   : > { %v3853_v48 = vpop.permute.xlu1 %3852 }
0x1271   : > { %v3855_v6 = vadd.f32 %v3853_v48, %v3849_v26 }
0x1273   : > { %v3858_v41 = vadd.f32 %v3992_v16, %v3855_v6 }
0x1275   : > { %v3859_v29 = vmax.f32 %v3666_v55, %v3858_v41 }
0x1277   : > { %v3860_v34 = vsub.f32 %v3666_v55, %v3859_v29  ;;  %v3863_v21 = vsub.f32 %v3858_v41, %v3859_v29 }
0x1279   : > { %v3861_v61 = vmul.f32 1.442695, %v3860_v34  ;;  %v3864_v15 = vmul.f32 1.442695, %v3863_v21 }
0x127b   : > { %4230 = vpow2.f32 %v3861_v61 }
0x127c   : > { %4232 = vpow2.f32 %v3864_v15 }
0x1285   : > { %v4231_v18 = vpop.eup %4230 }
0x1286   : > { %v4233_v20 = vpop.eup %4232 }
0x1287   : > { %v3866_v31 = vadd.f32 %v4233_v20, %v4231_v18 }
0x1289   : > { %4234 = vrcp.f32 %v3866_v31 }
0x1293   : > { %v4235_v27 = vpop.eup %4234 }
0x1294   : > { %v3868_v56 = vmul.f32 %v4235_v27, %v3866_v31 }
0x1296   : > { %v3869_v51 = vsub.f32 2.0, %v3868_v56 }
0x1298   : > { %v3870_v13 = vmul.f32 %v4235_v27, %v3869_v51 }
0x129a   : > { %v3885_v2 = vmul.f32 %v4233_v20, %v3870_v13  ;;  %v3871_v22 = vmul.f32 %v4231_v18, %v3870_v13 }
0x129c   : > { %3890 = vperm.xlu1 %4226, %v3885_v2   ;;  %3876 = vperm.xlu0 %4227, %v3871_v22  }
0x131b   : > { %v3891_v44 = vpop.permute.xlu1 %3890  ;;  %v3877_v35 = vpop.permute.xlu0 %3876 }
0x131c   : > { %v3896_v9 = vmul.f32 %v3891_v44, %v3886_v33  ;;  %v3897_v8 = vmul.f32 %v3894_v0, %v3891_v44  ;;  %v3898_v30 = vmul.f32 %v3891_v44, %v3887_v19  ;;  %v3882_v17 = vmul.f32 %v3877_v35, %v3872_v59 }
0x131d   : > { %v3883_v23 = vmul.f32 %v3880_v60, %v3877_v35  ;;  %v3884_v46 = vmul.f32 %v3877_v35, %v3873_v5 }
0x131e   : > { %v3899_v50 = vadd.f32 %v3896_v9, %v3882_v17 }
0x131f   : > { %v3900_v1 = vadd.f32 %v3897_v8, %v3883_v23  ;;  %v3901_v52 = vadd.f32 %v3898_v30, %v3884_v46 }
0x1321   : > { %v3904_v24 = vcombine.low %v3899_v50, %v3900_v1  ;;  %3907 = vst [vmem:[%s352_s20 + $0x8] sm:$0xf] %v3901_v52 }
0x1323   : > { %3906 = vst [vmem:[%s352_s20] sm:$0xff] %v3904_v24 }
0x1324   : > { %4252 = shalt.err (!%p4249_p3)
}
0x1325   : > { %s4253_s25 = scalar_lea.hbm %s7017_s18, 192  ;;  %s4257_s30 = scalar_lea.hbm %s7069_s10, 384 }
0x1326   : > { %p4254_p4 = scmp.ne.s32.totalorder %s7017_s18, %s4253_s25  ;;  %p4258_p9 = scmp.lt.u32.totalorder %s7017_s18, %s7069_s10 }
0x1327   : > { %p4259_p10 = scmp.lt.u32.totalorder %s4257_s30, %s4253_s25  ;;  %p4261_p12 = scmp.lt.u32.totalorder %s4253_s25, %s7017_s18 }
0x1328   : > { %p4255_p7 = pnand %p4254_p4, %p4513_p5 }
0x1329   : > { %p4260_p11 = por %p4259_p10, %p4258_p9 }
0x132a   : > { %p4256_p8 = pneg %p4255_p7 }
0x132b   : > { %p4262_p13 = por %p4261_p12, %p4260_p11 }
0x132d   : > { %p4263_p0 = pnand %p4262_p13, %p4256_p8 }
0x132f   : > { %4266 = shalt.err (!%p4263_p0)
}
0x1330   : > { %3999 = dma.vmem_to_hbm [thread:$0]  (%p4513_p5), %s7019_s11, 192, %s7017_s18, %s3909_s26  }
0x1331 PF: > { %p4005_p1 = scmp.ge.s32.totalorder %s4301_s16, 2  ;;  %s3935_s17 = sand.u32 1, %s4289_s13  }
0x1332   : > { %s3936_s12 = scalar_lea.sflag [#allocation5], %s3935_s17 }
0x1333   : > { %p4002_p2 = pnand %p4005_p1, %p4517_p6 }
0x1335   : > { %4284 = dma.done.wait (!%p4002_p2), %s3936_s12, 192  }
0x1336   : > { %4286 = vsyncadd (!%p4002_p2), %s3936_s12, 4294967104  ;;  %p20_p3 = scmp.ge.s32.totalorder %s4500_s19, 4   ;;  %s7571_s13 = smov %s4293_s14 }
0x1337   : > { %s7572_s14 = smov %s4297_s15  ;;  %s7573_s15 = smov %s4511_s22 }
0x1338   : > { %s7574_s16 = smov %s4500_s19  ;;  %22 = sbr.rel (!%p20_p3) target bundleno = 3 (0x3), region = 101 }
0x133f   :  { %3941 = vsyncpa [#allocation5], 1 }
0x1340   :  { %3943 = vsyncpa [#allocation5 + $0x1], 1 }

</bundles_post_ra>
